<compile_context>
chip_gen: v7x
topology: tpu7x:2x2x1
jax: 0.10.0
libtpu: 0.0.40
codegen_flags: <defaults>
</compile_context>

<pallas_src>
import functools

import jax
import jax.numpy as jnp
from jax import lax
from jax.experimental import pallas as pl
from jax.experimental.pallas import tpu as pltpu

# ----- model hyper-parameters (frame_size is undefined in the PyTorch source; pick 32) -----
FRAME_SIZE = 32
HIDDEN = 128
LAYERS = 5
OUT_DIM = 2


def rnn_only_kernel(x_ref, h0_ref, w_ih0_ref, w_hh0_ref, w_cat_ref, b_ref,
                    w_lin_ref, b_lin_ref, y_ref, state_ref, h_scr,
                    *, t_chunk, batch):
    """One grid step == one chunk of `t_chunk` time steps.

    x_ref    : (t_chunk*B, F)   chunk of inputs (time-major, flattened over (t, b))
    h0_ref   : (L, B, H)        initial hidden state
    w_ih0_ref: (F, H)           layer-0 input weights, pre-transposed
    w_hh0_ref: (H, H)           layer-0 hidden weights, pre-transposed
    w_cat_ref: (L-1, 2H, H)     fused [W_hh; W_ih] (pre-transposed) for layers 1..L-1
    b_ref    : (L, B, H)        (b_ih + b_hh) pre-broadcast over batch
    w_lin_ref: (H, 2)           final Linear weight, pre-transposed
    b_lin_ref: (1, 2)           final Linear bias
    y_ref    : (t_chunk*B, 2)   per-chunk output block
    state_ref: (L, B, H)        final hidden state (written at last chunk)
    h_scr    : (L, B, H) f32    persistent VMEM scratch carrying the recurrence
    """
    c = pl.program_id(0)

    @pl.when(c == 0)
    def _():
        h_scr[...] = h0_ref[...].astype(jnp.float32)

    # ---- hoisted layer-0 input projection for the whole chunk (one tall matmul) ----
    xw = jnp.dot(x_ref[...].astype(jnp.float32), w_ih0_ref[...],
                 preferred_element_type=jnp.float32)            # (t_chunk*B, H)

    # ---- hoisted (pre-broadcast) biases: no broadcast inside the time loop ----
    bias = [b_ref[l] for l in range(LAYERS)]                    # each (B, H)

    # ---- hidden state carried in registers within the chunk ----
    h = [h_scr[l] for l in range(LAYERS)]                       # each (B, H) f32

    tops = []
    for t in range(t_chunk):                                    # static unroll over the chunk
        # layer 0: input projection already done; only the hidden matmul is on the
        # serial critical path.
        pre = (xw[t * batch:(t + 1) * batch, :]
               + jnp.dot(h[0], w_hh0_ref[...], preferred_element_type=jnp.float32)
               + bias[0])
        h[0] = jnp.tanh(pre)
        inp = h[0]
        # layers 1..L-1: one fused K=2H matmul per layer.
        for l in range(1, LAYERS):
            cat = jnp.concatenate([h[l], inp], axis=-1)          # (B, 2H)
            pre = (jnp.dot(cat, w_cat_ref[l - 1], preferred_element_type=jnp.float32)
                   + bias[l])
            h[l] = jnp.tanh(pre)
            inp = h[l]
        tops.append(inp)

    # Spill hidden state once per chunk (carries the recurrence to the next grid step).
    for l in range(LAYERS):
        h_scr[l] = h[l]

    # ---- batched final Linear + Sigmoid over the whole chunk; single output store ----
    top = jnp.concatenate(tops, axis=0)                          # (t_chunk*B, H)
    logits = (jnp.dot(top, w_lin_ref[...], preferred_element_type=jnp.float32)
              + b_lin_ref[...])
    y_ref[...] = jax.nn.sigmoid(logits).astype(y_ref.dtype)

    @pl.when(c == pl.num_programs(0) - 1)
    def _():
        state_ref[...] = h_scr[...].astype(state_ref.dtype)


@functools.partial(jax.jit, static_argnames=("t_chunk",))
def rnn_only_forward(x, h0, w_ih0_t, w_ihr_t, w_hh_t, b_vec, w_lin_t, b_lin,
                     t_chunk=8):
    T, B, F = x.shape
    L, _, H = h0.shape
    t_chunk = min(t_chunk, T)
    assert T % t_chunk == 0, "T must be divisible by t_chunk"
    num_chunks = T // t_chunk

    # Fused per-layer weights for layers 1..L-1: stack [W_hh; W_ih] along K -> (L-1, 2H, H).
    w_cat = jnp.concatenate([w_hh_t[1:], w_ihr_t], axis=1)
    # Pre-broadcast bias over batch so no broadcast is emitted inside the time loop.
    b_bc = jnp.broadcast_to(b_vec[:, None, :], (L, B, H))
    # Flatten (T, B, F) -> (T*B, F): lets the kernel work on lane-friendly 2-D blocks.
    x_flat = x.reshape(T * B, F)

    kernel = functools.partial(rnn_only_kernel, t_chunk=t_chunk, batch=B)

    full = lambda shape: pl.BlockSpec(shape, lambda c: (0,) * len(shape))
    y_flat, new_state = pl.pallas_call(
        kernel,
        out_shape=(jax.ShapeDtypeStruct((T * B, OUT_DIM), x.dtype),
                   jax.ShapeDtypeStruct((L, B, H), x.dtype)),
        grid_spec=pltpu.PrefetchScalarGridSpec(
            num_scalar_prefetch=0,
            grid=(num_chunks,),
            in_specs=[
                pl.BlockSpec((t_chunk * B, F), lambda c: (c, 0)),  # x, one chunk per step
                full((L, B, H)),                                   # h0
                full((F, H)),                                      # W_ih layer 0 (T)
                full((H, H)),                                      # W_hh layer 0 (T)
                full((L - 1, 2 * H, H)),                           # fused [W_hh; W_ih] 1.. (T)
                full((L, B, H)),                                   # bias, pre-broadcast
                full((H, OUT_DIM)),                                # Linear weight (T)
                full((1, OUT_DIM)),                                # Linear bias
            ],
            out_specs=[
                pl.BlockSpec((t_chunk * B, OUT_DIM), lambda c: (c, 0)),
                pl.BlockSpec((L, B, H), lambda c: (0, 0, 0)),
            ],
            scratch_shapes=[pltpu.VMEM((L, B, H), jnp.float32)],
        ),
        compiler_params=pltpu.CompilerParams(
            dimension_semantics=("arbitrary",)),
    )(x_flat, h0, w_ih0_t, w_hh_t[0], w_cat, b_bc, w_lin_t, b_lin)

    return y_flat.reshape(T, B, OUT_DIM), new_state


def rnn_only_reference(x, h0, w_ih0_t, w_ihr_t, w_hh_t, b_vec, w_lin_t, b_lin):
    """Pure-JAX reference mirroring torch.nn.RNN(tanh) + Linear + Sigmoid."""
    def step(h_layers, x_t):
        inp = x_t
        new_h = []
        for l in range(LAYERS):
            w_ih = w_ih0_t if l == 0 else w_ihr_t[l - 1]
            h = jnp.tanh(inp @ w_ih + h_layers[l] @ w_hh_t[l] + b_vec[l])
            new_h.append(h)
            inp = h
        return jnp.stack(new_h), inp

    h_final, top = lax.scan(step, h0, x)
    y = jax.nn.sigmoid(top @ w_lin_t + b_lin[0])
    return y, h_final


if __name__ == "__main__":
    T, B = 16, 2          # two chunks of 8 -> exercises the cross-chunk hidden-state carry
    T_CHUNK = 8
    key = jax.random.PRNGKey(0)
    ks = jax.random.split(key, 10)
    bound = 1.0 / (HIDDEN ** 0.5)   # PyTorch default uniform(-1/sqrt(H), 1/sqrt(H))

    x = jax.random.normal(ks[0], (T, B, FRAME_SIZE), dtype=jnp.float32)
    h0 = 0.1 * jax.random.normal(ks[8], (LAYERS, B, HIDDEN), dtype=jnp.float32)

    # RNN weights, stored pre-transposed (in_dim, out_dim) so the kernel does x @ W.
    w_ih0_t = jax.random.uniform(ks[1], (FRAME_SIZE, HIDDEN), jnp.float32, -bound, bound)
    w_ihr_t = jax.random.uniform(ks[2], (LAYERS - 1, HIDDEN, HIDDEN), jnp.float32, -bound, bound)
    w_hh_t = jax.random.uniform(ks[3], (LAYERS, HIDDEN, HIDDEN), jnp.float32, -bound, bound)
    b_ih = jax.random.uniform(ks[4], (LAYERS, HIDDEN), jnp.float32, -bound, bound)
    b_hh = jax.random.uniform(ks[5], (LAYERS, HIDDEN), jnp.float32, -bound, bound)
    b_vec = b_ih + b_hh                                   # (L, H)

    # Final Linear(128, 2) + Sigmoid.
    w_lin_t = jax.random.uniform(ks[6], (HIDDEN, OUT_DIM), jnp.float32, -bound, bound)
    b_lin = jax.random.uniform(ks[7], (1, OUT_DIM), jnp.float32, -bound, bound)

    y, new_state = rnn_only_forward(x, h0, w_ih0_t, w_ihr_t, w_hh_t, b_vec,
                                    w_lin_t, b_lin, t_chunk=T_CHUNK)
    jax.block_until_ready((y, new_state))

    y_ref, state_ref = rnn_only_reference(x, h0, w_ih0_t, w_ihr_t, w_hh_t, b_vec,
                                          w_lin_t, b_lin)
    assert y.shape == (T, B, OUT_DIM) and new_state.shape == (LAYERS, B, HIDDEN)
    assert jnp.allclose(y, y_ref, rtol=1e-4, atol=1e-4)
    assert jnp.allclose(new_state, state_ref, rtol=1e-4, atol=1e-4)

    print("KERNEL_OK")
</pallas_src>

<mosaic_0001>
module attributes {stable_mosaic.version = 11 : i64} {
  func.func @rnn_only_kernel(%arg0: i32, %arg1: memref<16x32xf32, #tpu.memory_space<vmem>>, %arg2: memref<5x2x128xf32, #tpu.memory_space<vmem>>, %arg3: memref<32x128xf32, #tpu.memory_space<vmem>>, %arg4: memref<128x128xf32, #tpu.memory_space<vmem>>, %arg5: memref<4x256x128xf32, #tpu.memory_space<vmem>>, %arg6: memref<5x2x128xf32, #tpu.memory_space<vmem>>, %arg7: memref<128x2xf32, #tpu.memory_space<vmem>>, %arg8: memref<1x2xf32, #tpu.memory_space<vmem>>, %arg9: memref<16x2xf32, #tpu.memory_space<vmem>>, %arg10: memref<5x2x128xf32, #tpu.memory_space<vmem>>, %arg11: memref<5x2x128xf32, #tpu.memory_space<vmem>>) attributes {dimension_semantics = [#tpu.dimension_semantics<arbitrary>], iteration_bounds = array<i64: 2>, scalar_prefetch = 0 : i64, scratch_operands = 1 : i64, tpu.core_type = #tpu.core_type<tc>, window_params = [{transform_indices = @transform_0, window_bounds = array<i64: 16, 32>}, {pipeline_mode = #tpu.pipeline_mode<synchronous>, transform_indices = @transform_1, window_bounds = array<i64: 5, 2, 128>}, {pipeline_mode = #tpu.pipeline_mode<synchronous>, transform_indices = @transform_2, window_bounds = array<i64: 32, 128>}, {pipeline_mode = #tpu.pipeline_mode<synchronous>, transform_indices = @transform_3, window_bounds = array<i64: 128, 128>}, {pipeline_mode = #tpu.pipeline_mode<synchronous>, transform_indices = @transform_4, window_bounds = array<i64: 4, 256, 128>}, {pipeline_mode = #tpu.pipeline_mode<synchronous>, transform_indices = @transform_5, window_bounds = array<i64: 5, 2, 128>}, {pipeline_mode = #tpu.pipeline_mode<synchronous>, transform_indices = @transform_6, window_bounds = array<i64: 128, 2>}, {pipeline_mode = #tpu.pipeline_mode<synchronous>, transform_indices = @transform_7, window_bounds = array<i64: 1, 2>}, {transform_indices = @transform_8, window_bounds = array<i64: 16, 2>}, {pipeline_mode = #tpu.pipeline_mode<synchronous>, transform_indices = @transform_9, window_bounds = array<i64: 5, 2, 128>}]} {
    %c0_i32 = arith.constant 0 : i32
    %0 = arith.cmpi eq, %arg0, %c0_i32 : i32
    %1 = arith.extui %0 : i1 to i32
    %c0_i32_0 = arith.constant 0 : i32
    %2 = arith.cmpi ne, %1, %c0_i32_0 : i32
    scf.if %2 {
      %c0_206 = arith.constant 0 : index
      %c0_207 = arith.constant 0 : index
      %c0_208 = arith.constant 0 : index
      %296 = vector.load %arg2[%c0_206, %c0_207, %c0_208] : memref<5x2x128xf32, #tpu.memory_space<vmem>>, vector<5x2x128xf32>
      %c0_209 = arith.constant 0 : index
      %c0_210 = arith.constant 0 : index
      %c0_211 = arith.constant 0 : index
      %297 = vector.load %arg11[%c0_209, %c0_210, %c0_211] : memref<5x2x128xf32, #tpu.memory_space<vmem>>, vector<5x2x128xf32>
      tpu.vector_store %arg11[%c0_209, %c0_210, %c0_211], %296 {strides = array<i32>} : memref<5x2x128xf32, #tpu.memory_space<vmem>>, vector<5x2x128xf32>,
    } else {
    }
    %c0 = arith.constant 0 : index
    %c0_1 = arith.constant 0 : index
    %3 = vector.load %arg1[%c0, %c0_1] : memref<16x32xf32, #tpu.memory_space<vmem>>, vector<16x32xf32>
    %c0_2 = arith.constant 0 : index
    %c0_3 = arith.constant 0 : index
    %4 = vector.load %arg3[%c0_2, %c0_3] : memref<32x128xf32, #tpu.memory_space<vmem>>, vector<32x128xf32>
    %cst = arith.constant dense<0.000000e+00> : vector<16x128xf32>
    %5 = tpu.matmul %3, %4, %cst {dimension_numbers = #tpu.dot_dimension_numbers<[1], [0], [0], [1], [0, 0, 1, 1], [], []>} : vector<16x32xf32>, vector<32x128xf32>, vector<16x128xf32> -> vector<16x128xf32>
    %c0_4 = arith.constant 0 : index
    %c0_5 = arith.constant 0 : index
    %c0_6 = arith.constant 0 : index
    %6 = vector.load %arg6[%c0_4, %c0_5, %c0_6] : memref<5x2x128xf32, #tpu.memory_space<vmem>>, vector<1x2x128xf32>
    %7 = vector.shape_cast %6 : vector<1x2x128xf32> to vector<2x128xf32>
    %c1 = arith.constant 1 : index
    %c0_7 = arith.constant 0 : index
    %c0_8 = arith.constant 0 : index
    %8 = vector.load %arg6[%c1, %c0_7, %c0_8] : memref<5x2x128xf32, #tpu.memory_space<vmem>>, vector<1x2x128xf32>
    %9 = vector.shape_cast %8 : vector<1x2x128xf32> to vector<2x128xf32>
    %c2 = arith.constant 2 : index
    %c0_9 = arith.constant 0 : index
    %c0_10 = arith.constant 0 : index
    %10 = vector.load %arg6[%c2, %c0_9, %c0_10] : memref<5x2x128xf32, #tpu.memory_space<vmem>>, vector<1x2x128xf32>
    %11 = vector.shape_cast %10 : vector<1x2x128xf32> to vector<2x128xf32>
    %c3 = arith.constant 3 : index
    %c0_11 = arith.constant 0 : index
    %c0_12 = arith.constant 0 : index
    %12 = vector.load %arg6[%c3, %c0_11, %c0_12] : memref<5x2x128xf32, #tpu.memory_space<vmem>>, vector<1x2x128xf32>
    %13 = vector.shape_cast %12 : vector<1x2x128xf32> to vector<2x128xf32>
    %c4 = arith.constant 4 : index
    %c0_13 = arith.constant 0 : index
    %c0_14 = arith.constant 0 : index
    %14 = vector.load %arg6[%c4, %c0_13, %c0_14] : memref<5x2x128xf32, #tpu.memory_space<vmem>>, vector<1x2x128xf32>
    %15 = vector.shape_cast %14 : vector<1x2x128xf32> to vector<2x128xf32>
    %c0_15 = arith.constant 0 : index
    %c0_16 = arith.constant 0 : index
    %c0_17 = arith.constant 0 : index
    %16 = vector.load %arg11[%c0_15, %c0_16, %c0_17] : memref<5x2x128xf32, #tpu.memory_space<vmem>>, vector<1x2x128xf32>
    %17 = vector.shape_cast %16 : vector<1x2x128xf32> to vector<2x128xf32>
    %c1_18 = arith.constant 1 : index
    %c0_19 = arith.constant 0 : index
    %c0_20 = arith.constant 0 : index
    %18 = vector.load %arg11[%c1_18, %c0_19, %c0_20] : memref<5x2x128xf32, #tpu.memory_space<vmem>>, vector<1x2x128xf32>
    %19 = vector.shape_cast %18 : vector<1x2x128xf32> to vector<2x128xf32>
    %c2_21 = arith.constant 2 : index
    %c0_22 = arith.constant 0 : index
    %c0_23 = arith.constant 0 : index
    %20 = vector.load %arg11[%c2_21, %c0_22, %c0_23] : memref<5x2x128xf32, #tpu.memory_space<vmem>>, vector<1x2x128xf32>
    %21 = vector.shape_cast %20 : vector<1x2x128xf32> to vector<2x128xf32>
    %c3_24 = arith.constant 3 : index
    %c0_25 = arith.constant 0 : index
    %c0_26 = arith.constant 0 : index
    %22 = vector.load %arg11[%c3_24, %c0_25, %c0_26] : memref<5x2x128xf32, #tpu.memory_space<vmem>>, vector<1x2x128xf32>
    %23 = vector.shape_cast %22 : vector<1x2x128xf32> to vector<2x128xf32>
    %c4_27 = arith.constant 4 : index
    %c0_28 = arith.constant 0 : index
    %c0_29 = arith.constant 0 : index
    %24 = vector.load %arg11[%c4_27, %c0_28, %c0_29] : memref<5x2x128xf32, #tpu.memory_space<vmem>>, vector<1x2x128xf32>
    %25 = vector.shape_cast %24 : vector<1x2x128xf32> to vector<2x128xf32>
    %26 = vector.extract_strided_slice %5 {offsets = [0, 0], sizes = [2, 128], strides = [1, 1]} : vector<16x128xf32> to vector<2x128xf32>
    %c0_30 = arith.constant 0 : index
    %c0_31 = arith.constant 0 : index
    %27 = vector.load %arg4[%c0_30, %c0_31] : memref<128x128xf32, #tpu.memory_space<vmem>>, vector<128x128xf32>
    %cst_32 = arith.constant dense<0.000000e+00> : vector<2x128xf32>
    %28 = tpu.matmul %17, %27, %cst_32 {dimension_numbers = #tpu.dot_dimension_numbers<[1], [0], [0], [1], [0, 0, 1, 1], [], []>} : vector<2x128xf32>, vector<128x128xf32>, vector<2x128xf32> -> vector<2x128xf32>
    %29 = arith.addf %26, %28 : vector<2x128xf32>
    %30 = arith.addf %29, %7 : vector<2x128xf32>
    %31 = math.tanh %30 : vector<2x128xf32>
    %32 = tpu.concatenate %19, %31 in 1 : vector<2x128xf32>, vector<2x128xf32> -> vector<2x256xf32>
    %c0_33 = arith.constant 0 : index
    %c0_34 = arith.constant 0 : index
    %c0_35 = arith.constant 0 : index
    %33 = vector.load %arg5[%c0_33, %c0_34, %c0_35] : memref<4x256x128xf32, #tpu.memory_space<vmem>>, vector<1x256x128xf32>
    %34 = vector.shape_cast %33 : vector<1x256x128xf32> to vector<256x128xf32>
    %cst_36 = arith.constant dense<0.000000e+00> : vector<2x128xf32>
    %35 = tpu.matmul %32, %34, %cst_36 {dimension_numbers = #tpu.dot_dimension_numbers<[1], [0], [0], [1], [0, 0, 1, 1], [], []>} : vector<2x256xf32>, vector<256x128xf32>, vector<2x128xf32> -> vector<2x128xf32>
    %36 = arith.addf %35, %9 : vector<2x128xf32>
    %37 = math.tanh %36 : vector<2x128xf32>
    %38 = tpu.concatenate %21, %37 in 1 : vector<2x128xf32>, vector<2x128xf32> -> vector<2x256xf32>
    %c1_37 = arith.constant 1 : index
    %c0_38 = arith.constant 0 : index
    %c0_39 = arith.constant 0 : index
    %39 = vector.load %arg5[%c1_37, %c0_38, %c0_39] : memref<4x256x128xf32, #tpu.memory_space<vmem>>, vector<1x256x128xf32>
    %40 = vector.shape_cast %39 : vector<1x256x128xf32> to vector<256x128xf32>
    %cst_40 = arith.constant dense<0.000000e+00> : vector<2x128xf32>
    %41 = tpu.matmul %38, %40, %cst_40 {dimension_numbers = #tpu.dot_dimension_numbers<[1], [0], [0], [1], [0, 0, 1, 1], [], []>} : vector<2x256xf32>, vector<256x128xf32>, vector<2x128xf32> -> vector<2x128xf32>
    %42 = arith.addf %41, %11 : vector<2x128xf32>
    %43 = math.tanh %42 : vector<2x128xf32>
    %44 = tpu.concatenate %23, %43 in 1 : vector<2x128xf32>, vector<2x128xf32> -> vector<2x256xf32>
    %c2_41 = arith.constant 2 : index
    %c0_42 = arith.constant 0 : index
    %c0_43 = arith.constant 0 : index
    %45 = vector.load %arg5[%c2_41, %c0_42, %c0_43] : memref<4x256x128xf32, #tpu.memory_space<vmem>>, vector<1x256x128xf32>
    %46 = vector.shape_cast %45 : vector<1x256x128xf32> to vector<256x128xf32>
    %cst_44 = arith.constant dense<0.000000e+00> : vector<2x128xf32>
    %47 = tpu.matmul %44, %46, %cst_44 {dimension_numbers = #tpu.dot_dimension_numbers<[1], [0], [0], [1], [0, 0, 1, 1], [], []>} : vector<2x256xf32>, vector<256x128xf32>, vector<2x128xf32> -> vector<2x128xf32>
    %48 = arith.addf %47, %13 : vector<2x128xf32>
    %49 = math.tanh %48 : vector<2x128xf32>
    %50 = tpu.concatenate %25, %49 in 1 : vector<2x128xf32>, vector<2x128xf32> -> vector<2x256xf32>
    %c3_45 = arith.constant 3 : index
    %c0_46 = arith.constant 0 : index
    %c0_47 = arith.constant 0 : index
    %51 = vector.load %arg5[%c3_45, %c0_46, %c0_47] : memref<4x256x128xf32, #tpu.memory_space<vmem>>, vector<1x256x128xf32>
    %52 = vector.shape_cast %51 : vector<1x256x128xf32> to vector<256x128xf32>
    %cst_48 = arith.constant dense<0.000000e+00> : vector<2x128xf32>
    %53 = tpu.matmul %50, %52, %cst_48 {dimension_numbers = #tpu.dot_dimension_numbers<[1], [0], [0], [1], [0, 0, 1, 1], [], []>} : vector<2x256xf32>, vector<256x128xf32>, vector<2x128xf32> -> vector<2x128xf32>
    %54 = arith.addf %53, %15 : vector<2x128xf32>
    %55 = math.tanh %54 : vector<2x128xf32>
    %56 = vector.extract_strided_slice %5 {offsets = [2, 0], sizes = [2, 128], strides = [1, 1]} : vector<16x128xf32> to vector<2x128xf32>
    %c0_49 = arith.constant 0 : index
    %c0_50 = arith.constant 0 : index
    %57 = vector.load %arg4[%c0_49, %c0_50] : memref<128x128xf32, #tpu.memory_space<vmem>>, vector<128x128xf32>
    %cst_51 = arith.constant dense<0.000000e+00> : vector<2x128xf32>
    %58 = tpu.matmul %31, %57, %cst_51 {dimension_numbers = #tpu.dot_dimension_numbers<[1], [0], [0], [1], [0, 0, 1, 1], [], []>} : vector<2x128xf32>, vector<128x128xf32>, vector<2x128xf32> -> vector<2x128xf32>
    %59 = arith.addf %56, %58 : vector<2x128xf32>
    %60 = arith.addf %59, %7 : vector<2x128xf32>
    %61 = math.tanh %60 : vector<2x128xf32>
    %62 = tpu.concatenate %37, %61 in 1 : vector<2x128xf32>, vector<2x128xf32> -> vector<2x256xf32>
    %c0_52 = arith.constant 0 : index
    %c0_53 = arith.constant 0 : index
    %c0_54 = arith.constant 0 : index
    %63 = vector.load %arg5[%c0_52, %c0_53, %c0_54] : memref<4x256x128xf32, #tpu.memory_space<vmem>>, vector<1x256x128xf32>
    %64 = vector.shape_cast %63 : vector<1x256x128xf32> to vector<256x128xf32>
    %cst_55 = arith.constant dense<0.000000e+00> : vector<2x128xf32>
    %65 = tpu.matmul %62, %64, %cst_55 {dimension_numbers = #tpu.dot_dimension_numbers<[1], [0], [0], [1], [0, 0, 1, 1], [], []>} : vector<2x256xf32>, vector<256x128xf32>, vector<2x128xf32> -> vector<2x128xf32>
    %66 = arith.addf %65, %9 : vector<2x128xf32>
    %67 = math.tanh %66 : vector<2x128xf32>
    %68 = tpu.concatenate %43, %67 in 1 : vector<2x128xf32>, vector<2x128xf32> -> vector<2x256xf32>
    %c1_56 = arith.constant 1 : index
    %c0_57 = arith.constant 0 : index
    %c0_58 = arith.constant 0 : index
    %69 = vector.load %arg5[%c1_56, %c0_57, %c0_58] : memref<4x256x128xf32, #tpu.memory_space<vmem>>, vector<1x256x128xf32>
    %70 = vector.shape_cast %69 : vector<1x256x128xf32> to vector<256x128xf32>
    %cst_59 = arith.constant dense<0.000000e+00> : vector<2x128xf32>
    %71 = tpu.matmul %68, %70, %cst_59 {dimension_numbers = #tpu.dot_dimension_numbers<[1], [0], [0], [1], [0, 0, 1, 1], [], []>} : vector<2x256xf32>, vector<256x128xf32>, vector<2x128xf32> -> vector<2x128xf32>
    %72 = arith.addf %71, %11 : vector<2x128xf32>
    %73 = math.tanh %72 : vector<2x128xf32>
    %74 = tpu.concatenate %49, %73 in 1 : vector<2x128xf32>, vector<2x128xf32> -> vector<2x256xf32>
    %c2_60 = arith.constant 2 : index
    %c0_61 = arith.constant 0 : index
    %c0_62 = arith.constant 0 : index
    %75 = vector.load %arg5[%c2_60, %c0_61, %c0_62] : memref<4x256x128xf32, #tpu.memory_space<vmem>>, vector<1x256x128xf32>
    %76 = vector.shape_cast %75 : vector<1x256x128xf32> to vector<256x128xf32>
    %cst_63 = arith.constant dense<0.000000e+00> : vector<2x128xf32>
    %77 = tpu.matmul %74, %76, %cst_63 {dimension_numbers = #tpu.dot_dimension_numbers<[1], [0], [0], [1], [0, 0, 1, 1], [], []>} : vector<2x256xf32>, vector<256x128xf32>, vector<2x128xf32> -> vector<2x128xf32>
    %78 = arith.addf %77, %13 : vector<2x128xf32>
    %79 = math.tanh %78 : vector<2x128xf32>
    %80 = tpu.concatenate %55, %79 in 1 : vector<2x128xf32>, vector<2x128xf32> -> vector<2x256xf32>
    %c3_64 = arith.constant 3 : index
    %c0_65 = arith.constant 0 : index
    %c0_66 = arith.constant 0 : index
    %81 = vector.load %arg5[%c3_64, %c0_65, %c0_66] : memref<4x256x128xf32, #tpu.memory_space<vmem>>, vector<1x256x128xf32>
    %82 = vector.shape_cast %81 : vector<1x256x128xf32> to vector<256x128xf32>
    %cst_67 = arith.constant dense<0.000000e+00> : vector<2x128xf32>
    %83 = tpu.matmul %80, %82, %cst_67 {dimension_numbers = #tpu.dot_dimension_numbers<[1], [0], [0], [1], [0, 0, 1, 1], [], []>} : vector<2x256xf32>, vector<256x128xf32>, vector<2x128xf32> -> vector<2x128xf32>
    %84 = arith.addf %83, %15 : vector<2x128xf32>
    %85 = math.tanh %84 : vector<2x128xf32>
    %86 = vector.extract_strided_slice %5 {offsets = [4, 0], sizes = [2, 128], strides = [1, 1]} : vector<16x128xf32> to vector<2x128xf32>
    %c0_68 = arith.constant 0 : index
    %c0_69 = arith.constant 0 : index
    %87 = vector.load %arg4[%c0_68, %c0_69] : memref<128x128xf32, #tpu.memory_space<vmem>>, vector<128x128xf32>
    %cst_70 = arith.constant dense<0.000000e+00> : vector<2x128xf32>
    %88 = tpu.matmul %61, %87, %cst_70 {dimension_numbers = #tpu.dot_dimension_numbers<[1], [0], [0], [1], [0, 0, 1, 1], [], []>} : vector<2x128xf32>, vector<128x128xf32>, vector<2x128xf32> -> vector<2x128xf32>
    %89 = arith.addf %86, %88 : vector<2x128xf32>
    %90 = arith.addf %89, %7 : vector<2x128xf32>
    %91 = math.tanh %90 : vector<2x128xf32>
    %92 = tpu.concatenate %67, %91 in 1 : vector<2x128xf32>, vector<2x128xf32> -> vector<2x256xf32>
    %c0_71 = arith.constant 0 : index
    %c0_72 = arith.constant 0 : index
    %c0_73 = arith.constant 0 : index
    %93 = vector.load %arg5[%c0_71, %c0_72, %c0_73] : memref<4x256x128xf32, #tpu.memory_space<vmem>>, vector<1x256x128xf32>
    %94 = vector.shape_cast %93 : vector<1x256x128xf32> to vector<256x128xf32>
    %cst_74 = arith.constant dense<0.000000e+00> : vector<2x128xf32>
    %95 = tpu.matmul %92, %94, %cst_74 {dimension_numbers = #tpu.dot_dimension_numbers<[1], [0], [0], [1], [0, 0, 1, 1], [], []>} : vector<2x256xf32>, vector<256x128xf32>, vector<2x128xf32> -> vector<2x128xf32>
    %96 = arith.addf %95, %9 : vector<2x128xf32>
    %97 = math.tanh %96 : vector<2x128xf32>
    %98 = tpu.concatenate %73, %97 in 1 : vector<2x128xf32>, vector<2x128xf32> -> vector<2x256xf32>
    %c1_75 = arith.constant 1 : index
    %c0_76 = arith.constant 0 : index
    %c0_77 = arith.constant 0 : index
    %99 = vector.load %arg5[%c1_75, %c0_76, %c0_77] : memref<4x256x128xf32, #tpu.memory_space<vmem>>, vector<1x256x128xf32>
    %100 = vector.shape_cast %99 : vector<1x256x128xf32> to vector<256x128xf32>
    %cst_78 = arith.constant dense<0.000000e+00> : vector<2x128xf32>
    %101 = tpu.matmul %98, %100, %cst_78 {dimension_numbers = #tpu.dot_dimension_numbers<[1], [0], [0], [1], [0, 0, 1, 1], [], []>} : vector<2x256xf32>, vector<256x128xf32>, vector<2x128xf32> -> vector<2x128xf32>
    %102 = arith.addf %101, %11 : vector<2x128xf32>
    %103 = math.tanh %102 : vector<2x128xf32>
    %104 = tpu.concatenate %79, %103 in 1 : vector<2x128xf32>, vector<2x128xf32> -> vector<2x256xf32>
    %c2_79 = arith.constant 2 : index
    %c0_80 = arith.constant 0 : index
    %c0_81 = arith.constant 0 : index
    %105 = vector.load %arg5[%c2_79, %c0_80, %c0_81] : memref<4x256x128xf32, #tpu.memory_space<vmem>>, vector<1x256x128xf32>
    %106 = vector.shape_cast %105 : vector<1x256x128xf32> to vector<256x128xf32>
    %cst_82 = arith.constant dense<0.000000e+00> : vector<2x128xf32>
    %107 = tpu.matmul %104, %106, %cst_82 {dimension_numbers = #tpu.dot_dimension_numbers<[1], [0], [0], [1], [0, 0, 1, 1], [], []>} : vector<2x256xf32>, vector<256x128xf32>, vector<2x128xf32> -> vector<2x128xf32>
    %108 = arith.addf %107, %13 : vector<2x128xf32>
    %109 = math.tanh %108 : vector<2x128xf32>
    %110 = tpu.concatenate %85, %109 in 1 : vector<2x128xf32>, vector<2x128xf32> -> vector<2x256xf32>
    %c3_83 = arith.constant 3 : index
    %c0_84 = arith.constant 0 : index
    %c0_85 = arith.constant 0 : index
    %111 = vector.load %arg5[%c3_83, %c0_84, %c0_85] : memref<4x256x128xf32, #tpu.memory_space<vmem>>, vector<1x256x128xf32>
    %112 = vector.shape_cast %111 : vector<1x256x128xf32> to vector<256x128xf32>
    %cst_86 = arith.constant dense<0.000000e+00> : vector<2x128xf32>
    %113 = tpu.matmul %110, %112, %cst_86 {dimension_numbers = #tpu.dot_dimension_numbers<[1], [0], [0], [1], [0, 0, 1, 1], [], []>} : vector<2x256xf32>, vector<256x128xf32>, vector<2x128xf32> -> vector<2x128xf32>
    %114 = arith.addf %113, %15 : vector<2x128xf32>
    %115 = math.tanh %114 : vector<2x128xf32>
    %116 = vector.extract_strided_slice %5 {offsets = [6, 0], sizes = [2, 128], strides = [1, 1]} : vector<16x128xf32> to vector<2x128xf32>
    %c0_87 = arith.constant 0 : index
    %c0_88 = arith.constant 0 : index
    %117 = vector.load %arg4[%c0_87, %c0_88] : memref<128x128xf32, #tpu.memory_space<vmem>>, vector<128x128xf32>
    %cst_89 = arith.constant dense<0.000000e+00> : vector<2x128xf32>
    %118 = tpu.matmul %91, %117, %cst_89 {dimension_numbers = #tpu.dot_dimension_numbers<[1], [0], [0], [1], [0, 0, 1, 1], [], []>} : vector<2x128xf32>, vector<128x128xf32>, vector<2x128xf32> -> vector<2x128xf32>
    %119 = arith.addf %116, %118 : vector<2x128xf32>
    %120 = arith.addf %119, %7 : vector<2x128xf32>
    %121 = math.tanh %120 : vector<2x128xf32>
    %122 = tpu.concatenate %97, %121 in 1 : vector<2x128xf32>, vector<2x128xf32> -> vector<2x256xf32>
    %c0_90 = arith.constant 0 : index
    %c0_91 = arith.constant 0 : index
    %c0_92 = arith.constant 0 : index
    %123 = vector.load %arg5[%c0_90, %c0_91, %c0_92] : memref<4x256x128xf32, #tpu.memory_space<vmem>>, vector<1x256x128xf32>
    %124 = vector.shape_cast %123 : vector<1x256x128xf32> to vector<256x128xf32>
    %cst_93 = arith.constant dense<0.000000e+00> : vector<2x128xf32>
    %125 = tpu.matmul %122, %124, %cst_93 {dimension_numbers = #tpu.dot_dimension_numbers<[1], [0], [0], [1], [0, 0, 1, 1], [], []>} : vector<2x256xf32>, vector<256x128xf32>, vector<2x128xf32> -> vector<2x128xf32>
    %126 = arith.addf %125, %9 : vector<2x128xf32>
    %127 = math.tanh %126 : vector<2x128xf32>
    %128 = tpu.concatenate %103, %127 in 1 : vector<2x128xf32>, vector<2x128xf32> -> vector<2x256xf32>
    %c1_94 = arith.constant 1 : index
    %c0_95 = arith.constant 0 : index
    %c0_96 = arith.constant 0 : index
    %129 = vector.load %arg5[%c1_94, %c0_95, %c0_96] : memref<4x256x128xf32, #tpu.memory_space<vmem>>, vector<1x256x128xf32>
    %130 = vector.shape_cast %129 : vector<1x256x128xf32> to vector<256x128xf32>
    %cst_97 = arith.constant dense<0.000000e+00> : vector<2x128xf32>
    %131 = tpu.matmul %128, %130, %cst_97 {dimension_numbers = #tpu.dot_dimension_numbers<[1], [0], [0], [1], [0, 0, 1, 1], [], []>} : vector<2x256xf32>, vector<256x128xf32>, vector<2x128xf32> -> vector<2x128xf32>
    %132 = arith.addf %131, %11 : vector<2x128xf32>
    %133 = math.tanh %132 : vector<2x128xf32>
    %134 = tpu.concatenate %109, %133 in 1 : vector<2x128xf32>, vector<2x128xf32> -> vector<2x256xf32>
    %c2_98 = arith.constant 2 : index
    %c0_99 = arith.constant 0 : index
    %c0_100 = arith.constant 0 : index
    %135 = vector.load %arg5[%c2_98, %c0_99, %c0_100] : memref<4x256x128xf32, #tpu.memory_space<vmem>>, vector<1x256x128xf32>
    %136 = vector.shape_cast %135 : vector<1x256x128xf32> to vector<256x128xf32>
    %cst_101 = arith.constant dense<0.000000e+00> : vector<2x128xf32>
    %137 = tpu.matmul %134, %136, %cst_101 {dimension_numbers = #tpu.dot_dimension_numbers<[1], [0], [0], [1], [0, 0, 1, 1], [], []>} : vector<2x256xf32>, vector<256x128xf32>, vector<2x128xf32> -> vector<2x128xf32>
    %138 = arith.addf %137, %13 : vector<2x128xf32>
    %139 = math.tanh %138 : vector<2x128xf32>
    %140 = tpu.concatenate %115, %139 in 1 : vector<2x128xf32>, vector<2x128xf32> -> vector<2x256xf32>
    %c3_102 = arith.constant 3 : index
    %c0_103 = arith.constant 0 : index
    %c0_104 = arith.constant 0 : index
    %141 = vector.load %arg5[%c3_102, %c0_103, %c0_104] : memref<4x256x128xf32, #tpu.memory_space<vmem>>, vector<1x256x128xf32>
    %142 = vector.shape_cast %141 : vector<1x256x128xf32> to vector<256x128xf32>
    %cst_105 = arith.constant dense<0.000000e+00> : vector<2x128xf32>
    %143 = tpu.matmul %140, %142, %cst_105 {dimension_numbers = #tpu.dot_dimension_numbers<[1], [0], [0], [1], [0, 0, 1, 1], [], []>} : vector<2x256xf32>, vector<256x128xf32>, vector<2x128xf32> -> vector<2x128xf32>
    %144 = arith.addf %143, %15 : vector<2x128xf32>
    %145 = math.tanh %144 : vector<2x128xf32>
    %146 = vector.extract_strided_slice %5 {offsets = [8, 0], sizes = [2, 128], strides = [1, 1]} : vector<16x128xf32> to vector<2x128xf32>
    %c0_106 = arith.constant 0 : index
    %c0_107 = arith.constant 0 : index
    %147 = vector.load %arg4[%c0_106, %c0_107] : memref<128x128xf32, #tpu.memory_space<vmem>>, vector<128x128xf32>
    %cst_108 = arith.constant dense<0.000000e+00> : vector<2x128xf32>
    %148 = tpu.matmul %121, %147, %cst_108 {dimension_numbers = #tpu.dot_dimension_numbers<[1], [0], [0], [1], [0, 0, 1, 1], [], []>} : vector<2x128xf32>, vector<128x128xf32>, vector<2x128xf32> -> vector<2x128xf32>
    %149 = arith.addf %146, %148 : vector<2x128xf32>
    %150 = arith.addf %149, %7 : vector<2x128xf32>
    %151 = math.tanh %150 : vector<2x128xf32>
    %152 = tpu.concatenate %127, %151 in 1 : vector<2x128xf32>, vector<2x128xf32> -> vector<2x256xf32>
    %c0_109 = arith.constant 0 : index
    %c0_110 = arith.constant 0 : index
    %c0_111 = arith.constant 0 : index
    %153 = vector.load %arg5[%c0_109, %c0_110, %c0_111] : memref<4x256x128xf32, #tpu.memory_space<vmem>>, vector<1x256x128xf32>
    %154 = vector.shape_cast %153 : vector<1x256x128xf32> to vector<256x128xf32>
    %cst_112 = arith.constant dense<0.000000e+00> : vector<2x128xf32>
    %155 = tpu.matmul %152, %154, %cst_112 {dimension_numbers = #tpu.dot_dimension_numbers<[1], [0], [0], [1], [0, 0, 1, 1], [], []>} : vector<2x256xf32>, vector<256x128xf32>, vector<2x128xf32> -> vector<2x128xf32>
    %156 = arith.addf %155, %9 : vector<2x128xf32>
    %157 = math.tanh %156 : vector<2x128xf32>
    %158 = tpu.concatenate %133, %157 in 1 : vector<2x128xf32>, vector<2x128xf32> -> vector<2x256xf32>
    %c1_113 = arith.constant 1 : index
    %c0_114 = arith.constant 0 : index
    %c0_115 = arith.constant 0 : index
    %159 = vector.load %arg5[%c1_113, %c0_114, %c0_115] : memref<4x256x128xf32, #tpu.memory_space<vmem>>, vector<1x256x128xf32>
    %160 = vector.shape_cast %159 : vector<1x256x128xf32> to vector<256x128xf32>
    %cst_116 = arith.constant dense<0.000000e+00> : vector<2x128xf32>
    %161 = tpu.matmul %158, %160, %cst_116 {dimension_numbers = #tpu.dot_dimension_numbers<[1], [0], [0], [1], [0, 0, 1, 1], [], []>} : vector<2x256xf32>, vector<256x128xf32>, vector<2x128xf32> -> vector<2x128xf32>
    %162 = arith.addf %161, %11 : vector<2x128xf32>
    %163 = math.tanh %162 : vector<2x128xf32>
    %164 = tpu.concatenate %139, %163 in 1 : vector<2x128xf32>, vector<2x128xf32> -> vector<2x256xf32>
    %c2_117 = arith.constant 2 : index
    %c0_118 = arith.constant 0 : index
    %c0_119 = arith.constant 0 : index
    %165 = vector.load %arg5[%c2_117, %c0_118, %c0_119] : memref<4x256x128xf32, #tpu.memory_space<vmem>>, vector<1x256x128xf32>
    %166 = vector.shape_cast %165 : vector<1x256x128xf32> to vector<256x128xf32>
    %cst_120 = arith.constant dense<0.000000e+00> : vector<2x128xf32>
    %167 = tpu.matmul %164, %166, %cst_120 {dimension_numbers = #tpu.dot_dimension_numbers<[1], [0], [0], [1], [0, 0, 1, 1], [], []>} : vector<2x256xf32>, vector<256x128xf32>, vector<2x128xf32> -> vector<2x128xf32>
    %168 = arith.addf %167, %13 : vector<2x128xf32>
    %169 = math.tanh %168 : vector<2x128xf32>
    %170 = tpu.concatenate %145, %169 in 1 : vector<2x128xf32>, vector<2x128xf32> -> vector<2x256xf32>
    %c3_121 = arith.constant 3 : index
    %c0_122 = arith.constant 0 : index
    %c0_123 = arith.constant 0 : index
    %171 = vector.load %arg5[%c3_121, %c0_122, %c0_123] : memref<4x256x128xf32, #tpu.memory_space<vmem>>, vector<1x256x128xf32>
    %172 = vector.shape_cast %171 : vector<1x256x128xf32> to vector<256x128xf32>
    %cst_124 = arith.constant dense<0.000000e+00> : vector<2x128xf32>
    %173 = tpu.matmul %170, %172, %cst_124 {dimension_numbers = #tpu.dot_dimension_numbers<[1], [0], [0], [1], [0, 0, 1, 1], [], []>} : vector<2x256xf32>, vector<256x128xf32>, vector<2x128xf32> -> vector<2x128xf32>
    %174 = arith.addf %173, %15 : vector<2x128xf32>
    %175 = math.tanh %174 : vector<2x128xf32>
    %176 = vector.extract_strided_slice %5 {offsets = [10, 0], sizes = [2, 128], strides = [1, 1]} : vector<16x128xf32> to vector<2x128xf32>
    %c0_125 = arith.constant 0 : index
    %c0_126 = arith.constant 0 : index
    %177 = vector.load %arg4[%c0_125, %c0_126] : memref<128x128xf32, #tpu.memory_space<vmem>>, vector<128x128xf32>
    %cst_127 = arith.constant dense<0.000000e+00> : vector<2x128xf32>
    %178 = tpu.matmul %151, %177, %cst_127 {dimension_numbers = #tpu.dot_dimension_numbers<[1], [0], [0], [1], [0, 0, 1, 1], [], []>} : vector<2x128xf32>, vector<128x128xf32>, vector<2x128xf32> -> vector<2x128xf32>
    %179 = arith.addf %176, %178 : vector<2x128xf32>
    %180 = arith.addf %179, %7 : vector<2x128xf32>
    %181 = math.tanh %180 : vector<2x128xf32>
    %182 = tpu.concatenate %157, %181 in 1 : vector<2x128xf32>, vector<2x128xf32> -> vector<2x256xf32>
    %c0_128 = arith.constant 0 : index
    %c0_129 = arith.constant 0 : index
    %c0_130 = arith.constant 0 : index
    %183 = vector.load %arg5[%c0_128, %c0_129, %c0_130] : memref<4x256x128xf32, #tpu.memory_space<vmem>>, vector<1x256x128xf32>
    %184 = vector.shape_cast %183 : vector<1x256x128xf32> to vector<256x128xf32>
    %cst_131 = arith.constant dense<0.000000e+00> : vector<2x128xf32>
    %185 = tpu.matmul %182, %184, %cst_131 {dimension_numbers = #tpu.dot_dimension_numbers<[1], [0], [0], [1], [0, 0, 1, 1], [], []>} : vector<2x256xf32>, vector<256x128xf32>, vector<2x128xf32> -> vector<2x128xf32>
    %186 = arith.addf %185, %9 : vector<2x128xf32>
    %187 = math.tanh %186 : vector<2x128xf32>
    %188 = tpu.concatenate %163, %187 in 1 : vector<2x128xf32>, vector<2x128xf32> -> vector<2x256xf32>
    %c1_132 = arith.constant 1 : index
    %c0_133 = arith.constant 0 : index
    %c0_134 = arith.constant 0 : index
    %189 = vector.load %arg5[%c1_132, %c0_133, %c0_134] : memref<4x256x128xf32, #tpu.memory_space<vmem>>, vector<1x256x128xf32>
    %190 = vector.shape_cast %189 : vector<1x256x128xf32> to vector<256x128xf32>
    %cst_135 = arith.constant dense<0.000000e+00> : vector<2x128xf32>
    %191 = tpu.matmul %188, %190, %cst_135 {dimension_numbers = #tpu.dot_dimension_numbers<[1], [0], [0], [1], [0, 0, 1, 1], [], []>} : vector<2x256xf32>, vector<256x128xf32>, vector<2x128xf32> -> vector<2x128xf32>
    %192 = arith.addf %191, %11 : vector<2x128xf32>
    %193 = math.tanh %192 : vector<2x128xf32>
    %194 = tpu.concatenate %169, %193 in 1 : vector<2x128xf32>, vector<2x128xf32> -> vector<2x256xf32>
    %c2_136 = arith.constant 2 : index
    %c0_137 = arith.constant 0 : index
    %c0_138 = arith.constant 0 : index
    %195 = vector.load %arg5[%c2_136, %c0_137, %c0_138] : memref<4x256x128xf32, #tpu.memory_space<vmem>>, vector<1x256x128xf32>
    %196 = vector.shape_cast %195 : vector<1x256x128xf32> to vector<256x128xf32>
    %cst_139 = arith.constant dense<0.000000e+00> : vector<2x128xf32>
    %197 = tpu.matmul %194, %196, %cst_139 {dimension_numbers = #tpu.dot_dimension_numbers<[1], [0], [0], [1], [0, 0, 1, 1], [], []>} : vector<2x256xf32>, vector<256x128xf32>, vector<2x128xf32> -> vector<2x128xf32>
    %198 = arith.addf %197, %13 : vector<2x128xf32>
    %199 = math.tanh %198 : vector<2x128xf32>
    %200 = tpu.concatenate %175, %199 in 1 : vector<2x128xf32>, vector<2x128xf32> -> vector<2x256xf32>
    %c3_140 = arith.constant 3 : index
    %c0_141 = arith.constant 0 : index
    %c0_142 = arith.constant 0 : index
    %201 = vector.load %arg5[%c3_140, %c0_141, %c0_142] : memref<4x256x128xf32, #tpu.memory_space<vmem>>, vector<1x256x128xf32>
    %202 = vector.shape_cast %201 : vector<1x256x128xf32> to vector<256x128xf32>
    %cst_143 = arith.constant dense<0.000000e+00> : vector<2x128xf32>
    %203 = tpu.matmul %200, %202, %cst_143 {dimension_numbers = #tpu.dot_dimension_numbers<[1], [0], [0], [1], [0, 0, 1, 1], [], []>} : vector<2x256xf32>, vector<256x128xf32>, vector<2x128xf32> -> vector<2x128xf32>
    %204 = arith.addf %203, %15 : vector<2x128xf32>
    %205 = math.tanh %204 : vector<2x128xf32>
    %206 = vector.extract_strided_slice %5 {offsets = [12, 0], sizes = [2, 128], strides = [1, 1]} : vector<16x128xf32> to vector<2x128xf32>
    %c0_144 = arith.constant 0 : index
    %c0_145 = arith.constant 0 : index
    %207 = vector.load %arg4[%c0_144, %c0_145] : memref<128x128xf32, #tpu.memory_space<vmem>>, vector<128x128xf32>
    %cst_146 = arith.constant dense<0.000000e+00> : vector<2x128xf32>
    %208 = tpu.matmul %181, %207, %cst_146 {dimension_numbers = #tpu.dot_dimension_numbers<[1], [0], [0], [1], [0, 0, 1, 1], [], []>} : vector<2x128xf32>, vector<128x128xf32>, vector<2x128xf32> -> vector<2x128xf32>
    %209 = arith.addf %206, %208 : vector<2x128xf32>
    %210 = arith.addf %209, %7 : vector<2x128xf32>
    %211 = math.tanh %210 : vector<2x128xf32>
    %212 = tpu.concatenate %187, %211 in 1 : vector<2x128xf32>, vector<2x128xf32> -> vector<2x256xf32>
    %c0_147 = arith.constant 0 : index
    %c0_148 = arith.constant 0 : index
    %c0_149 = arith.constant 0 : index
    %213 = vector.load %arg5[%c0_147, %c0_148, %c0_149] : memref<4x256x128xf32, #tpu.memory_space<vmem>>, vector<1x256x128xf32>
    %214 = vector.shape_cast %213 : vector<1x256x128xf32> to vector<256x128xf32>
    %cst_150 = arith.constant dense<0.000000e+00> : vector<2x128xf32>
    %215 = tpu.matmul %212, %214, %cst_150 {dimension_numbers = #tpu.dot_dimension_numbers<[1], [0], [0], [1], [0, 0, 1, 1], [], []>} : vector<2x256xf32>, vector<256x128xf32>, vector<2x128xf32> -> vector<2x128xf32>
    %216 = arith.addf %215, %9 : vector<2x128xf32>
    %217 = math.tanh %216 : vector<2x128xf32>
    %218 = tpu.concatenate %193, %217 in 1 : vector<2x128xf32>, vector<2x128xf32> -> vector<2x256xf32>
    %c1_151 = arith.constant 1 : index
    %c0_152 = arith.constant 0 : index
    %c0_153 = arith.constant 0 : index
    %219 = vector.load %arg5[%c1_151, %c0_152, %c0_153] : memref<4x256x128xf32, #tpu.memory_space<vmem>>, vector<1x256x128xf32>
    %220 = vector.shape_cast %219 : vector<1x256x128xf32> to vector<256x128xf32>
    %cst_154 = arith.constant dense<0.000000e+00> : vector<2x128xf32>
    %221 = tpu.matmul %218, %220, %cst_154 {dimension_numbers = #tpu.dot_dimension_numbers<[1], [0], [0], [1], [0, 0, 1, 1], [], []>} : vector<2x256xf32>, vector<256x128xf32>, vector<2x128xf32> -> vector<2x128xf32>
    %222 = arith.addf %221, %11 : vector<2x128xf32>
    %223 = math.tanh %222 : vector<2x128xf32>
    %224 = tpu.concatenate %199, %223 in 1 : vector<2x128xf32>, vector<2x128xf32> -> vector<2x256xf32>
    %c2_155 = arith.constant 2 : index
    %c0_156 = arith.constant 0 : index
    %c0_157 = arith.constant 0 : index
    %225 = vector.load %arg5[%c2_155, %c0_156, %c0_157] : memref<4x256x128xf32, #tpu.memory_space<vmem>>, vector<1x256x128xf32>
    %226 = vector.shape_cast %225 : vector<1x256x128xf32> to vector<256x128xf32>
    %cst_158 = arith.constant dense<0.000000e+00> : vector<2x128xf32>
    %227 = tpu.matmul %224, %226, %cst_158 {dimension_numbers = #tpu.dot_dimension_numbers<[1], [0], [0], [1], [0, 0, 1, 1], [], []>} : vector<2x256xf32>, vector<256x128xf32>, vector<2x128xf32> -> vector<2x128xf32>
    %228 = arith.addf %227, %13 : vector<2x128xf32>
    %229 = math.tanh %228 : vector<2x128xf32>
    %230 = tpu.concatenate %205, %229 in 1 : vector<2x128xf32>, vector<2x128xf32> -> vector<2x256xf32>
    %c3_159 = arith.constant 3 : index
    %c0_160 = arith.constant 0 : index
    %c0_161 = arith.constant 0 : index
    %231 = vector.load %arg5[%c3_159, %c0_160, %c0_161] : memref<4x256x128xf32, #tpu.memory_space<vmem>>, vector<1x256x128xf32>
    %232 = vector.shape_cast %231 : vector<1x256x128xf32> to vector<256x128xf32>
    %cst_162 = arith.constant dense<0.000000e+00> : vector<2x128xf32>
    %233 = tpu.matmul %230, %232, %cst_162 {dimension_numbers = #tpu.dot_dimension_numbers<[1], [0], [0], [1], [0, 0, 1, 1], [], []>} : vector<2x256xf32>, vector<256x128xf32>, vector<2x128xf32> -> vector<2x128xf32>
    %234 = arith.addf %233, %15 : vector<2x128xf32>
    %235 = math.tanh %234 : vector<2x128xf32>
    %236 = vector.extract_strided_slice %5 {offsets = [14, 0], sizes = [2, 128], strides = [1, 1]} : vector<16x128xf32> to vector<2x128xf32>
    %c0_163 = arith.constant 0 : index
    %c0_164 = arith.constant 0 : index
    %237 = vector.load %arg4[%c0_163, %c0_164] : memref<128x128xf32, #tpu.memory_space<vmem>>, vector<128x128xf32>
    %cst_165 = arith.constant dense<0.000000e+00> : vector<2x128xf32>
    %238 = tpu.matmul %211, %237, %cst_165 {dimension_numbers = #tpu.dot_dimension_numbers<[1], [0], [0], [1], [0, 0, 1, 1], [], []>} : vector<2x128xf32>, vector<128x128xf32>, vector<2x128xf32> -> vector<2x128xf32>
    %239 = arith.addf %236, %238 : vector<2x128xf32>
    %240 = arith.addf %239, %7 : vector<2x128xf32>
    %241 = math.tanh %240 : vector<2x128xf32>
    %242 = tpu.concatenate %217, %241 in 1 : vector<2x128xf32>, vector<2x128xf32> -> vector<2x256xf32>
    %c0_166 = arith.constant 0 : index
    %c0_167 = arith.constant 0 : index
    %c0_168 = arith.constant 0 : index
    %243 = vector.load %arg5[%c0_166, %c0_167, %c0_168] : memref<4x256x128xf32, #tpu.memory_space<vmem>>, vector<1x256x128xf32>
    %244 = vector.shape_cast %243 : vector<1x256x128xf32> to vector<256x128xf32>
    %cst_169 = arith.constant dense<0.000000e+00> : vector<2x128xf32>
    %245 = tpu.matmul %242, %244, %cst_169 {dimension_numbers = #tpu.dot_dimension_numbers<[1], [0], [0], [1], [0, 0, 1, 1], [], []>} : vector<2x256xf32>, vector<256x128xf32>, vector<2x128xf32> -> vector<2x128xf32>
    %246 = arith.addf %245, %9 : vector<2x128xf32>
    %247 = math.tanh %246 : vector<2x128xf32>
    %248 = tpu.concatenate %223, %247 in 1 : vector<2x128xf32>, vector<2x128xf32> -> vector<2x256xf32>
    %c1_170 = arith.constant 1 : index
    %c0_171 = arith.constant 0 : index
    %c0_172 = arith.constant 0 : index
    %249 = vector.load %arg5[%c1_170, %c0_171, %c0_172] : memref<4x256x128xf32, #tpu.memory_space<vmem>>, vector<1x256x128xf32>
    %250 = vector.shape_cast %249 : vector<1x256x128xf32> to vector<256x128xf32>
    %cst_173 = arith.constant dense<0.000000e+00> : vector<2x128xf32>
    %251 = tpu.matmul %248, %250, %cst_173 {dimension_numbers = #tpu.dot_dimension_numbers<[1], [0], [0], [1], [0, 0, 1, 1], [], []>} : vector<2x256xf32>, vector<256x128xf32>, vector<2x128xf32> -> vector<2x128xf32>
    %252 = arith.addf %251, %11 : vector<2x128xf32>
    %253 = math.tanh %252 : vector<2x128xf32>
    %254 = tpu.concatenate %229, %253 in 1 : vector<2x128xf32>, vector<2x128xf32> -> vector<2x256xf32>
    %c2_174 = arith.constant 2 : index
    %c0_175 = arith.constant 0 : index
    %c0_176 = arith.constant 0 : index
    %255 = vector.load %arg5[%c2_174, %c0_175, %c0_176] : memref<4x256x128xf32, #tpu.memory_space<vmem>>, vector<1x256x128xf32>
    %256 = vector.shape_cast %255 : vector<1x256x128xf32> to vector<256x128xf32>
    %cst_177 = arith.constant dense<0.000000e+00> : vector<2x128xf32>
    %257 = tpu.matmul %254, %256, %cst_177 {dimension_numbers = #tpu.dot_dimension_numbers<[1], [0], [0], [1], [0, 0, 1, 1], [], []>} : vector<2x256xf32>, vector<256x128xf32>, vector<2x128xf32> -> vector<2x128xf32>
    %258 = arith.addf %257, %13 : vector<2x128xf32>
    %259 = math.tanh %258 : vector<2x128xf32>
    %260 = tpu.concatenate %235, %259 in 1 : vector<2x128xf32>, vector<2x128xf32> -> vector<2x256xf32>
    %c3_178 = arith.constant 3 : index
    %c0_179 = arith.constant 0 : index
    %c0_180 = arith.constant 0 : index
    %261 = vector.load %arg5[%c3_178, %c0_179, %c0_180] : memref<4x256x128xf32, #tpu.memory_space<vmem>>, vector<1x256x128xf32>
    %262 = vector.shape_cast %261 : vector<1x256x128xf32> to vector<256x128xf32>
    %cst_181 = arith.constant dense<0.000000e+00> : vector<2x128xf32>
    %263 = tpu.matmul %260, %262, %cst_181 {dimension_numbers = #tpu.dot_dimension_numbers<[1], [0], [0], [1], [0, 0, 1, 1], [], []>} : vector<2x256xf32>, vector<256x128xf32>, vector<2x128xf32> -> vector<2x128xf32>
    %264 = arith.addf %263, %15 : vector<2x128xf32>
    %265 = math.tanh %264 : vector<2x128xf32>
    %c0_182 = arith.constant 0 : index
    %c0_183 = arith.constant 0 : index
    %c0_184 = arith.constant 0 : index
    %266 = vector.load %arg11[%c0_182, %c0_183, %c0_184] : memref<5x2x128xf32, #tpu.memory_space<vmem>>, vector<1x2x128xf32>
    %267 = vector.shape_cast %266 : vector<1x2x128xf32> to vector<2x128xf32>
    %268 = vector.shape_cast %241 : vector<2x128xf32> to vector<1x2x128xf32>
    tpu.vector_store %arg11[%c0_182, %c0_183, %c0_184], %268 {strides = array<i32>} : memref<5x2x128xf32, #tpu.memory_space<vmem>>, vector<1x2x128xf32>,
    %c1_185 = arith.constant 1 : index
    %c0_186 = arith.constant 0 : index
    %c0_187 = arith.constant 0 : index
    %269 = vector.load %arg11[%c1_185, %c0_186, %c0_187] : memref<5x2x128xf32, #tpu.memory_space<vmem>>, vector<1x2x128xf32>
    %270 = vector.shape_cast %269 : vector<1x2x128xf32> to vector<2x128xf32>
    %271 = vector.shape_cast %247 : vector<2x128xf32> to vector<1x2x128xf32>
    tpu.vector_store %arg11[%c1_185, %c0_186, %c0_187], %271 {strides = array<i32>} : memref<5x2x128xf32, #tpu.memory_space<vmem>>, vector<1x2x128xf32>,
    %c2_188 = arith.constant 2 : index
    %c0_189 = arith.constant 0 : index
    %c0_190 = arith.constant 0 : index
    %272 = vector.load %arg11[%c2_188, %c0_189, %c0_190] : memref<5x2x128xf32, #tpu.memory_space<vmem>>, vector<1x2x128xf32>
    %273 = vector.shape_cast %272 : vector<1x2x128xf32> to vector<2x128xf32>
    %274 = vector.shape_cast %253 : vector<2x128xf32> to vector<1x2x128xf32>
    tpu.vector_store %arg11[%c2_188, %c0_189, %c0_190], %274 {strides = array<i32>} : memref<5x2x128xf32, #tpu.memory_space<vmem>>, vector<1x2x128xf32>,
    %c3_191 = arith.constant 3 : index
    %c0_192 = arith.constant 0 : index
    %c0_193 = arith.constant 0 : index
    %275 = vector.load %arg11[%c3_191, %c0_192, %c0_193] : memref<5x2x128xf32, #tpu.memory_space<vmem>>, vector<1x2x128xf32>
    %276 = vector.shape_cast %275 : vector<1x2x128xf32> to vector<2x128xf32>
    %277 = vector.shape_cast %259 : vector<2x128xf32> to vector<1x2x128xf32>
    tpu.vector_store %arg11[%c3_191, %c0_192, %c0_193], %277 {strides = array<i32>} : memref<5x2x128xf32, #tpu.memory_space<vmem>>, vector<1x2x128xf32>,
    %c4_194 = arith.constant 4 : index
    %c0_195 = arith.constant 0 : index
    %c0_196 = arith.constant 0 : index
    %278 = vector.load %arg11[%c4_194, %c0_195, %c0_196] : memref<5x2x128xf32, #tpu.memory_space<vmem>>, vector<1x2x128xf32>
    %279 = vector.shape_cast %278 : vector<1x2x128xf32> to vector<2x128xf32>
    %280 = vector.shape_cast %265 : vector<2x128xf32> to vector<1x2x128xf32>
    tpu.vector_store %arg11[%c4_194, %c0_195, %c0_196], %280 {strides = array<i32>} : memref<5x2x128xf32, #tpu.memory_space<vmem>>, vector<1x2x128xf32>,
    %281 = tpu.concatenate %55, %85, %115, %145, %175, %205, %235, %265 in 0 : vector<2x128xf32>, vector<2x128xf32>, vector<2x128xf32>, vector<2x128xf32>, vector<2x128xf32>, vector<2x128xf32>, vector<2x128xf32>, vector<2x128xf32> -> vector<16x128xf32>
    %c0_197 = arith.constant 0 : index
    %c0_198 = arith.constant 0 : index
    %282 = vector.load %arg7[%c0_197, %c0_198] : memref<128x2xf32, #tpu.memory_space<vmem>>, vector<128x2xf32>
    %cst_199 = arith.constant dense<0.000000e+00> : vector<16x2xf32>
    %283 = tpu.matmul %281, %282, %cst_199 {dimension_numbers = #tpu.dot_dimension_numbers<[1], [0], [0], [1], [0, 0, 1, 1], [], []>} : vector<16x128xf32>, vector<128x2xf32>, vector<16x2xf32> -> vector<16x2xf32>
    %c0_200 = arith.constant 0 : index
    %c0_201 = arith.constant 0 : index
    %284 = vector.load %arg8[%c0_200, %c0_201] : memref<1x2xf32, #tpu.memory_space<vmem>>, vector<1x2xf32>
    %285 = vector.broadcast %284 : vector<1x2xf32> to vector<16x2xf32>
    %286 = arith.addf %283, %285 : vector<16x2xf32>
    %287 = arith.negf %286 : vector<16x2xf32>
    %288 = math.exp %287 : vector<16x2xf32>
    %cst_202 = arith.constant 1.000000e+00 : f32
    %289 = vector.broadcast %cst_202 : f32 to vector<16x2xf32>
    %290 = arith.addf %289, %288 : vector<16x2xf32>
    %291 = arith.divf %289, %290 : vector<16x2xf32>
    %c0_203 = arith.constant 0 : index
    %c0_204 = arith.constant 0 : index
    %292 = vector.load %arg9[%c0_203, %c0_204] : memref<16x2xf32, #tpu.memory_space<vmem>>, vector<16x2xf32>
    tpu.vector_store %arg9[%c0_203, %c0_204], %291 {strides = array<i32>} : memref<16x2xf32, #tpu.memory_space<vmem>>, vector<16x2xf32>,
    %c1_i32 = arith.constant 1 : i32
    %293 = arith.cmpi eq, %arg0, %c1_i32 : i32
    %294 = arith.extui %293 : i1 to i32
    %c0_i32_205 = arith.constant 0 : i32
    %295 = arith.cmpi ne, %294, %c0_i32_205 : i32
    scf.if %295 {
      %c0_206 = arith.constant 0 : index
      %c0_207 = arith.constant 0 : index
      %c0_208 = arith.constant 0 : index
      %296 = vector.load %arg11[%c0_206, %c0_207, %c0_208] : memref<5x2x128xf32, #tpu.memory_space<vmem>>, vector<5x2x128xf32>
      %c0_209 = arith.constant 0 : index
      %c0_210 = arith.constant 0 : index
      %c0_211 = arith.constant 0 : index
      %297 = vector.load %arg10[%c0_209, %c0_210, %c0_211] : memref<5x2x128xf32, #tpu.memory_space<vmem>>, vector<5x2x128xf32>
      tpu.vector_store %arg10[%c0_209, %c0_210, %c0_211], %296 {strides = array<i32>} : memref<5x2x128xf32, #tpu.memory_space<vmem>>, vector<5x2x128xf32>,
    } else {
    }
    return
  }
  func.func @transform_0(%arg0: i32) -> (i32, i32) {
    %c0_i32 = arith.constant 0 : i32
    %c0_i32_0 = arith.constant 0 : i32
    return %arg0, %c0_i32 : i32, i32
  }
  func.func @transform_1(%arg0: i32) -> (i32, i32, i32) {
    %c0_i32 = arith.constant 0 : i32
    %c0_i32_0 = arith.constant 0 : i32
    %c0_i32_1 = arith.constant 0 : i32
    %c0_i32_2 = arith.constant 0 : i32
    return %c0_i32, %c0_i32_0, %c0_i32_1 : i32, i32, i32
  }
  func.func @transform_2(%arg0: i32) -> (i32, i32) {
    %c0_i32 = arith.constant 0 : i32
    %c0_i32_0 = arith.constant 0 : i32
    %c0_i32_1 = arith.constant 0 : i32
    return %c0_i32, %c0_i32_0 : i32, i32
  }
  func.func @transform_3(%arg0: i32) -> (i32, i32) {
    %c0_i32 = arith.constant 0 : i32
    %c0_i32_0 = arith.constant 0 : i32
    %c0_i32_1 = arith.constant 0 : i32
    return %c0_i32, %c0_i32_0 : i32, i32
  }
  func.func @transform_4(%arg0: i32) -> (i32, i32, i32) {
    %c0_i32 = arith.constant 0 : i32
    %c0_i32_0 = arith.constant 0 : i32
    %c0_i32_1 = arith.constant 0 : i32
    %c0_i32_2 = arith.constant 0 : i32
    return %c0_i32, %c0_i32_0, %c0_i32_1 : i32, i32, i32
  }
  func.func @transform_5(%arg0: i32) -> (i32, i32, i32) {
    %c0_i32 = arith.constant 0 : i32
    %c0_i32_0 = arith.constant 0 : i32
    %c0_i32_1 = arith.constant 0 : i32
    %c0_i32_2 = arith.constant 0 : i32
    return %c0_i32, %c0_i32_0, %c0_i32_1 : i32, i32, i32
  }
  func.func @transform_6(%arg0: i32) -> (i32, i32) {
    %c0_i32 = arith.constant 0 : i32
    %c0_i32_0 = arith.constant 0 : i32
    %c0_i32_1 = arith.constant 0 : i32
    return %c0_i32, %c0_i32_0 : i32, i32
  }
  func.func @transform_7(%arg0: i32) -> (i32, i32) {
    %c0_i32 = arith.constant 0 : i32
    %c0_i32_0 = arith.constant 0 : i32
    %c0_i32_1 = arith.constant 0 : i32
    return %c0_i32, %c0_i32_0 : i32, i32
  }
  func.func @transform_8(%arg0: i32) -> (i32, i32) {
    %c0_i32 = arith.constant 0 : i32
    %c0_i32_0 = arith.constant 0 : i32
    return %arg0, %c0_i32 : i32, i32
  }
  func.func @transform_9(%arg0: i32) -> (i32, i32, i32) {
    %c0_i32 = arith.constant 0 : i32
    %c0_i32_0 = arith.constant 0 : i32
    %c0_i32_1 = arith.constant 0 : i32
    %c0_i32_2 = arith.constant 0 : i32
    return %c0_i32, %c0_i32_0, %c0_i32_1 : i32, i32, i32
  }
}

</mosaic_0001>

<bundles_post_ra>
// kernel: rnn_only_forward.1
= control target key start
LH: loop header
LB: loop body
LE: loop exit
PB: predicated region body
PF: predicated region fallthrough
CT: control target
= control target key end

     0   :  { %15 = vsyncpa [#allocation4], 0  ;;  %s6931_s30 = smov 0   ;;  %s8570_s0 = inlined_call_operand.vmem [shape: f32[32,32], index: 0, kind: input, shape index: {}]   ;;  %s8571_s1 = inlined_call_operand.vmem [shape: f32[5,2,128], index: 1, kind: input, shape index: {}]   ;;  %s8572_s2 = inlined_call_operand.vmem [shape: f32[32,128], index: 2, kind: input, shape index: {}]   ;;  %s8573_s3 = inlined_call_operand.vmem [shape: f32[128,128], index: 3, kind: input, shape index: {}]   ;;  %s8574_s4 = inlined_call_operand.vmem [shape: f32[4,256,128], index: 4, kind: input, shape index: {}]   ;;  %s8575_s5 = inlined_call_operand.vmem [shape: f32[5,2,128], index: 5, kind: input, shape index: {}]   ;;  %s8576_s6 = inlined_call_operand.vmem [shape: f32[128,2], index: 6, kind: input, shape index: {}]   ;;  %s8577_s7 = inlined_call_operand.vmem [shape: f32[1,2], index: 7, kind: input, shape index: {}]   ;;  %s8578_s8 = inlined_call_operand.vmem [shape: f32[32,2], index: 8, kind: output, shape index: {0}]   ;;  %s8579_s9 = inlined_call_operand.hbm [shape: f32[5,2,128], index: 9, kind: output, shape index: {1}]  }
   0x1 LB: > { %s6937_s10 = sadd.s32 4294967295, %s6873_s30   ;;  %p3746_p0 = scmp.ge.s32.totalorder %s6873_s30, 1  ;;  %s6873_s30 = sphi %s6931_s30, %s21_s30  }
   0x2   : > { %p287_p1 = scmp.lt.s32.totalorder %s6873_s30, 3 }
   0x4   : > { %p288_p2 = pnand %p3746_p0, %p287_p1 }
   0x6   : > { %291 = sbr.rel (%p288_p2) target bundleno = 6522 (0x197a), region = 52 }
   0xd   : > { %s3747_s11 = sshll.u32 %s6937_s10, 1  ;;  %p3751_p4 = scmp.ne.s32.totalorder %s6937_s10, 0 }
   0xe   : > { %p324_p3 = scmp.lt.s32.totalorder %s3747_s11, 3  ;;  %v339_v0 = vld [vmem:[%s8571_s1] sm:$0xff] (!%p3751_p4)   ;;  %v343_v1 = vld [vmem:[%s8571_s1 + $0x8] sm:$0x3] (!%p3751_p4) }
   0xf   : > { %338 = sbr.rel (%p3751_p4) target bundleno = 22 (0x16), region = 56  ;;  %344 = vst [vmem:[#allocation2] sm:$0xff] (!%p3751_p4), %v339_v0   ;;  %348 = vst [vmem:[#allocation2 + $0x8] sm:$0x3] (!%p3751_p4), %v343_v1 }
  0x10   : > { %s8949_s11 = smov (!%p324_p3, %s3747_s11), 3 }
  0x11   : > { %s3748_s12 = sshll.u32 %s8949_s11, 3 }
  0x12   : > { %s6945_s15 = scalar_lea.vmem %s8570_s0, %s3748_s12  ;;  %s6950_s18 = scalar_lea.vmem %s8578_s8, %s3748_s12 }
  0x16 PF: > { %v455_v2 = vld [vmem:[%s8573_s3] sm:$0xff]  ;;  %v456_v3 = vld [vmem:[%s8573_s3 + $0x8] sm:$0xff]  ;;  %v457_v4 = vld [vmem:[%s8573_s3 + $0x10] sm:$0xff]  ;;  %v8582_v5 = vmov 0.0|0.0   ;;  %vm6876_vm0 = vmmov 0   ;;  %v8580_v8 = vmov 0.0  }
  0x17   : > { %5476 = vmatprep.subr.bf16.mxu1 %v8582_v5  ;;  %v6969_v6 = vpack.c.bf16 %v456_v3, %v455_v2  ;;  %v458_v7 = vld [vmem:[%s8573_s3 + $0x18] sm:$0xff]  ;;  %5185 = vmatprep.mubr.msk.f32.mxu1 %vm6876_vm0, %v8580_v8  ;;  %v459_v10 = vld [vmem:[%s8573_s3 + $0x20] sm:$0xff]  ;;  %v460_v11 = vld [vmem:[%s8573_s3 + $0x28] sm:$0xff]  ;;  %vm355_vm1 = vcmask 261120   ;;  %vm3524_vm2 = vcmask 1041408   ;;  %vm3526_vm3 = vcmask 1043456  }
  0x18   : > { %v6977_v9 = vpack.c.bf16 %v458_v7, %v457_v4  ;;  %v351_v12 = vld [vmem:[%s8572_s2] sm:$0xff]  ;;  %v352_v13 = vld [vmem:[%s8572_s2 + $0x8] sm:$0xff]  ;;  %v353_v15 = vld [vmem:[%s8572_s2 + $0x10] sm:$0xff]  ;;  %v7000_v19 = vpack.c.bf16 %v460_v11, %v459_v10  ;;  %vm3528_vm4 = vcmask 1045504   ;;  %vm3643_vm5 = vcmask 15360   ;;  %p3857_p5 = scmp.ne.s32.totalorder %s6937_s10, 1 }
  0x19   : > { %5478 = vmatpush3.bf16.msra.mxu1 %v6969_v6  ;;  %v5468_v14 = vpack.c.bf16 %v352_v13, %v351_v12  ;;  %v354_v16 = vld [vmem:[%s8572_s2 + $0x18] sm:$0xff]  ;;  %v349_v18 = vld [vmem:[%s6945_s15] sm:$0xff]  ;;  %v461_v21 = vld [vmem:[%s8573_s3 + $0x30] sm:$0xff] }
  0x1a   : > { %5479 = vmatprep.subr.bf16.mxu1 %v8582_v5  ;;  %v5472_v17 = vpack.c.bf16 %v354_v16, %v353_v15  ;;  %v560_v20 = vld [vmem:[%s8574_s4 + $0x80] sm:$0xff]  ;;  %v462_v22 = vld [vmem:[%s8573_s3 + $0x38] sm:$0xff]  ;;  %v561_v23 = vld [vmem:[%s8574_s4 + $0x88] sm:$0xff]  ;;  %5150 = vmatprep.mubr.msk.f32.mxu0 %vm355_vm1, %v349_v18 }
  0x1b   : > { %5469 = vmatprep.subr.bf16.mxu0 %v5468_v14  ;;  %v7016_v24 = vpack.c.bf16 %v561_v23, %v560_v20  ;;  %v544_v25 = vld [vmem:[%s8574_s4] sm:$0xff]  ;;  %v545_v26 = vld [vmem:[%s8574_s4 + $0x8] sm:$0xff]  ;;  %v562_v27 = vld [vmem:[%s8574_s4 + $0x90] sm:$0xff]  ;;  %v7031_v29 = vpack.c.bf16 %v462_v22, %v461_v21 }
  0x1c   : > { %5471 = vmatpush3.bf16.msra.mxu0 %v5468_v14  ;;  %v563_v28 = vld [vmem:[%s8574_s4 + $0x98] sm:$0xff]  ;;  %v463_v30 = vld [vmem:[%s8573_s3 + $0x40] sm:$0xff]  ;;  %v464_v31 = vld [vmem:[%s8573_s3 + $0x48] sm:$0xff]  ;;  %v7041_v33 = vpack.c.bf16 %v545_v26, %v544_v25 }
  0x1d   : > { %5481 = vmatpush3.bf16.msra.mxu1 %v6977_v9  ;;  %5473 = vmatprep.subr.bf16.mxu0 %v5472_v17  ;;  %v350_v32 = vld [vmem:[%s6945_s15 + $0x8] sm:$0xff]  ;;  %v7044_v34 = vpack.c.bf16 %v563_v28, %v562_v27  ;;  %v546_v35 = vld [vmem:[%s8574_s4 + $0x10] sm:$0xff]  ;;  %v547_v36 = vld [vmem:[%s8574_s4 + $0x18] sm:$0xff]  ;;  %v7059_v39 = vpack.c.bf16 %v464_v31, %v463_v30 }
  0x1e   : > { %5482 = vmatprep.subr.bf16.mxu1 %v8582_v5  ;;  %8708 = vst [vmem:[#allocation6_spill] sm:$0xff] %v7041_v33  ;;  %v564_v37 = vld [vmem:[%s8574_s4 + $0xa0] sm:$0xff]  ;;  %v565_v38 = vld [vmem:[%s8574_s4 + $0xa8] sm:$0xff]  ;;  %v465_v40 = vld [vmem:[%s8573_s3 + $0x50] sm:$0xff]  ;;  %v7070_v42 = vpack.c.bf16 %v547_v36, %v546_v35 }
  0x1f   : > { %8709 = vst [vmem:[#allocation7_spill] sm:$0xff] %v7044_v34  ;;  %v466_v41 = vld [vmem:[%s8573_s3 + $0x58] sm:$0xff]  ;;  %v7073_v43 = vpack.c.bf16 %v565_v38, %v564_v37  ;;  %v548_v44 = vld [vmem:[%s8574_s4 + $0x20] sm:$0xff]  ;;  %v549_v45 = vld [vmem:[%s8574_s4 + $0x28] sm:$0xff] }
  0x20   : > { %5475 = vmatpush3.bf16.msra.mxu0 %v5472_v17  ;;  %8710 = vst [vmem:[#allocation8_spill] sm:$0xff] %v7070_v42  ;;  %v566_v46 = vld [vmem:[%s8574_s4 + $0xb0] sm:$0xff]  ;;  %v567_v47 = vld [vmem:[%s8574_s4 + $0xb8] sm:$0xff]  ;;  %v7088_v48 = vpack.c.bf16 %v466_v41, %v465_v40  ;;  %v467_v49 = vld [vmem:[%s8573_s3 + $0x60] sm:$0xff]  ;;  %v7098_v51 = vpack.c.bf16 %v549_v45, %v548_v44 }
  0x21   : > { %5484 = vmatpush3.bf16.msra.mxu1 %v7000_v19  ;;  %5501 = vmatprep.subr.bf16.mxu0 %v7016_v24  ;;  %8711 = vst [vmem:[#allocation9_spill] sm:$0xff] %v7073_v43  ;;  %v468_v50 = vld [vmem:[%s8573_s3 + $0x68] sm:$0xff]  ;;  %v7101_v52 = vpack.c.bf16 %v567_v47, %v566_v46  ;;  %v469_v54 = vld [vmem:[%s8573_s3 + $0x70] sm:$0xff]  ;;  %v470_v55 = vld [vmem:[%s8573_s3 + $0x78] sm:$0xff] }
  0x22   : > { %5485 = vmatprep.subr.bf16.mxu1 %v8582_v5  ;;  %8712 = vst [vmem:[#allocation10_spill] sm:$0xff] %v7098_v51  ;;  %v7104_v53 = vpack.c.bf16 %v468_v50, %v467_v49  ;;  %v7116_v56 = vpack.c.bf16 %v470_v55, %v469_v54  ;;  %v446_v57 = vld [vmem:[#allocation2] sm:$0x3]  ;;  %v550_v58 = vld [vmem:[%s8574_s4 + $0x30] sm:$0xff]  ;;  %v551_v59 = vld [vmem:[%s8574_s4 + $0x38] sm:$0xff] }
  0x23   : > { %5151 = vmatmul.mubr.msk.f32.vlgmr.msra.gmra.mrb[0].mxu0 %vm355_vm1, %v350_v32  ;;  %8713 = vst [vmem:[#allocation11_spill] sm:$0xff] %v7101_v52  ;;  %v7126_v60 = vpack.c.bf16 %v551_v59, %v550_v58  ;;  %v568_v61 = vld [vmem:[%s8574_s4 + $0xc0] sm:$0xff]  ;;  %v569_v62 = vld [vmem:[%s8574_s4 + $0xc8] sm:$0xff]  ;;  %v570_v3 = vld [vmem:[%s8574_s4 + $0xd0] sm:$0xff] }
  0x24   : > { %5503 = vmatpush3.bf16.msra.mxu0 %v7041_v33  ;;  %v7135_v63 = vpack.c.bf16 %v569_v62, %v568_v61  ;;  %v552_v0 = vld [vmem:[%s8574_s4 + $0x40] sm:$0xff]  ;;  %v553_v1 = vld [vmem:[%s8574_s4 + $0x48] sm:$0xff]  ;;  %v571_v4 = vld [vmem:[%s8574_s4 + $0xd8] sm:$0xff] }
  0x25   : > { %5487 = vmatpush3.bf16.msra.mxu1 %v7031_v29  ;;  %5505 = vmatprep.subr.bf16.mxu0 %v7044_v34  ;;  %8714 = vst [vmem:[#allocation12_spill] sm:$0xff] %v7126_v60  ;;  %v7143_v2 = vpack.c.bf16 %v553_v1, %v552_v0  ;;  %v7153_v7 = vpack.c.bf16 %v571_v4, %v570_v3  ;;  %v554_v10 = vld [vmem:[%s8574_s4 + $0x50] sm:$0xff]  ;;  %v555_v11 = vld [vmem:[%s8574_s4 + $0x58] sm:$0xff]  ;;  %v572_v13 = vld [vmem:[%s8574_s4 + $0xe0] sm:$0xff] }
  0x26   : > { %5488 = vmatprep.subr.bf16.mxu1 %v8582_v5  ;;  %8715 = vst [vmem:[#allocation13_spill] sm:$0xff] %v7135_v63  ;;  %v7161_v12 = vpack.c.bf16 %v555_v11, %v554_v10  ;;  %v573_v14 = vld [vmem:[%s8574_s4 + $0xe8] sm:$0xff]  ;;  %v556_v15 = vld [vmem:[%s8574_s4 + $0x60] sm:$0xff]  ;;  %v574_v18 = vld [vmem:[%s8574_s4 + $0xf0] sm:$0xff] }
  0x27   : > { %8716 = vst [vmem:[#allocation14_spill] sm:$0xff] %v7153_v7  ;;  %v7174_v16 = vpack.c.bf16 %v573_v14, %v572_v13  ;;  %v557_v17 = vld [vmem:[%s8574_s4 + $0x68] sm:$0xff]  ;;  %v575_v20 = vld [vmem:[%s8574_s4 + $0xf8] sm:$0xff]  ;;  %v558_v23 = vld [vmem:[%s8574_s4 + $0x70] sm:$0xff] }
  0x28   : > { %5507 = vmatpush3.bf16.msra.mxu0 %v7070_v42  ;;  %8717 = vst [vmem:[#allocation15_spill] sm:$0xff] %v7161_v12  ;;  %v7185_v21 = vpack.c.bf16 %v557_v17, %v556_v15  ;;  %v7187_v22 = vpack.c.bf16 %v575_v20, %v574_v18  ;;  %v559_v25 = vld [vmem:[%s8574_s4 + $0x78] sm:$0xff]  ;;  %v3774_v27 = vld [vmem:[%s8574_s4 + $0x180] sm:$0xff]  ;;  %v3775_v28 = vld [vmem:[%s8574_s4 + $0x188] sm:$0xff] }
  0x29   : > { %5490 = vmatpush3.bf16.msra.mxu1 %v7059_v39  ;;  %5509 = vmatprep.subr.bf16.mxu0 %v7073_v43  ;;  %8718 = vst [vmem:[#allocation16_spill] sm:$0xff] %v7174_v16  ;;  %v7197_v26 = vpack.c.bf16 %v559_v25, %v558_v23  ;;  %v3758_v30 = vld [vmem:[%s8574_s4 + $0x100] sm:$0xff]  ;;  %v7210_v31 = vpack.c.bf16 %v3775_v28, %v3774_v27  ;;  %v3759_v32 = vld [vmem:[%s8574_s4 + $0x108] sm:$0xff]  ;;  %v3776_v35 = vld [vmem:[%s8574_s4 + $0x190] sm:$0xff] }
  0x2a   : > { %5491 = vmatprep.subr.bf16.mxu1 %v8582_v5  ;;  %8719 = vst [vmem:[#allocation17_spill] sm:$0xff] %v7185_v21  ;;  %8720 = vst [vmem:[#allocation18_spill] sm:$0xff] %v7187_v22  ;;  %v3777_v36 = vld [vmem:[%s8574_s4 + $0x198] sm:$0xff]  ;;  %v7221_v37 = vpack.c.bf16 %v3759_v32, %v3758_v30  ;;  %v3760_v40 = vld [vmem:[%s8574_s4 + $0x110] sm:$0xff] }
  0x2b   : > { %8721 = vst [vmem:[#allocation19_spill] sm:$0xff] %v7197_v26  ;;  %v7223_v38 = vpack.c.bf16 %v3777_v36, %v3776_v35  ;;  %v3761_v41 = vld [vmem:[%s8574_s4 + $0x118] sm:$0xff]  ;;  %v3778_v44 = vld [vmem:[%s8574_s4 + $0x1a0] sm:$0xff]  ;;  %v3779_v45 = vld [vmem:[%s8574_s4 + $0x1a8] sm:$0xff] }
  0x2c   : > { %5511 = vmatpush3.bf16.msra.mxu0 %v7098_v51  ;;  %8722 = vst [vmem:[#allocation20_spill] sm:$0xff] %v7221_v37  ;;  %v7239_v46 = vpack.c.bf16 %v3761_v41, %v3760_v40  ;;  %v7242_v47 = vpack.c.bf16 %v3779_v45, %v3778_v44  ;;  %v3762_v49 = vld [vmem:[%s8574_s4 + $0x120] sm:$0xff]  ;;  %v3763_v50 = vld [vmem:[%s8574_s4 + $0x128] sm:$0xff]  ;;  %v3780_v54 = vld [vmem:[%s8574_s4 + $0x1b0] sm:$0xff] }
  0x2d   : > { %5493 = vmatpush3.bf16.msra.mxu1 %v7088_v48  ;;  %5513 = vmatprep.subr.bf16.mxu0 %v7101_v52  ;;  %v3781_v55 = vld [vmem:[%s8574_s4 + $0x1b8] sm:$0xff]  ;;  %v3764_v59 = vld [vmem:[%s8574_s4 + $0x130] sm:$0xff]  ;;  %v7280_v3 = vld [vmem:[%s8575_s5] sm:$0x3] }
  0x2e   : > { %5494 = vmatprep.subr.bf16.mxu1 %v8582_v5  ;;  %8723 = vst [vmem:[#allocation21_spill] sm:$0xff] %v7239_v46  ;;  %8724 = vst [vmem:[#allocation22_spill] sm:$0xff] %v7242_v47  ;;  %v7260_v58 = vpack.c.bf16 %v3781_v55, %v3780_v54  ;;  %v3765_v61 = vld [vmem:[%s8574_s4 + $0x138] sm:$0xff]  ;;  %v448_v14 = vld [vmem:[#allocation2 + $0x2] sm:$0x3] }
  0x2f   : > { %v7269_v62 = vpack.c.bf16 %v3765_v61, %v3764_v59  ;;  %8729 = vst [vmem:[#allocation27_spill] sm:$0xff] %v7280_v3  ;;  %v3782_v17 = vld [vmem:[%s8574_s4 + $0x1c0] sm:$0xff]  ;;  %v3783_v18 = vld [vmem:[%s8574_s4 + $0x1c8] sm:$0xff]  ;;  %v3784_v28 = vld [vmem:[%s8574_s4 + $0x1d0] sm:$0xff] }
  0x30   : > { %5515 = vmatpush3.bf16.msra.mxu0 %v7126_v60  ;;  %8726 = vst [vmem:[#allocation24_spill] sm:$0xff] %v7260_v58  ;;  %v7293_v20 = vpack.c.bf16 %v3783_v18, %v3782_v17  ;;  %v3766_v23 = vld [vmem:[%s8574_s4 + $0x140] sm:$0xff]  ;;  %v3767_v25 = vld [vmem:[%s8574_s4 + $0x148] sm:$0xff]  ;;  %v3785_v30 = vld [vmem:[%s8574_s4 + $0x1d8] sm:$0xff] }
  0x31   : > { %5496 = vmatpush3.bf16.msra.mxu1 %v7104_v53  ;;  %5517 = vmatprep.subr.bf16.mxu0 %v7135_v63  ;;  %8727 = vst [vmem:[#allocation25_spill] sm:$0xff] %v7269_v62  ;;  %v7301_v27 = vpack.c.bf16 %v3767_v25, %v3766_v23  ;;  %v7311_v32 = vpack.c.bf16 %v3785_v30, %v3784_v28  ;;  %v3768_v35 = vld [vmem:[%s8574_s4 + $0x150] sm:$0xff]  ;;  %v3769_v36 = vld [vmem:[%s8574_s4 + $0x158] sm:$0xff]  ;;  %v3786_v41 = vld [vmem:[%s8574_s4 + $0x1e0] sm:$0xff] }
  0x32   : > { %5497 = vmatprep.subr.bf16.mxu1 %v8582_v5  ;;  %8730 = vst [vmem:[#allocation28_spill] sm:$0xff] %v7293_v20  ;;  %v7319_v40 = vpack.c.bf16 %v3769_v36, %v3768_v35  ;;  %v3787_v44 = vld [vmem:[%s8574_s4 + $0x1e8] sm:$0xff]  ;;  %v3770_v45 = vld [vmem:[%s8574_s4 + $0x160] sm:$0xff]  ;;  %v3788_v54 = vld [vmem:[%s8574_s4 + $0x1f0] sm:$0xff] }
  0x33   : > { %8731 = vst [vmem:[#allocation29_spill] sm:$0xff] %v7301_v27  ;;  %8732 = vst [vmem:[#allocation30_spill] sm:$0xff] %v7311_v32  ;;  %v3789_v55 = vld [vmem:[%s8574_s4 + $0x1f8] sm:$0xff]  ;;  %v3790_v17 = vld [vmem:[%s8574_s4 + $0x200] sm:$0xff] }
  0x34   : > { %5519 = vmatpush3.bf16.msra.mxu0 %v7143_v2  ;;  %8733 = vst [vmem:[#allocation31_spill] sm:$0xff] %v7319_v40  ;;  %v7345_v61 = vpack.c.bf16 %v3789_v55, %v3788_v54  ;;  %v3791_v23 = vld [vmem:[%s8574_s4 + $0x208] sm:$0xff]  ;;  %v3808_v25 = vld [vmem:[%s8574_s4 + $0x290] sm:$0xff]  ;;  %v3809_v28 = vld [vmem:[%s8574_s4 + $0x298] sm:$0xff] }
  0x35   : > { %5499 = vmatpush3.bf16.msra.mxu1 %v7116_v56  ;;  %5521 = vmatprep.subr.bf16.mxu0 %v7153_v7  ;;  %v7379_v30 = vpack.c.bf16 %v3791_v23, %v3790_v17  ;;  %v7381_v35 = vpack.c.bf16 %v3809_v28, %v3808_v25  ;;  %v3792_v36 = vld [vmem:[%s8574_s4 + $0x210] sm:$0xff]  ;;  %v3794_v55 = vld [vmem:[%s8574_s4 + $0x220] sm:$0xff]  ;;  %v3797_v25 = vld [vmem:[%s8574_s4 + $0x238] sm:$0xff] }
  0x36   : > { %5533 = vmatprep.subr.bf16.mxu1 %v7210_v31  ;;  %8736 = vst [vmem:[#allocation34_spill] sm:$0xff] %v7345_v61  ;;  %v3796_v23 = vld [vmem:[%s8574_s4 + $0x230] sm:$0xff]  ;;  %v3818_v8 = vld [vmem:[%s8574_s4 + $0x2e0] sm:$0xff] }
  0x37   : > { %8739 = vst [vmem:[#allocation37_spill] sm:$0xff] %v7379_v30  ;;  %8740 = vst [vmem:[#allocation38_spill] sm:$0xff] %v7381_v35  ;;  %v7427_v28 = vpack.c.bf16 %v3797_v25, %v3796_v23  ;;  %v3815_v23 = vld [vmem:[%s8574_s4 + $0x2c8] sm:$0xff] }
  0x38   : > { %5186 = vmatmul.mubr.f32.vlgmr.msra.gmra.mrb[0].mxu1 %v446_v57  ;;  %5523 = vmatpush3.bf16.msra.mxu0 %v7161_v12  ;;  %v7257_v57 = vpack.c.bf16 %v3763_v50, %v3762_v49  ;;  %v7332_v49 = vpack.c.bf16 %v3787_v44, %v3786_v41  ;;  %v3771_v50 = vld [vmem:[%s8574_s4 + $0x168] sm:$0xff]  ;;  %v3793_v41 = vld [vmem:[%s8574_s4 + $0x218] sm:$0xff]  ;;  %v3810_v44 = vld [vmem:[%s8574_s4 + $0x2a0] sm:$0xff] }
  0x39   : > { %5525 = vmatprep.subr.bf16.mxu0 %v7174_v16  ;;  %5535 = vmatpush3.bf16.msra.mxu1 %v7221_v37  ;;  %v7343_v59 = vpack.c.bf16 %v3771_v50, %v3770_v45  ;;  %v3811_v45 = vld [vmem:[%s8574_s4 + $0x2a8] sm:$0xff]  ;;  %v7397_v50 = vpack.c.bf16 %v3793_v41, %v3792_v36  ;;  %8745 = vst [vmem:[#allocation43_spill] sm:$0xff] %v7427_v28  ;;  %v7434_v41 = vld [vmem:[%s8575_s5 + $0x2] sm:$0x3] }
  0x3a   : > { %5537 = vmatprep.subr.bf16.mxu1 %v7223_v38  ;;  %8725 = vst [vmem:[#allocation23_spill] sm:$0xff] %v7257_v57  ;;  %8734 = vst [vmem:[#allocation32_spill] sm:$0xff] %v7332_v49  ;;  %v7400_v54 = vpack.c.bf16 %v3811_v45, %v3810_v44 }
  0x3b   : > { %8735 = vst [vmem:[#allocation33_spill] sm:$0xff] %v7343_v59  ;;  %8741 = vst [vmem:[#allocation39_spill] sm:$0xff] %v7397_v50 }
  0x3c   : > { %5527 = vmatpush3.bf16.msra.mxu0 %v7185_v21  ;;  %8742 = vst [vmem:[#allocation40_spill] sm:$0xff] %v7400_v54  ;;  %8746 = vst [vmem:[#allocation44_spill] sm:$0xff] %v7434_v41 }
  0x3d   : > { %5529 = vmatprep.subr.bf16.mxu0 %v7187_v22  ;;  %5539 = vmatpush3.bf16.msra.mxu1 %v7239_v46 }
  0x3e   : > { %5541 = vmatprep.subr.bf16.mxu1 %v7242_v47 }
  0x40   : > { %5531 = vmatpush3.bf16.msra.mxu0 %v7197_v26 }
  0x41   : > { %5543 = vmatpush3.bf16.msra.mxu1 %v7257_v57 }
  0x42   : > { %5545 = vmatprep.subr.bf16.mxu1 %v7260_v58 }
  0x45   : > { %5547 = vmatpush3.bf16.msra.mxu1 %v7269_v62 }
  0x46   : > { %5549 = vmatprep.subr.bf16.mxu1 %v7293_v20 }
  0x49   : > { %5551 = vmatpush3.bf16.msra.mxu1 %v7301_v27 }
  0x4a   : > { %5553 = vmatprep.subr.bf16.mxu1 %v7311_v32 }
  0x4d   : > { %5555 = vmatpush3.bf16.msra.mxu1 %v7319_v40 }
  0x4e   : > { %5557 = vmatprep.subr.bf16.mxu1 %v7332_v49 }
  0x51   : > { %5559 = vmatpush3.bf16.msra.mxu1 %v7343_v59 }
  0x52   : > { %5561 = vmatprep.subr.bf16.mxu1 %v7345_v61 }
  0xf6   : > { %v7273_v0 = vpop.f32.mrb[0].mxu0 }
  0xf7   : > { %8728 = vst [vmem:[#allocation26_spill] sm:$0xff] %v7273_v0  ;;  %v7275_v1 = vpop.f32.mrb[1].mxu0  ;;  %v3821_v0 = vld [vmem:[%s8574_s4 + $0x2f8] sm:$0xff] }
 0x10b   : > { %v537_v4 = vpop.f32.mrb[0].mxu1 }
 0x10c   : > { %v541_v10 = vadd.f32 %v537_v4, %v7275_v1  ;;  %v5187_v11 = vpop.f32.mrb[1].mxu1  ;;  %v3772_v4 = vld [vmem:[%s8574_s4 + $0x170] sm:$0xff] }
 0x10e   : > { %v542_v13 = vadd.f32 %v541_v10, %v7280_v3  ;;  %v3773_v10 = vld [vmem:[%s8574_s4 + $0x178] sm:$0xff] }
 0x10f   : > { %v7355_v11 = vpack.c.bf16 %v3773_v10, %v3772_v4  ;;  %v3795_v4 = vld [vmem:[%s8574_s4 + $0x228] sm:$0xff]  ;;  %v3812_v10 = vld [vmem:[%s8574_s4 + $0x2b0] sm:$0xff] }
 0x110   : > { %6744 = vtanh.f32 %v542_v13  ;;  %v3806_v13 = vld [vmem:[%s8574_s4 + $0x280] sm:$0xff] }
 0x111   : > { %8737 = vst [vmem:[#allocation35_spill] sm:$0xff] %v7355_v11  ;;  %5563 = vmatpush3.bf16.msra.mxu1 %v7355_v11 }
 0x11a   : > { %v7284_v15 = vpop.eup %6744 }
 0x11b   : > { %640 = vmatprep.mubr.f32.mxu0 %v7284_v15 }
 0x11c   : > { %641 = vmatmul.mubr.f32.vlgmr.msra.gmra.mrb[2].mxu0 %v448_v14  ;;  %v3807_v14 = vld [vmem:[%s8574_s4 + $0x288] sm:$0xff] }
 0x11d   : > { %v7368_v18 = vpack.c.bf16 %v3807_v14, %v3806_v13  ;;  %v3813_v13 = vld [vmem:[%s8574_s4 + $0x2b8] sm:$0xff]  ;;  %v7415_v14 = vpack.c.bf16 %v3795_v4, %v3794_v55  ;;  %v450_v4 = vld [vmem:[#allocation2 + $0x4] sm:$0x3] }
 0x11e   : > { %v7418_v17 = vpack.c.bf16 %v3813_v13, %v3812_v10  ;;  %v3814_v13 = vld [vmem:[%s8574_s4 + $0x2c0] sm:$0xff] }
 0x11f   : > { %8738 = vst [vmem:[#allocation36_spill] sm:$0xff] %v7368_v18  ;;  %5565 = vmatprep.subr.bf16.mxu0 %v7368_v18  ;;  %8743 = vst [vmem:[#allocation41_spill] sm:$0xff] %v7415_v14  ;;  %v7446_v25 = vpack.c.bf16 %v3815_v23, %v3814_v13  ;;  %v3800_v23 = vld [vmem:[%s8574_s4 + $0x250] sm:$0xff] }
 0x120   : > { %5567 = vmatpush3.bf16.msra.mxu0 %v7379_v30  ;;  %8744 = vst [vmem:[#allocation42_spill] sm:$0xff] %v7418_v17 }
 0x121   : > { %5569 = vmatprep.subr.bf16.mxu0 %v7381_v35  ;;  %8747 = vst [vmem:[#allocation45_spill] sm:$0xff] %v7446_v25 }
 0x124   : > { %5571 = vmatpush3.bf16.msra.mxu0 %v7397_v50 }
 0x125   : > { %5573 = vmatprep.subr.bf16.mxu0 %v7400_v54 }
 0x128   : > { %5575 = vmatpush3.bf16.msra.mxu0 %v7415_v14 }
 0x129   : > { %5577 = vmatprep.subr.bf16.mxu0 %v7418_v17 }
 0x12c   : > { %5579 = vmatpush3.bf16.msra.mxu0 %v7427_v28 }
 0x12d   : > { %5581 = vmatprep.subr.bf16.mxu0 %v7446_v25  ;;  %v3827_v25 = vld [vmem:[%s8574_s4 + $0x328] sm:$0xff] }
 0x1ef   : > { %v3917_v36 = vpop.f32.mrb[2].mxu0 }
 0x1f0   : > { %v3918_v44 = vpop.f32.mrb[3].mxu0 }
 0x1f1   : > { %v3919_v45 = vadd.f32 %v3918_v44, %v3917_v36  ;;  %v3798_v36 = vld [vmem:[%s8574_s4 + $0x240] sm:$0xff]  ;;  %v3799_v44 = vld [vmem:[%s8574_s4 + $0x248] sm:$0xff] }
 0x1f3   : > { %v643_v55 = vadd.f32 %v3919_v45, %v7434_v41  ;;  %v7454_v45 = vpack.c.bf16 %v3799_v44, %v3798_v36  ;;  %v3801_v36 = vld [vmem:[%s8574_s4 + $0x258] sm:$0xff] }
 0x1f4   : > { %v7472_v44 = vpack.c.bf16 %v3801_v36, %v3800_v23  ;;  %v3803_v23 = vld [vmem:[%s8574_s4 + $0x268] sm:$0xff]  ;;  %v3820_v36 = vld [vmem:[%s8574_s4 + $0x2f0] sm:$0xff] }
 0x1f5   : > { %6746 = vtanh.f32 %v643_v55  ;;  %8748 = vst [vmem:[#allocation46_spill] sm:$0xff] %v7454_v45  ;;  %5583 = vmatpush3.bf16.msra.mxu0 %v7454_v45  ;;  %v3816_v55 = vld [vmem:[%s8574_s4 + $0x2d0] sm:$0xff]  ;;  %v3842_v45 = vld [vmem:[%s8574_s4 + $0x3a0] sm:$0xff] }
 0x1f6   : > { %8750 = vst [vmem:[#allocation48_spill] sm:$0xff] %v7472_v44 }
 0x1ff   : > { %v7437_v10 = vpop.eup %6746 }
 0x200   : > { %744 = vmatprep.mubr.f32.mxu1 %v7437_v10 }
 0x201   : > { %745 = vmatmul.mubr.f32.vlgmr.msra.gmra.mrb[2].mxu1 %v450_v4  ;;  %v3817_v4 = vld [vmem:[%s8574_s4 + $0x2d8] sm:$0xff] }
 0x202   : > { %v7464_v13 = vpack.c.bf16 %v3817_v4, %v3816_v55  ;;  %v3819_v55 = vld [vmem:[%s8574_s4 + $0x2e8] sm:$0xff]  ;;  %v3802_v4 = vld [vmem:[%s8574_s4 + $0x260] sm:$0xff] }
 0x203   : > { %v7485_v5 = vpack.c.bf16 %v3819_v55, %v3818_v8  ;;  %v7496_v41 = vpack.c.bf16 %v3803_v23, %v3802_v4  ;;  %v3804_v8 = vld [vmem:[%s8574_s4 + $0x270] sm:$0xff]  ;;  %v3805_v55 = vld [vmem:[%s8574_s4 + $0x278] sm:$0xff]  ;;  %v3838_v4 = vld [vmem:[%s8574_s4 + $0x380] sm:$0xff] }
 0x204   : > { %8749 = vst [vmem:[#allocation47_spill] sm:$0xff] %v7464_v13  ;;  %5585 = vmatprep.subr.bf16.mxu0 %v7464_v13  ;;  %v7508_v13 = vpack.c.bf16 %v3805_v55, %v3804_v8  ;;  %v3839_v23 = vld [vmem:[%s8574_s4 + $0x388] sm:$0xff] }
 0x205   : > { %5587 = vmatpush3.bf16.msra.mxu0 %v7472_v44  ;;  %8751 = vst [vmem:[#allocation49_spill] sm:$0xff] %v7485_v5  ;;  %8752 = vst [vmem:[#allocation50_spill] sm:$0xff] %v7496_v41  ;;  %v7498_v44 = vpack.c.bf16 %v3821_v0, %v3820_v36  ;;  %v8755_v0 = vmov 0.0|0.0   ;;  %v3822_v36 = vld [vmem:[%s8574_s4 + $0x300] sm:$0xff]  ;;  %v7522_v8 = vpack.c.bf16 %v3839_v23, %v3838_v4  ;;  %v3823_v55 = vld [vmem:[%s8574_s4 + $0x308] sm:$0xff] }
 0x206   : > { %5589 = vmatprep.subr.bf16.mxu0 %v7485_v5  ;;  %8754 = vst [vmem:[#allocation52_spill] sm:$0xff] %v7508_v13  ;;  %v3824_v4 = vld [vmem:[%s8574_s4 + $0x310] sm:$0xff]  ;;  %v3825_v23 = vld [vmem:[%s8574_s4 + $0x318] sm:$0xff] }
 0x207   : > { %8753 = vst [vmem:[#allocation51_spill] sm:$0xff] %v7498_v44  ;;  %8756 = vst [vmem:[#allocation53_spill] sm:$0xff] %v7522_v8  ;;  %5597 = vmatprep.subr.bf16.mxu1 %v7522_v8 }
 0x209   : > { %5591 = vmatpush3.bf16.msra.mxu0 %v7496_v41  ;;  %v7533_v41 = vpack.c.bf16 %v3823_v55, %v3822_v36  ;;  %v3843_v36 = vld [vmem:[%s8574_s4 + $0x3a8] sm:$0xff]  ;;  %v3826_v55 = vld [vmem:[%s8574_s4 + $0x320] sm:$0xff] }
 0x20a   : > { %5593 = vmatprep.subr.bf16.mxu0 %v7498_v44  ;;  %v3841_v44 = vld [vmem:[%s8574_s4 + $0x398] sm:$0xff]  ;;  %v7563_v28 = vpack.c.bf16 %v3827_v25, %v3826_v55  ;;  %v8759_v25 = vmov 0.0   ;;  %v3828_v55 = vld [vmem:[%s8574_s4 + $0x330] sm:$0xff] }
 0x20b   : > { %8757 = vst [vmem:[#allocation54_spill] sm:$0xff] %v7533_v41  ;;  %5599 = vmatpush3.bf16.msra.mxu1 %v7533_v41  ;;  %v452_v41 = vld [vmem:[#allocation2 + $0x6] sm:$0x3] }
 0x20d   : > { %5595 = vmatpush3.bf16.msra.mxu0 %v7508_v13  ;;  %v3840_v13 = vld [vmem:[%s8574_s4 + $0x390] sm:$0xff] }
 0x20e   : > { %5628 = vmatprep.subr.bf16.mxu0 %v8755_v0  ;;  %v7535_v5 = vpack.c.bf16 %v3841_v44, %v3840_v13  ;;  %v7551_v13 = vpack.c.bf16 %v3825_v23, %v3824_v4  ;;  %v7554_v44 = vpack.c.bf16 %v3843_v36, %v3842_v45  ;;  %v7570_v45 = vld [vmem:[%s8575_s5 + $0x4] sm:$0x3] }
 0x210   : > { %8758 = vst [vmem:[#allocation55_spill] sm:$0xff] %v7535_v5  ;;  %5601 = vmatprep.subr.bf16.mxu1 %v7535_v5 }
 0x211   : > { %5603 = vmatpush3.bf16.msra.mxu1 %v7551_v13 }
 0x212   : > { %5605 = vmatprep.subr.bf16.mxu1 %v7554_v44 }
 0x215   : > { %5607 = vmatpush3.bf16.msra.mxu1 %v7563_v28 }
 0x2d4   : > { %v3952_v4 = vpop.f32.mrb[2].mxu1 }
 0x2d5   : > { %v3953_v23 = vpop.f32.mrb[3].mxu1 }
 0x2d6   : > { %v3954_v36 = vadd.f32 %v3953_v23, %v3952_v4  ;;  %v3829_v4 = vld [vmem:[%s8574_s4 + $0x338] sm:$0xff] }
 0x2d7   : > { %v7625_v23 = vpack.c.bf16 %v3829_v4, %v3828_v55  ;;  %v3831_v55 = vld [vmem:[%s8574_s4 + $0x348] sm:$0xff] }
 0x2d8   : > { %v747_v5 = vadd.f32 %v3954_v36, %v7570_v45  ;;  %v3846_v36 = vld [vmem:[%s8574_s4 + $0x3c0] sm:$0xff] }
 0x2da   : > { %6748 = vtanh.f32 %v747_v5  ;;  %v3844_v5 = vld [vmem:[%s8574_s4 + $0x3b0] sm:$0xff] }
 0x2e4   : > { %v7573_v17 = vpop.eup %6748 }
 0x2e5   : > { %848 = vmatprep.mubr.f32.mxu0 %v7573_v17 }
 0x2e6   : > { %849 = vmatmul.mubr.f32.vlgmr.msra.gmra.mrb[4].mxu0 %v452_v41 }
 0x2e7   : > { %5630 = vmatpush3.bf16.msra.mxu0 %v6969_v6  ;;  %5220 = vmatprep.mubr.msk.f32.mxu0 %vm6876_vm0, %v8759_v25 }
 0x2e8   : > { %5631 = vmatprep.subr.bf16.mxu0 %v8755_v0 }
 0x2eb   : > { %5633 = vmatpush3.bf16.msra.mxu0 %v6977_v9 }
 0x2ec   : > { %5634 = vmatprep.subr.bf16.mxu0 %v8755_v0 }
 0x2ef   : > { %5636 = vmatpush3.bf16.msra.mxu0 %v7000_v19 }
 0x2f0   : > { %5637 = vmatprep.subr.bf16.mxu0 %v8755_v0 }
 0x2f3   : > { %5639 = vmatpush3.bf16.msra.mxu0 %v7031_v29 }
 0x2f4   : > { %5640 = vmatprep.subr.bf16.mxu0 %v8755_v0 }
 0x2f7   : > { %5642 = vmatpush3.bf16.msra.mxu0 %v7059_v39 }
 0x2f8   : > { %5643 = vmatprep.subr.bf16.mxu0 %v8755_v0 }
 0x2fb   : > { %5645 = vmatpush3.bf16.msra.mxu0 %v7088_v48 }
 0x2fc   : > { %5646 = vmatprep.subr.bf16.mxu0 %v8755_v0 }
 0x2ff   : > { %5648 = vmatpush3.bf16.msra.mxu0 %v7104_v53 }
 0x300   : > { %5649 = vmatprep.subr.bf16.mxu0 %v8755_v0 }
 0x303   : > { %5651 = vmatpush3.bf16.msra.mxu0 %v7116_v56 }
 0x304   : > { %5685 = vmatprep.subr.bf16.mxu0 %v7210_v31 }
 0x306   : > { %5221 = vmatmul.mubr.f32.vlgmr.msra.gmra.mrb[6].mxu0 %v7284_v15  ;;  %v3845_v15 = vld [vmem:[%s8574_s4 + $0x3b8] sm:$0xff] }
 0x307   : > { %5687 = vmatpush3.bf16.msra.mxu0 %v7221_v37  ;;  %v7617_v41 = vpack.c.bf16 %v3845_v15, %v3844_v5  ;;  %v3847_v5 = vld [vmem:[%s8574_s4 + $0x3c8] sm:$0xff] }
 0x308   : > { %5689 = vmatprep.subr.bf16.mxu0 %v7223_v38  ;;  %v7635_v15 = vpack.c.bf16 %v3847_v5, %v3846_v36  ;;  %v3849_v36 = vld [vmem:[%s8574_s4 + $0x3d8] sm:$0xff]  ;;  %v3832_v5 = vld [vmem:[%s8574_s4 + $0x350] sm:$0xff] }
 0x309   : > { %5609 = vmatprep.subr.bf16.mxu1 %v7617_v41 }
 0x30a   : > { %5611 = vmatpush3.bf16.msra.mxu1 %v7625_v23 }
 0x30b   : > { %5691 = vmatpush3.bf16.msra.mxu0 %v7239_v46  ;;  %5613 = vmatprep.subr.bf16.mxu1 %v7635_v15 }
 0x30c   : > { %5693 = vmatprep.subr.bf16.mxu0 %v7242_v47 }
 0x30f   : > { %5695 = vmatpush3.bf16.msra.mxu0 %v7257_v57 }
 0x310   : > { %5697 = vmatprep.subr.bf16.mxu0 %v7260_v58  ;;  %v454_v58 = vld [vmem:[#allocation2 + $0x8] sm:$0x3] }
 0x313   : > { %5699 = vmatpush3.bf16.msra.mxu0 %v7269_v62 }
 0x314   : > { %5701 = vmatprep.subr.bf16.mxu0 %v7293_v20 }
 0x317   : > { %5703 = vmatpush3.bf16.msra.mxu0 %v7301_v27  ;;  %v3837_v27 = vld [vmem:[%s8574_s4 + $0x378] sm:$0xff] }
 0x318   : > { %5705 = vmatprep.subr.bf16.mxu0 %v7311_v32  ;;  %v3852_v32 = vld [vmem:[%s8574_s4 + $0x3f0] sm:$0xff] }
 0x31b   : > { %5707 = vmatpush3.bf16.msra.mxu0 %v7319_v40 }
 0x31c   : > { %5709 = vmatprep.subr.bf16.mxu0 %v7332_v49 }
 0x31f   : > { %5711 = vmatpush3.bf16.msra.mxu0 %v7343_v59  ;;  %v3851_v59 = vld [vmem:[%s8574_s4 + $0x3e8] sm:$0xff] }
 0x320   : > { %5713 = vmatprep.subr.bf16.mxu0 %v7345_v61 }
 0x323   : > { %5715 = vmatpush3.bf16.msra.mxu0 %v7355_v11  ;;  %v3848_v11 = vld [vmem:[%s8574_s4 + $0x3d0] sm:$0xff] }
 0x324   : > { %5749 = vmatprep.subr.bf16.mxu0 %v7522_v8  ;;  %v3830_v8 = vld [vmem:[%s8574_s4 + $0x340] sm:$0xff]  ;;  %v7656_v61 = vpack.c.bf16 %v3849_v36, %v3848_v11  ;;  %v3835_v36 = vld [vmem:[%s8574_s4 + $0x368] sm:$0xff] }
 0x325   : > { %v7643_v4 = vpack.c.bf16 %v3831_v55, %v3830_v8  ;;  %v3833_v8 = vld [vmem:[%s8574_s4 + $0x358] sm:$0xff]  ;;  %v3850_v55 = vld [vmem:[%s8574_s4 + $0x3e0] sm:$0xff] }
 0x326   : > { %v7667_v49 = vpack.c.bf16 %v3833_v8, %v3832_v5  ;;  %v7669_v40 = vpack.c.bf16 %v3851_v59, %v3850_v55  ;;  %v3834_v11 = vld [vmem:[%s8574_s4 + $0x360] sm:$0xff]  ;;  %v3853_v5 = vld [vmem:[%s8574_s4 + $0x3f8] sm:$0xff]  ;;  %v3836_v55 = vld [vmem:[%s8574_s4 + $0x370] sm:$0xff] }
 0x327   : > { %5615 = vmatpush3.bf16.msra.mxu1 %v7643_v4  ;;  %v7685_v59 = vpack.c.bf16 %v3835_v36, %v3834_v11  ;;  %v7688_v8 = vpack.c.bf16 %v3853_v5, %v3852_v32  ;;  %v7697_v20 = vpack.c.bf16 %v3837_v27, %v3836_v55  ;;  %v7705_v11 = vld [vmem:[%s8575_s5 + $0x6] sm:$0x3] }
 0x328   : > { %5617 = vmatprep.subr.bf16.mxu1 %v7656_v61 }
 0x32b   : > { %5619 = vmatpush3.bf16.msra.mxu1 %v7667_v49 }
 0x32c   : > { %5621 = vmatprep.subr.bf16.mxu1 %v7669_v40 }
 0x32f   : > { %5623 = vmatpush3.bf16.msra.mxu1 %v7685_v59 }
 0x330   : > { %5625 = vmatprep.subr.bf16.mxu1 %v7688_v8 }
 0x333   : > { %5627 = vmatpush3.bf16.msra.mxu1 %v7697_v20 }
 0x334   : > { %5653 = vmatprep.subr.bf16.mxu1 %v7016_v24 }
 0x3b9   : > { %v3987_v32 = vpop.f32.mrb[4].mxu0 }
 0x3ba   : > { %v3988_v36 = vpop.f32.mrb[5].mxu0 }
 0x3bb   : > { %v3989_v5 = vadd.f32 %v3988_v36, %v3987_v32 }
 0x3bd   : > { %v851_v62 = vadd.f32 %v3989_v5, %v7705_v11 }
 0x3bf   : > { %6750 = vtanh.f32 %v851_v62 }
 0x3c9   : > { %v7708_v27 = vpop.eup %6750 }
 0x3ca   : > { %952 = vmatprep.mubr.f32.mxu1 %v7708_v27 }
 0x3cb   : > { %953 = vmatmul.mubr.f32.vlgmr.msra.gmra.mrb[4].mxu1 %v454_v58  ;;  %v8633_v58 = vrot.slane %v7280_v3, 6 }
 0x3cc   : > { %5655 = vmatpush3.bf16.msra.mxu1 %v7041_v33 }
 0x3cd   : > { %5657 = vmatprep.subr.bf16.mxu1 %v7044_v34 }
 0x3d0   : > { %5659 = vmatpush3.bf16.msra.mxu1 %v7070_v42 }
 0x3d1   : > { %5661 = vmatprep.subr.bf16.mxu1 %v7073_v43 }
 0x3d4   : > { %5663 = vmatpush3.bf16.msra.mxu1 %v7098_v51 }
 0x3d5   : > { %5665 = vmatprep.subr.bf16.mxu1 %v7101_v52 }
 0x3d8   : > { %5667 = vmatpush3.bf16.msra.mxu1 %v7126_v60 }
 0x3d9   : > { %v1025_v62 = vpop.f32.mrb[6].mxu0  ;;  %5669 = vmatprep.subr.bf16.mxu1 %v7135_v63 }
 0x3da   : > { %v1030_v55 = vrot.slane %v1025_v62, 6  ;;  %v5222_v32 = vpop.f32.mrb[7].mxu0 }
 0x3db   : > { %v8760_v32 = vld [vmem:[#allocation42_spill] sm:$0xff] }
 0x3dc   : > { %v1032_v36 = vadd.f32 %v1030_v55, %v7275_v1  ;;  %5671 = vmatpush3.bf16.msra.mxu1 %v7143_v2 }
 0x3dd   : > { %5673 = vmatprep.subr.bf16.mxu1 %v7153_v7 }
 0x3de   : > { %v1036_v5 = vadd.f32 %v8633_v58, %v1032_v36  ;;  %v8761_v36 = vld [vmem:[#allocation43_spill] sm:$0xff]  ;;  %v8763_v58 = vld [vmem:[#allocation46_spill] sm:$0xff] }
 0x3e0   : > { %6752 = vtanh.f32 %v1036_v5  ;;  %5675 = vmatpush3.bf16.msra.mxu1 %v7161_v12  ;;  %v8762_v5 = vld [vmem:[#allocation45_spill] sm:$0xff] }
 0x3e1   : > { %5677 = vmatprep.subr.bf16.mxu1 %v7174_v16 }
 0x3e4   : > { %5679 = vmatpush3.bf16.msra.mxu1 %v7185_v21 }
 0x3e5   : > { %5681 = vmatprep.subr.bf16.mxu1 %v7187_v22 }
 0x3e8   : > { %5683 = vmatpush3.bf16.msra.mxu1 %v7197_v26 }
 0x3e9   : > { %5717 = vmatprep.subr.bf16.mxu1 %v7368_v18 }
 0x3ea   : > { %v7731_v62 = vpop.eup %6752 }
 0x3eb   : > { %v8634_v55 = vrot.slane %v7731_v62, 2 }
 0x3ed   : > { %1105 = vmatprep.mubr.f32.mxu1 %v8634_v55  ;;  %v8764_v55 = vld [vmem:[#allocation47_spill] sm:$0xff] }
 0x3ee   : > { %1106 = vmatmul.mubr.f32.vlgmr.msra.gmra.mrb[6].mxu1 %v7437_v10  ;;  %v8765_v10 = vld [vmem:[#allocation48_spill] sm:$0xff] }
 0x3ef   : > { %5719 = vmatpush3.bf16.msra.mxu1 %v7379_v30  ;;  %v8766_v30 = vld [vmem:[#allocation49_spill] sm:$0xff] }
 0x3f0   : > { %5721 = vmatprep.subr.bf16.mxu1 %v7381_v35  ;;  %v8767_v35 = vld [vmem:[#allocation50_spill] sm:$0xff] }
 0x3f3   : > { %5723 = vmatpush3.bf16.msra.mxu1 %v7397_v50  ;;  %v8768_v50 = vld [vmem:[#allocation51_spill] sm:$0xff] }
 0x3f4   : > { %5725 = vmatprep.subr.bf16.mxu1 %v7400_v54  ;;  %v8769_v54 = vld [vmem:[#allocation52_spill] sm:$0xff] }
 0x3f7   : > { %5727 = vmatpush3.bf16.msra.mxu1 %v7415_v14 }
 0x3f8   : > { %5729 = vmatprep.subr.bf16.mxu1 %v8760_v32 }
 0x3fb   : > { %5731 = vmatpush3.bf16.msra.mxu1 %v8761_v36 }
 0x3fc   : > { %5733 = vmatprep.subr.bf16.mxu1 %v8762_v5 }
 0x3ff   : > { %5735 = vmatpush3.bf16.msra.mxu1 %v8763_v58 }
 0x400   : > { %5737 = vmatprep.subr.bf16.mxu1 %v8764_v55  ;;  %v8770_v55 = vld [vmem:[#allocation44_spill] sm:$0xff] }
 0x403   : > { %5739 = vmatpush3.bf16.msra.mxu1 %v8765_v10 }
 0x404   : > { %5741 = vmatprep.subr.bf16.mxu1 %v8766_v30 }
 0x407   : > { %5743 = vmatpush3.bf16.msra.mxu1 %v8767_v35 }
 0x408   : > { %5745 = vmatprep.subr.bf16.mxu1 %v8768_v50  ;;  %v8771_v50 = vld [vmem:[#allocation54_spill] sm:$0xff] }
 0x40b   : > { %5747 = vmatpush3.bf16.msra.mxu1 %v8769_v54  ;;  %v8772_v54 = vld [vmem:[#allocation55_spill] sm:$0xff] }
 0x40c   : > { %5780 = vmatprep.subr.bf16.mxu1 %v8755_v0 }
 0x49e   : > { %v4022_v32 = vpop.f32.mrb[4].mxu1 }
 0x49f   : > { %v4023_v36 = vpop.f32.mrb[5].mxu1 }
 0x4a0   : > { %v7753_v14 = vadd.f32 %v4023_v36, %v4022_v32  ;;  %v8774_v36 = vld [vmem:[#allocation24_spill] sm:$0xff] }
 0x4c1   : > { %v4074_v5 = vpop.f32.mrb[6].mxu1 }
 0x4c2   : > { %v4075_v58 = vpop.f32.mrb[7].mxu1 }
 0x4c3   : > { %v4076_v18 = vadd.f32 %v4075_v58, %v4074_v5  ;;  %v8775_v5 = vld [vmem:[#allocation25_spill] sm:$0xff] }
 0x4c5   : > { %v1108_v26 = vadd.f32 %v4076_v18, %v8770_v55 }
 0x4c7   : > { %6754 = vtanh.f32 %v1108_v26 }
 0x4d1   : > { %v7756_v10 = vpop.eup %6754 }
 0x4d2   : > { %1176 = vmatprep.mubr.f32.mxu0 %v7756_v10 }
 0x4d3   : > { %1177 = vmatmul.mubr.f32.vlgmr.msra.gmra.mrb[8].mxu0 %v7573_v17 }
 0x4d4   : > { %5751 = vmatpush3.bf16.msra.mxu0 %v8771_v50 }
 0x4d5   : > { %5753 = vmatprep.subr.bf16.mxu0 %v8772_v54 }
 0x4d8   : > { %5755 = vmatpush3.bf16.msra.mxu0 %v7551_v13 }
 0x4d9   : > { %5757 = vmatprep.subr.bf16.mxu0 %v7554_v44 }
 0x4dc   : > { %5759 = vmatpush3.bf16.msra.mxu0 %v7563_v28 }
 0x4dd   : > { %5761 = vmatprep.subr.bf16.mxu0 %v7617_v41 }
 0x4e0   : > { %5763 = vmatpush3.bf16.msra.mxu0 %v7625_v23 }
 0x4e1   : > { %5765 = vmatprep.subr.bf16.mxu0 %v7635_v15 }
 0x4e4   : > { %5767 = vmatpush3.bf16.msra.mxu0 %v7643_v4 }
 0x4e5   : > { %5769 = vmatprep.subr.bf16.mxu0 %v7656_v61 }
 0x4e8   : > { %5771 = vmatpush3.bf16.msra.mxu0 %v7667_v49 }
 0x4e9   : > { %5773 = vmatprep.subr.bf16.mxu0 %v7669_v40 }
 0x4ec   : > { %5775 = vmatpush3.bf16.msra.mxu0 %v7685_v59 }
 0x4ed   : > { %5777 = vmatprep.subr.bf16.mxu0 %v7688_v8 }
 0x4f0   : > { %5779 = vmatpush3.bf16.msra.mxu0 %v7697_v20 }
 0x4f1   : > { %5805 = vmatprep.subr.bf16.mxu0 %v7016_v24 }
 0x5a6   : > { %v4109_v26 = vpop.f32.mrb[8].mxu0 }
 0x5a7   : > { %v4110_v18 = vpop.f32.mrb[9].mxu0 }
 0x5a8   : > { %v4111_v17 = vadd.f32 %v4110_v18, %v4109_v26  ;;  %v8776_v26 = vld [vmem:[#allocation28_spill] sm:$0xff]  ;;  %v8777_v18 = vld [vmem:[#allocation29_spill] sm:$0xff] }
 0x5aa   : > { %v1179_v58 = vadd.f32 %v4111_v17, %v7570_v45  ;;  %v8779_v17 = vld [vmem:[#allocation31_spill] sm:$0xff] }
 0x5ac   : > { %6756 = vtanh.f32 %v1179_v58  ;;  %v8780_v58 = vld [vmem:[#allocation32_spill] sm:$0xff] }
 0x5b6   : > { %v7777_v32 = vpop.eup %6756 }
 0x5b7   : > { %1247 = vmatprep.mubr.f32.mxu1 %v7777_v32 }
 0x5b8   : > { %1248 = vmatmul.mubr.f32.vlgmr.msra.gmra.mrb[8].mxu1 %v7708_v27  ;;  %v8773_v27 = vrot.slane %v7731_v62, 2  ;;  %v8778_v62 = vld [vmem:[#allocation30_spill] sm:$0xff] }
 0x5b9   : > { %5782 = vmatpush3.bf16.msra.mxu1 %v6969_v6  ;;  %5255 = vmatprep.mubr.msk.f32.mxu1 %vm6876_vm0, %v8759_v25 }
 0x5ba   : > { %5783 = vmatprep.subr.bf16.mxu1 %v8755_v0 }
 0x5bd   : > { %5785 = vmatpush3.bf16.msra.mxu1 %v6977_v9 }
 0x5be   : > { %5786 = vmatprep.subr.bf16.mxu1 %v8755_v0 }
 0x5c1   : > { %5788 = vmatpush3.bf16.msra.mxu1 %v7000_v19 }
 0x5c2   : > { %5789 = vmatprep.subr.bf16.mxu1 %v8755_v0 }
 0x5c5   : > { %5791 = vmatpush3.bf16.msra.mxu1 %v7031_v29 }
 0x5c6   : > { %5792 = vmatprep.subr.bf16.mxu1 %v8755_v0 }
 0x5c9   : > { %5794 = vmatpush3.bf16.msra.mxu1 %v7059_v39 }
 0x5ca   : > { %5795 = vmatprep.subr.bf16.mxu1 %v8755_v0 }
 0x5cd   : > { %5797 = vmatpush3.bf16.msra.mxu1 %v7088_v48 }
 0x5ce   : > { %5798 = vmatprep.subr.bf16.mxu1 %v8755_v0 }
 0x5d1   : > { %5800 = vmatpush3.bf16.msra.mxu1 %v7104_v53 }
 0x5d2   : > { %5801 = vmatprep.subr.bf16.mxu1 %v8755_v0 }
 0x5d5   : > { %5803 = vmatpush3.bf16.msra.mxu1 %v7116_v56 }
 0x5d6   : > { %5837 = vmatprep.subr.bf16.mxu1 %v7210_v31 }
 0x5d8   : > { %5256 = vmatmul.mubr.f32.vlgmr.msra.gmra.mrb[10].mxu1 %v8773_v27  ;;  %v8781_v27 = vld [vmem:[#allocation33_spill] sm:$0xff] }
 0x5d9   : > { %5839 = vmatpush3.bf16.msra.mxu1 %v7221_v37 }
 0x5da   : > { %5841 = vmatprep.subr.bf16.mxu1 %v7223_v38 }
 0x5dd   : > { %5843 = vmatpush3.bf16.msra.mxu1 %v7239_v46  ;;  %v8782_v46 = vld [vmem:[#allocation34_spill] sm:$0xff] }
 0x5de   : > { %5845 = vmatprep.subr.bf16.mxu1 %v7242_v47  ;;  %v8783_v47 = vld [vmem:[#allocation35_spill] sm:$0xff] }
 0x5e1   : > { %5847 = vmatpush3.bf16.msra.mxu1 %v7257_v57  ;;  %v8784_v57 = vld [vmem:[#allocation53_spill] sm:$0xff] }
 0x5e2   : > { %5849 = vmatprep.subr.bf16.mxu1 %v8774_v36 }
 0x5e5   : > { %5851 = vmatpush3.bf16.msra.mxu1 %v8775_v5 }
 0x5e6   : > { %5853 = vmatprep.subr.bf16.mxu1 %v8776_v26  ;;  %v7820_v26 = vld [vmem:[%s8575_s5 + $0x8] sm:$0x3] }
 0x5e9   : > { %5855 = vmatpush3.bf16.msra.mxu1 %v8777_v18 }
 0x5ea   : > { %5857 = vmatprep.subr.bf16.mxu1 %v8778_v62 }
 0x5ed   : > { %5859 = vmatpush3.bf16.msra.mxu1 %v8779_v17  ;;  %v955_v17 = vadd.f32 %v7753_v14, %v7820_v26 }
 0x5ee   : > { %5861 = vmatprep.subr.bf16.mxu1 %v8780_v58 }
 0x5f1   : > { %5863 = vmatpush3.bf16.msra.mxu1 %v8781_v27 }
 0x5f2   : > { %5865 = vmatprep.subr.bf16.mxu1 %v8782_v46 }
 0x5f5   : > { %5867 = vmatpush3.bf16.msra.mxu1 %v8783_v47 }
 0x5f6   : > { %5901 = vmatprep.subr.bf16.mxu1 %v8784_v57 }
 0x68b   : > { %v4144_v18 = vpop.f32.mrb[8].mxu1 }
 0x68c   : > { %v4145_v5 = vpop.f32.mrb[9].mxu1 }
 0x68d   : > { %v4146_v62 = vadd.f32 %v4145_v5, %v4144_v18  ;;  %v8656_v18 = vrot.slane %v7280_v3, 4 }
 0x68f   : > { %v1250_v58 = vadd.f32 %v4146_v62, %v7705_v11 }
 0x691   : > { %6758 = vtanh.f32 %v1250_v58 }
 0x692   : > { %6760 = vtanh.f32 %v955_v17 }
 0x69b   : > { %v7825_v46 = vpop.eup %6758 }
 0x69c   : > { %v7827_v47 = vpop.eup %6760  ;;  %1318 = vmatprep.mubr.f32.mxu0 %v7825_v46 }
 0x69d   : > { %8785 = vst [vmem:[#allocation49_spill] sm:$0xff] %v7827_v47  ;;  %1319 = vmatmul.mubr.f32.vlgmr.msra.gmra.mrb[10].mxu0 %v7827_v47 }
 0x69e   : > { %5807 = vmatpush3.bf16.msra.mxu0 %v7041_v33 }
 0x69f   : > { %5809 = vmatprep.subr.bf16.mxu0 %v7044_v34 }
 0x6a2   : > { %5811 = vmatpush3.bf16.msra.mxu0 %v7070_v42 }
 0x6a3   : > { %5813 = vmatprep.subr.bf16.mxu0 %v7073_v43 }
 0x6a6   : > { %5815 = vmatpush3.bf16.msra.mxu0 %v7098_v51 }
 0x6a7   : > { %5817 = vmatprep.subr.bf16.mxu0 %v7101_v52 }
 0x6aa   : > { %5819 = vmatpush3.bf16.msra.mxu0 %v7126_v60 }
 0x6ab   : > { %v1391_v14 = vpop.f32.mrb[10].mxu1  ;;  %5821 = vmatprep.subr.bf16.mxu0 %v7135_v63 }
 0x6ac   : > { %v1396_v5 = vrot.slane %v1391_v14, 4  ;;  %v5257_v62 = vpop.f32.mrb[11].mxu1  ;;  %v8786_v14 = vld [vmem:[#allocation19_spill] sm:$0xff] }
 0x6ad   : > { %v8787_v62 = vld [vmem:[#allocation36_spill] sm:$0xff] }
 0x6ae   : > { %v1398_v17 = vadd.f32 %v1396_v5, %v7275_v1  ;;  %5823 = vmatpush3.bf16.msra.mxu0 %v7143_v2 }
 0x6af   : > { %5825 = vmatprep.subr.bf16.mxu0 %v7153_v7 }
 0x6b0   : > { %v1401_v58 = vadd.f32 %v8656_v18, %v1398_v17  ;;  %v8788_v17 = vld [vmem:[#allocation37_spill] sm:$0xff]  ;;  %v8790_v18 = vld [vmem:[#allocation39_spill] sm:$0xff] }
 0x6b2   : > { %6762 = vtanh.f32 %v1401_v58  ;;  %5827 = vmatpush3.bf16.msra.mxu0 %v7161_v12  ;;  %v8789_v58 = vld [vmem:[#allocation38_spill] sm:$0xff] }
 0x6b3   : > { %5829 = vmatprep.subr.bf16.mxu0 %v7174_v16  ;;  %v8795_v16 = vld [vmem:[#allocation45_spill] sm:$0xff]  ;;  %v8796_v12 = vld [vmem:[#allocation46_spill] sm:$0xff] }
 0x6b6   : > { %5831 = vmatpush3.bf16.msra.mxu0 %v7185_v21  ;;  %v8794_v21 = vld [vmem:[#allocation43_spill] sm:$0xff] }
 0x6b7   : > { %5833 = vmatprep.subr.bf16.mxu0 %v7187_v22  ;;  %v8791_v22 = vld [vmem:[#allocation40_spill] sm:$0xff] }
 0x6ba   : > { %5835 = vmatpush3.bf16.msra.mxu0 %v8786_v14  ;;  %v8792_v14 = vld [vmem:[#allocation41_spill] sm:$0xff] }
 0x6bb   : > { %5869 = vmatprep.subr.bf16.mxu0 %v8787_v62  ;;  %v8793_v62 = vld [vmem:[#allocation42_spill] sm:$0xff] }
 0x6bc   : > { %v7851_v5 = vpop.eup %6762 }
 0x6bd   : > { %v8665_v47 = vrot.slane %v7851_v5, 4 }
 0x6bf   : > { %1470 = vmatprep.mubr.f32.mxu0 %v8665_v47  ;;  %v8797_v47 = vld [vmem:[#allocation47_spill] sm:$0xff] }
 0x6c0   : > { %1471 = vmatmul.mubr.f32.vlgmr.msra.gmra.mrb[12].mxu0 %v7756_v10  ;;  %v8798_v10 = vld [vmem:[#allocation48_spill] sm:$0xff] }
 0x6c1   : > { %5871 = vmatpush3.bf16.msra.mxu0 %v8788_v17 }
 0x6c2   : > { %5873 = vmatprep.subr.bf16.mxu0 %v8789_v58 }
 0x6c5   : > { %5875 = vmatpush3.bf16.msra.mxu0 %v8790_v18  ;;  %v8799_v18 = vld [vmem:[#allocation51_spill] sm:$0xff] }
 0x6c6   : > { %5877 = vmatprep.subr.bf16.mxu0 %v8791_v22  ;;  %v8800_v22 = vld [vmem:[#allocation52_spill] sm:$0xff] }
 0x6c9   : > { %5879 = vmatpush3.bf16.msra.mxu0 %v8792_v14 }
 0x6ca   : > { %5881 = vmatprep.subr.bf16.mxu0 %v8793_v62 }
 0x6cd   : > { %5883 = vmatpush3.bf16.msra.mxu0 %v8794_v21 }
 0x6ce   : > { %5885 = vmatprep.subr.bf16.mxu0 %v8795_v16 }
 0x6d1   : > { %5887 = vmatpush3.bf16.msra.mxu0 %v8796_v12 }
 0x6d2   : > { %5889 = vmatprep.subr.bf16.mxu0 %v8797_v47 }
 0x6d5   : > { %5891 = vmatpush3.bf16.msra.mxu0 %v8798_v10 }
 0x6d6   : > { %5893 = vmatprep.subr.bf16.mxu0 %v8766_v30 }
 0x6d9   : > { %5895 = vmatpush3.bf16.msra.mxu0 %v8767_v35 }
 0x6da   : > { %5897 = vmatprep.subr.bf16.mxu0 %v8799_v18 }
 0x6dd   : > { %5899 = vmatpush3.bf16.msra.mxu0 %v8800_v22 }
 0x6de   : > { %5932 = vmatprep.subr.bf16.mxu0 %v8755_v0 }
 0x770   : > { %v4179_v62 = vpop.f32.mrb[10].mxu0 }
 0x771   : > { %v4180_v21 = vpop.f32.mrb[11].mxu0 }
 0x772   : > { %v7873_v14 = vadd.f32 %v4180_v21, %v4179_v62  ;;  %v8802_v62 = vld [vmem:[#allocation21_spill] sm:$0xff] }
 0x793   : > { %v4231_v16 = vpop.f32.mrb[12].mxu0 }
 0x794   : > { %v4232_v12 = vpop.f32.mrb[13].mxu0 }
 0x795   : > { %v4233_v58 = vadd.f32 %v4232_v12, %v4231_v16 }
 0x797   : > { %v1473_v47 = vadd.f32 %v4233_v58, %v8770_v55  ;;  %v8803_v58 = vld [vmem:[#allocation22_spill] sm:$0xff] }
 0x799   : > { %6764 = vtanh.f32 %v1473_v47 }
 0x7a3   : > { %v7876_v10 = vpop.eup %6764 }
 0x7a4   : > { %1541 = vmatprep.mubr.f32.mxu1 %v7876_v10 }
 0x7a5   : > { %1542 = vmatmul.mubr.f32.vlgmr.msra.gmra.mrb[12].mxu1 %v7777_v32 }
 0x7a6   : > { %5903 = vmatpush3.bf16.msra.mxu1 %v8771_v50 }
 0x7a7   : > { %5905 = vmatprep.subr.bf16.mxu1 %v8772_v54 }
 0x7aa   : > { %5907 = vmatpush3.bf16.msra.mxu1 %v7551_v13 }
 0x7ab   : > { %5909 = vmatprep.subr.bf16.mxu1 %v7554_v44 }
 0x7ae   : > { %5911 = vmatpush3.bf16.msra.mxu1 %v7563_v28 }
 0x7af   : > { %5913 = vmatprep.subr.bf16.mxu1 %v7617_v41 }
 0x7b2   : > { %5915 = vmatpush3.bf16.msra.mxu1 %v7625_v23 }
 0x7b3   : > { %5917 = vmatprep.subr.bf16.mxu1 %v7635_v15 }
 0x7b6   : > { %5919 = vmatpush3.bf16.msra.mxu1 %v7643_v4 }
 0x7b7   : > { %5921 = vmatprep.subr.bf16.mxu1 %v7656_v61 }
 0x7ba   : > { %5923 = vmatpush3.bf16.msra.mxu1 %v7667_v49 }
 0x7bb   : > { %5925 = vmatprep.subr.bf16.mxu1 %v7669_v40 }
 0x7be   : > { %5927 = vmatpush3.bf16.msra.mxu1 %v7685_v59 }
 0x7bf   : > { %5929 = vmatprep.subr.bf16.mxu1 %v7688_v8 }
 0x7c2   : > { %5931 = vmatpush3.bf16.msra.mxu1 %v7697_v20 }
 0x7c3   : > { %5957 = vmatprep.subr.bf16.mxu1 %v7016_v24 }
 0x878   : > { %v4266_v12 = vpop.f32.mrb[12].mxu1 }
 0x879   : > { %v4267_v16 = vpop.f32.mrb[13].mxu1 }
 0x87a   : > { %v4268_v21 = vadd.f32 %v4267_v16, %v4266_v12  ;;  %v8804_v12 = vld [vmem:[#allocation23_spill] sm:$0xff]  ;;  %v8805_v16 = vld [vmem:[#allocation25_spill] sm:$0xff] }
 0x87c   : > { %v1544_v47 = vadd.f32 %v4268_v21, %v7570_v45  ;;  %v8806_v21 = vld [vmem:[#allocation28_spill] sm:$0xff] }
 0x87e   : > { %6766 = vtanh.f32 %v1544_v47  ;;  %v8807_v47 = vld [vmem:[#allocation29_spill] sm:$0xff] }
 0x888   : > { %v7897_v32 = vpop.eup %6766 }
 0x889   : > { %1612 = vmatprep.mubr.f32.mxu0 %v7897_v32 }
 0x88a   : > { %1613 = vmatmul.mubr.f32.vlgmr.msra.gmra.mrb[14].mxu0 %v7825_v46  ;;  %v8801_v46 = vrot.slane %v7851_v5, 4  ;;  %v8808_v5 = vld [vmem:[#allocation30_spill] sm:$0xff] }
 0x88b   : > { %5934 = vmatpush3.bf16.msra.mxu0 %v6969_v6  ;;  %5290 = vmatprep.mubr.msk.f32.mxu0 %vm6876_vm0, %v8759_v25 }
 0x88c   : > { %5935 = vmatprep.subr.bf16.mxu0 %v8755_v0 }
 0x88f   : > { %5937 = vmatpush3.bf16.msra.mxu0 %v6977_v9 }
 0x890   : > { %5938 = vmatprep.subr.bf16.mxu0 %v8755_v0 }
 0x893   : > { %5940 = vmatpush3.bf16.msra.mxu0 %v7000_v19 }
 0x894   : > { %5941 = vmatprep.subr.bf16.mxu0 %v8755_v0 }
 0x897   : > { %5943 = vmatpush3.bf16.msra.mxu0 %v7031_v29 }
 0x898   : > { %5944 = vmatprep.subr.bf16.mxu0 %v8755_v0 }
 0x89b   : > { %5946 = vmatpush3.bf16.msra.mxu0 %v7059_v39 }
 0x89c   : > { %5947 = vmatprep.subr.bf16.mxu0 %v8755_v0 }
 0x89f   : > { %5949 = vmatpush3.bf16.msra.mxu0 %v7088_v48 }
 0x8a0   : > { %5950 = vmatprep.subr.bf16.mxu0 %v8755_v0 }
 0x8a3   : > { %5952 = vmatpush3.bf16.msra.mxu0 %v7104_v53 }
 0x8a4   : > { %5953 = vmatprep.subr.bf16.mxu0 %v8755_v0 }
 0x8a7   : > { %5955 = vmatpush3.bf16.msra.mxu0 %v7116_v56 }
 0x8a8   : > { %5989 = vmatprep.subr.bf16.mxu0 %v7210_v31 }
 0x8aa   : > { %5291 = vmatmul.mubr.f32.vlgmr.msra.gmra.mrb[16].mxu0 %v8801_v46  ;;  %v8809_v46 = vld [vmem:[#allocation31_spill] sm:$0xff] }
 0x8ab   : > { %5991 = vmatpush3.bf16.msra.mxu0 %v7221_v37  ;;  %v8810_v37 = vld [vmem:[#allocation32_spill] sm:$0xff] }
 0x8ac   : > { %5993 = vmatprep.subr.bf16.mxu0 %v7223_v38 }
 0x8af   : > { %5995 = vmatpush3.bf16.msra.mxu0 %v8802_v62  ;;  %v8811_v62 = vld [vmem:[#allocation34_spill] sm:$0xff] }
 0x8b0   : > { %5997 = vmatprep.subr.bf16.mxu0 %v8803_v58  ;;  %v8812_v58 = vld [vmem:[#allocation35_spill] sm:$0xff] }
 0x8b3   : > { %5999 = vmatpush3.bf16.msra.mxu0 %v8804_v12 }
 0x8b4   : > { %6001 = vmatprep.subr.bf16.mxu0 %v8774_v36 }
 0x8b7   : > { %6003 = vmatpush3.bf16.msra.mxu0 %v8805_v16 }
 0x8b8   : > { %6005 = vmatprep.subr.bf16.mxu0 %v8806_v21 }
 0x8bb   : > { %6007 = vmatpush3.bf16.msra.mxu0 %v8807_v47  ;;  %v1321_v47 = vadd.f32 %v7873_v14, %v7820_v26 }
 0x8bc   : > { %6009 = vmatprep.subr.bf16.mxu0 %v8808_v5 }
 0x8bf   : > { %6011 = vmatpush3.bf16.msra.mxu0 %v8809_v46 }
 0x8c0   : > { %6013 = vmatprep.subr.bf16.mxu0 %v8810_v37 }
 0x8c3   : > { %6015 = vmatpush3.bf16.msra.mxu0 %v8781_v27 }
 0x8c4   : > { %6017 = vmatprep.subr.bf16.mxu0 %v8811_v62 }
 0x8c7   : > { %6019 = vmatpush3.bf16.msra.mxu0 %v8812_v58 }
 0x8c8   : > { %6053 = vmatprep.subr.bf16.mxu0 %v8784_v57 }
 0x95d   : > { %v4301_v36 = vpop.f32.mrb[14].mxu0 }
 0x95e   : > { %v4302_v16 = vpop.f32.mrb[15].mxu0 }
 0x95f   : > { %v4303_v12 = vadd.f32 %v4302_v16, %v4301_v36 }
 0x961   : > { %v1615_v5 = vadd.f32 %v4303_v12, %v7705_v11  ;;  %v8676_v12 = vrot.slane %v7280_v3, 2  ;;  %v8823_v3 = vld [vmem:[#allocation41_spill] sm:$0xff] }
 0x963   : > { %6768 = vtanh.f32 %v1615_v5 }
 0x964   : > { %6770 = vtanh.f32 %v1321_v47 }
 0x96d   : > { %v7940_v46 = vpop.eup %6768 }
 0x96e   : > { %v7942_v37 = vpop.eup %6770  ;;  %1683 = vmatprep.mubr.f32.mxu1 %v7940_v46 }
 0x96f   : > { %8813 = vst [vmem:[#allocation44_spill] sm:$0xff] %v7942_v37  ;;  %1684 = vmatmul.mubr.f32.vlgmr.msra.gmra.mrb[14].mxu1 %v7942_v37  ;;  %v8814_v37 = vld [vmem:[#allocation15_spill] sm:$0xff] }
 0x970   : > { %5959 = vmatpush3.bf16.msra.mxu1 %v7041_v33 }
 0x971   : > { %5961 = vmatprep.subr.bf16.mxu1 %v7044_v34 }
 0x974   : > { %5963 = vmatpush3.bf16.msra.mxu1 %v7070_v42 }
 0x975   : > { %5965 = vmatprep.subr.bf16.mxu1 %v7073_v43 }
 0x978   : > { %5967 = vmatpush3.bf16.msra.mxu1 %v7098_v51 }
 0x979   : > { %5969 = vmatprep.subr.bf16.mxu1 %v7101_v52  ;;  %v8816_v52 = vld [vmem:[#allocation17_spill] sm:$0xff] }
 0x97c   : > { %5971 = vmatpush3.bf16.msra.mxu1 %v7126_v60  ;;  %v8815_v60 = vld [vmem:[#allocation16_spill] sm:$0xff] }
 0x97d   : > { %v1756_v36 = vpop.f32.mrb[16].mxu0  ;;  %5973 = vmatprep.subr.bf16.mxu1 %v7135_v63  ;;  %v8818_v63 = vld [vmem:[#allocation19_spill] sm:$0xff] }
 0x97e   : > { %v1761_v14 = vrot.slane %v1756_v36, 2  ;;  %v5292_v16 = vpop.f32.mrb[17].mxu0  ;;  %v8817_v36 = vld [vmem:[#allocation18_spill] sm:$0xff] }
 0x97f   : > { %v8819_v16 = vld [vmem:[#allocation36_spill] sm:$0xff] }
 0x980   : > { %v1763_v47 = vadd.f32 %v1761_v14, %v7275_v1  ;;  %5975 = vmatpush3.bf16.msra.mxu1 %v7143_v2 }
 0x981   : > { %5977 = vmatprep.subr.bf16.mxu1 %v7153_v7 }
 0x982   : > { %v1766_v5 = vadd.f32 %v8676_v12, %v1763_v47  ;;  %v8820_v47 = vld [vmem:[#allocation38_spill] sm:$0xff]  ;;  %v8822_v12 = vld [vmem:[#allocation40_spill] sm:$0xff] }
 0x984   : > { %6772 = vtanh.f32 %v1766_v5  ;;  %5979 = vmatpush3.bf16.msra.mxu1 %v8814_v37  ;;  %v8821_v5 = vld [vmem:[#allocation39_spill] sm:$0xff] }
 0x985   : > { %5981 = vmatprep.subr.bf16.mxu1 %v8815_v60 }
 0x988   : > { %5983 = vmatpush3.bf16.msra.mxu1 %v8816_v52  ;;  %v8827_v52 = vld [vmem:[#allocation46_spill] sm:$0xff] }
 0x989   : > { %5985 = vmatprep.subr.bf16.mxu1 %v8817_v36  ;;  %v8826_v36 = vld [vmem:[#allocation45_spill] sm:$0xff] }
 0x98c   : > { %5987 = vmatpush3.bf16.msra.mxu1 %v8818_v63  ;;  %v8825_v63 = vld [vmem:[#allocation43_spill] sm:$0xff] }
 0x98d   : > { %6021 = vmatprep.subr.bf16.mxu1 %v8819_v16  ;;  %v8824_v16 = vld [vmem:[#allocation42_spill] sm:$0xff] }
 0x98e   : > { %v7966_v1 = vpop.eup %6772 }
 0x98f   : > { %v8679_v14 = vrot.slane %v7966_v1, 6 }
 0x991   : > { %1835 = vmatprep.mubr.f32.mxu1 %v8679_v14  ;;  %v8828_v14 = vld [vmem:[#allocation47_spill] sm:$0xff] }
 0x992   : > { %1836 = vmatmul.mubr.f32.vlgmr.msra.gmra.mrb[16].mxu1 %v7876_v10  ;;  %v8829_v10 = vld [vmem:[#allocation48_spill] sm:$0xff] }
 0x993   : > { %6023 = vmatpush3.bf16.msra.mxu1 %v8788_v17 }
 0x994   : > { %6025 = vmatprep.subr.bf16.mxu1 %v8820_v47 }
 0x997   : > { %6027 = vmatpush3.bf16.msra.mxu1 %v8821_v5 }
 0x998   : > { %6029 = vmatprep.subr.bf16.mxu1 %v8822_v12 }
 0x99b   : > { %6031 = vmatpush3.bf16.msra.mxu1 %v8823_v3 }
 0x99c   : > { %6033 = vmatprep.subr.bf16.mxu1 %v8824_v16 }
 0x99f   : > { %6035 = vmatpush3.bf16.msra.mxu1 %v8825_v63 }
 0x9a0   : > { %6037 = vmatprep.subr.bf16.mxu1 %v8826_v36 }
 0x9a3   : > { %6039 = vmatpush3.bf16.msra.mxu1 %v8827_v52 }
 0x9a4   : > { %6041 = vmatprep.subr.bf16.mxu1 %v8828_v14 }
 0x9a7   : > { %6043 = vmatpush3.bf16.msra.mxu1 %v8829_v10 }
 0x9a8   : > { %6045 = vmatprep.subr.bf16.mxu1 %v8766_v30 }
 0x9ab   : > { %6047 = vmatpush3.bf16.msra.mxu1 %v8767_v35 }
 0x9ac   : > { %6049 = vmatprep.subr.bf16.mxu1 %v8799_v18 }
 0x9af   : > { %6051 = vmatpush3.bf16.msra.mxu1 %v8800_v22 }
 0x9b0   : > { %6084 = vmatprep.subr.bf16.mxu1 %v8755_v0 }
 0xa42   : > { %v4336_v16 = vpop.f32.mrb[14].mxu1 }
 0xa43   : > { %v4337_v63 = vpop.f32.mrb[15].mxu1 }
 0xa44   : > { %v7988_v3 = vadd.f32 %v4337_v63, %v4336_v16  ;;  %v8833_v16 = vld [vmem:[#allocation22_spill] sm:$0xff] }
 0xa65   : > { %v4388_v36 = vpop.f32.mrb[16].mxu1 }
 0xa66   : > { %v4389_v52 = vpop.f32.mrb[17].mxu1 }
 0xa67   : > { %v4390_v12 = vadd.f32 %v4389_v52, %v4388_v36  ;;  %v8832_v36 = vld [vmem:[#allocation21_spill] sm:$0xff] }
 0xa69   : > { %v1838_v14 = vadd.f32 %v4390_v12, %v8770_v55 }
 0xa6b   : > { %6774 = vtanh.f32 %v1838_v14  ;;  %v8834_v14 = vld [vmem:[#allocation23_spill] sm:$0xff] }
 0xa75   : > { %v7991_v10 = vpop.eup %6774 }
 0xa76   : > { %1906 = vmatprep.mubr.f32.mxu0 %v7991_v10 }
 0xa77   : > { %1907 = vmatmul.mubr.f32.vlgmr.msra.gmra.mrb[18].mxu0 %v7897_v32 }
 0xa78   : > { %6055 = vmatpush3.bf16.msra.mxu0 %v8771_v50 }
 0xa79   : > { %6057 = vmatprep.subr.bf16.mxu0 %v8772_v54 }
 0xa7c   : > { %6059 = vmatpush3.bf16.msra.mxu0 %v7551_v13 }
 0xa7d   : > { %6061 = vmatprep.subr.bf16.mxu0 %v7554_v44 }
 0xa80   : > { %6063 = vmatpush3.bf16.msra.mxu0 %v7563_v28 }
 0xa81   : > { %6065 = vmatprep.subr.bf16.mxu0 %v7617_v41 }
 0xa84   : > { %6067 = vmatpush3.bf16.msra.mxu0 %v7625_v23 }
 0xa85   : > { %6069 = vmatprep.subr.bf16.mxu0 %v7635_v15 }
 0xa88   : > { %6071 = vmatpush3.bf16.msra.mxu0 %v7643_v4 }
 0xa89   : > { %6073 = vmatprep.subr.bf16.mxu0 %v7656_v61 }
 0xa8c   : > { %6075 = vmatpush3.bf16.msra.mxu0 %v7667_v49 }
 0xa8d   : > { %6077 = vmatprep.subr.bf16.mxu0 %v7669_v40 }
 0xa90   : > { %6079 = vmatpush3.bf16.msra.mxu0 %v7685_v59 }
 0xa91   : > { %6081 = vmatprep.subr.bf16.mxu0 %v7688_v8 }
 0xa94   : > { %6083 = vmatpush3.bf16.msra.mxu0 %v7697_v20 }
 0xa95   : > { %6109 = vmatprep.subr.bf16.mxu0 %v7016_v24 }
 0xb4a   : > { %v4423_v52 = vpop.f32.mrb[18].mxu0 }
 0xb4b   : > { %v4424_v63 = vpop.f32.mrb[19].mxu0 }
 0xb4c   : > { %v4425_v55 = vadd.f32 %v4424_v63, %v4423_v52  ;;  %v8835_v52 = vld [vmem:[#allocation24_spill] sm:$0xff]  ;;  %v8836_v63 = vld [vmem:[#allocation25_spill] sm:$0xff] }
 0xb4e   : > { %v1909_v32 = vadd.f32 %v4425_v55, %v7570_v45  ;;  %v8830_v45 = vrot.slane %v7966_v1, 6  ;;  %v8837_v55 = vld [vmem:[#allocation29_spill] sm:$0xff]  ;;  %v8838_v1 = vld [vmem:[#allocation30_spill] sm:$0xff] }
 0xb50   : > { %6776 = vtanh.f32 %v1909_v32  ;;  %v8839_v32 = vld [vmem:[#allocation31_spill] sm:$0xff] }
 0xb5a   : > { %v8012_v12 = vpop.eup %6776 }
 0xb5b   : > { %1977 = vmatprep.mubr.f32.mxu1 %v8012_v12 }
 0xb5c   : > { %1978 = vmatmul.mubr.f32.vlgmr.msra.gmra.mrb[18].mxu1 %v7940_v46  ;;  %v8831_v46 = vld [vmem:[#allocation20_spill] sm:$0xff] }
 0xb5d   : > { %6086 = vmatpush3.bf16.msra.mxu1 %v6969_v6  ;;  %5325 = vmatprep.mubr.msk.f32.mxu1 %vm6876_vm0, %v8759_v25 }
 0xb5e   : > { %6087 = vmatprep.subr.bf16.mxu1 %v8755_v0 }
 0xb61   : > { %6089 = vmatpush3.bf16.msra.mxu1 %v6977_v9 }
 0xb62   : > { %6090 = vmatprep.subr.bf16.mxu1 %v8755_v0 }
 0xb65   : > { %6092 = vmatpush3.bf16.msra.mxu1 %v7000_v19 }
 0xb66   : > { %6093 = vmatprep.subr.bf16.mxu1 %v8755_v0 }
 0xb69   : > { %6095 = vmatpush3.bf16.msra.mxu1 %v7031_v29 }
 0xb6a   : > { %6096 = vmatprep.subr.bf16.mxu1 %v8755_v0 }
 0xb6d   : > { %6098 = vmatpush3.bf16.msra.mxu1 %v7059_v39 }
 0xb6e   : > { %6099 = vmatprep.subr.bf16.mxu1 %v8755_v0 }
 0xb71   : > { %6101 = vmatpush3.bf16.msra.mxu1 %v7088_v48 }
 0xb72   : > { %6102 = vmatprep.subr.bf16.mxu1 %v8755_v0 }
 0xb75   : > { %6104 = vmatpush3.bf16.msra.mxu1 %v7104_v53 }
 0xb76   : > { %6105 = vmatprep.subr.bf16.mxu1 %v8755_v0 }
 0xb79   : > { %6107 = vmatpush3.bf16.msra.mxu1 %v7116_v56 }
 0xb7a   : > { %6141 = vmatprep.subr.bf16.mxu1 %v7210_v31 }
 0xb7c   : > { %5326 = vmatmul.mubr.f32.vlgmr.msra.gmra.mrb[20].mxu1 %v8830_v45  ;;  %v8840_v45 = vld [vmem:[#allocation32_spill] sm:$0xff] }
 0xb7d   : > { %6143 = vmatpush3.bf16.msra.mxu1 %v8831_v46 }
 0xb7e   : > { %6145 = vmatprep.subr.bf16.mxu1 %v7223_v38 }
 0xb81   : > { %6147 = vmatpush3.bf16.msra.mxu1 %v8832_v36 }
 0xb82   : > { %6149 = vmatprep.subr.bf16.mxu1 %v8833_v16 }
 0xb85   : > { %6151 = vmatpush3.bf16.msra.mxu1 %v8834_v14 }
 0xb86   : > { %6153 = vmatprep.subr.bf16.mxu1 %v8835_v52 }
 0xb89   : > { %6155 = vmatpush3.bf16.msra.mxu1 %v8836_v63 }
 0xb8a   : > { %6157 = vmatprep.subr.bf16.mxu1 %v8806_v21 }
 0xb8d   : > { %6159 = vmatpush3.bf16.msra.mxu1 %v8837_v55  ;;  %v1686_v55 = vadd.f32 %v7988_v3, %v7820_v26  ;;  %v8842_v3 = vld [vmem:[#allocation11_spill] sm:$0xff] }
 0xb8e   : > { %6161 = vmatprep.subr.bf16.mxu1 %v8838_v1 }
 0xb91   : > { %6163 = vmatpush3.bf16.msra.mxu1 %v8839_v32 }
 0xb92   : > { %6165 = vmatprep.subr.bf16.mxu1 %v8840_v45 }
 0xb95   : > { %6167 = vmatpush3.bf16.msra.mxu1 %v8781_v27 }
 0xb96   : > { %6169 = vmatprep.subr.bf16.mxu1 %v8811_v62 }
 0xb99   : > { %6171 = vmatpush3.bf16.msra.mxu1 %v8812_v58 }
 0xb9a   : > { %6205 = vmatprep.subr.bf16.mxu1 %v8784_v57 }
 0xc2f   : > { %v4458_v52 = vpop.f32.mrb[18].mxu1 }
 0xc30   : > { %v4459_v63 = vpop.f32.mrb[19].mxu1 }
 0xc31   : > { %v4460_v14 = vadd.f32 %v4459_v63, %v4458_v52  ;;  %v8844_v63 = vld [vmem:[#allocation13_spill] sm:$0xff] }
 0xc33   : > { %v1980_v1 = vadd.f32 %v4460_v14, %v7705_v11  ;;  %v8843_v14 = vld [vmem:[#allocation12_spill] sm:$0xff] }
 0xc35   : > { %6778 = vtanh.f32 %v1980_v1 }
 0xc36   : > { %6780 = vtanh.f32 %v1686_v55  ;;  %v8845_v55 = vld [vmem:[#allocation26_spill] sm:$0xff] }
 0xc3f   : > { %v8055_v32 = vpop.eup %6778 }
 0xc40   : > { %v8057_v45 = vpop.eup %6780  ;;  %2048 = vmatprep.mubr.f32.mxu0 %v8055_v32 }
 0xc41   : > { %8841 = vst [vmem:[#allocation54_spill] sm:$0xff] %v8057_v45  ;;  %2049 = vmatmul.mubr.f32.vlgmr.msra.gmra.mrb[20].mxu0 %v8057_v45 }
 0xc42   : > { %6111 = vmatpush3.bf16.msra.mxu0 %v7041_v33 }
 0xc43   : > { %6113 = vmatprep.subr.bf16.mxu0 %v7044_v34  ;;  %v6832_v34 = vld [vmem:[%s8575_s5] sm:$0x3] }
 0xc46   : > { %6115 = vmatpush3.bf16.msra.mxu0 %v7070_v42 }
 0xc47   : > { %6117 = vmatprep.subr.bf16.mxu0 %v7073_v43 }
 0xc4a   : > { %6119 = vmatpush3.bf16.msra.mxu0 %v7098_v51 }
 0xc4b   : > { %6121 = vmatprep.subr.bf16.mxu0 %v8842_v3 }
 0xc4e   : > { %6123 = vmatpush3.bf16.msra.mxu0 %v8843_v14  ;;  %v8846_v14 = vld [vmem:[#allocation17_spill] sm:$0xff] }
 0xc4f   : > { %v2121_v52 = vpop.f32.mrb[20].mxu1  ;;  %6125 = vmatprep.subr.bf16.mxu0 %v8844_v63  ;;  %v8847_v63 = vld [vmem:[#allocation18_spill] sm:$0xff] }
 0xc50   : > { %v2125_v1 = vadd.f32 %v8845_v55, %v2121_v52  ;;  %v5327_v45 = vpop.f32.mrb[21].mxu1 }
 0xc51   : > { %v8848_v45 = vld [vmem:[#allocation19_spill] sm:$0xff] }
 0xc52   : > { %v2126_v33 = vadd.f32 %v6832_v34, %v2125_v1  ;;  %6127 = vmatpush3.bf16.msra.mxu0 %v7143_v2  ;;  %v8849_v34 = vld [vmem:[#allocation36_spill] sm:$0xff]  ;;  %v8851_v1 = vld [vmem:[#allocation41_spill] sm:$0xff] }
 0xc53   : > { %6129 = vmatprep.subr.bf16.mxu0 %v7153_v7 }
 0xc54   : > { %6782 = vtanh.f32 %v2126_v33  ;;  %v8850_v33 = vld [vmem:[#allocation40_spill] sm:$0xff] }
 0xc56   : > { %6131 = vmatpush3.bf16.msra.mxu0 %v8814_v37 }
 0xc57   : > { %6133 = vmatprep.subr.bf16.mxu0 %v8815_v60  ;;  %v8855_v60 = vld [vmem:[#allocation46_spill] sm:$0xff] }
 0xc5a   : > { %6135 = vmatpush3.bf16.msra.mxu0 %v8846_v14  ;;  %v8853_v14 = vld [vmem:[#allocation43_spill] sm:$0xff] }
 0xc5b   : > { %6137 = vmatprep.subr.bf16.mxu0 %v8847_v63  ;;  %v8852_v63 = vld [vmem:[#allocation42_spill] sm:$0xff] }
 0xc5e   : > { %v8079_v52 = vpop.eup %6782  ;;  %6139 = vmatpush3.bf16.msra.mxu0 %v8848_v45  ;;  %v8854_v45 = vld [vmem:[#allocation45_spill] sm:$0xff] }
 0xc5f   : > { %2192 = vmatprep.mubr.f32.mxu0 %v8079_v52  ;;  %6173 = vmatprep.subr.bf16.mxu0 %v8849_v34  ;;  %v8856_v34 = vld [vmem:[#allocation47_spill] sm:$0xff] }
 0xc61   : > { %2193 = vmatmul.mubr.f32.vlgmr.msra.gmra.mrb[22].mxu0 %v7991_v10  ;;  %v8857_v10 = vld [vmem:[#allocation48_spill] sm:$0xff] }
 0xc62   : > { %6175 = vmatpush3.bf16.msra.mxu0 %v8788_v17 }
 0xc63   : > { %6177 = vmatprep.subr.bf16.mxu0 %v8820_v47 }
 0xc66   : > { %6179 = vmatpush3.bf16.msra.mxu0 %v8821_v5 }
 0xc67   : > { %6181 = vmatprep.subr.bf16.mxu0 %v8850_v33 }
 0xc6a   : > { %6183 = vmatpush3.bf16.msra.mxu0 %v8851_v1 }
 0xc6b   : > { %6185 = vmatprep.subr.bf16.mxu0 %v8852_v63 }
 0xc6e   : > { %6187 = vmatpush3.bf16.msra.mxu0 %v8853_v14 }
 0xc6f   : > { %6189 = vmatprep.subr.bf16.mxu0 %v8854_v45 }
 0xc72   : > { %6191 = vmatpush3.bf16.msra.mxu0 %v8855_v60 }
 0xc73   : > { %6193 = vmatprep.subr.bf16.mxu0 %v8856_v34 }
 0xc76   : > { %6195 = vmatpush3.bf16.msra.mxu0 %v8857_v10  ;;  %v8106_v10 = vld [vmem:[%s8575_s5 + $0x2] sm:$0x3] }
 0xc77   : > { %6197 = vmatprep.subr.bf16.mxu0 %v8766_v30 }
 0xc7a   : > { %6199 = vmatpush3.bf16.msra.mxu0 %v8767_v35 }
 0xc7b   : > { %6201 = vmatprep.subr.bf16.mxu0 %v8799_v18 }
 0xc7e   : > { %6203 = vmatpush3.bf16.msra.mxu0 %v8800_v22 }
 0xc7f   : > { %6236 = vmatprep.subr.bf16.mxu0 %v8755_v0 }
 0xd14   : > { %v4493_v63 = vpop.f32.mrb[20].mxu0 }
 0xd15   : > { %v4494_v14 = vpop.f32.mrb[21].mxu0 }
 0xd16   : > { %v8101_v1 = vadd.f32 %v4494_v14, %v4493_v63  ;;  %v8132_v14 = vld [vmem:[%s8575_s5 + $0x4] sm:$0x3] }
 0xd34   : > { %v4545_v45 = vpop.f32.mrb[22].mxu0 }
 0xd35   : > { %v4546_v60 = vpop.f32.mrb[23].mxu0 }
 0xd36   : > { %v4547_v33 = vadd.f32 %v4546_v60, %v4545_v45 }
 0xd38   : > { %v2195_v35 = vadd.f32 %v8106_v10, %v4547_v33  ;;  %v8859_v33 = vld [vmem:[#allocation24_spill] sm:$0xff] }
 0xd3a   : > { %6784 = vtanh.f32 %v2195_v35 }
 0xd44   : > { %v8109_v18 = vpop.eup %6784 }
 0xd45   : > { %2263 = vmatprep.mubr.f32.mxu1 %v8109_v18 }
 0xd46   : > { %2264 = vmatmul.mubr.f32.vlgmr.msra.gmra.mrb[22].mxu1 %v8012_v12 }
 0xd47   : > { %6207 = vmatpush3.bf16.msra.mxu1 %v8771_v50 }
 0xd48   : > { %6209 = vmatprep.subr.bf16.mxu1 %v8772_v54 }
 0xd4b   : > { %6211 = vmatpush3.bf16.msra.mxu1 %v7551_v13 }
 0xd4c   : > { %6213 = vmatprep.subr.bf16.mxu1 %v7554_v44 }
 0xd4f   : > { %6215 = vmatpush3.bf16.msra.mxu1 %v7563_v28 }
 0xd50   : > { %6217 = vmatprep.subr.bf16.mxu1 %v7617_v41 }
 0xd53   : > { %6219 = vmatpush3.bf16.msra.mxu1 %v7625_v23 }
 0xd54   : > { %6221 = vmatprep.subr.bf16.mxu1 %v7635_v15 }
 0xd57   : > { %6223 = vmatpush3.bf16.msra.mxu1 %v7643_v4 }
 0xd58   : > { %6225 = vmatprep.subr.bf16.mxu1 %v7656_v61 }
 0xd5b   : > { %6227 = vmatpush3.bf16.msra.mxu1 %v7667_v49 }
 0xd5c   : > { %6229 = vmatprep.subr.bf16.mxu1 %v7669_v40 }
 0xd5f   : > { %6231 = vmatpush3.bf16.msra.mxu1 %v7685_v59 }
 0xd60   : > { %6233 = vmatprep.subr.bf16.mxu1 %v7688_v8 }
 0xd63   : > { %6235 = vmatpush3.bf16.msra.mxu1 %v7697_v20 }
 0xd64   : > { %6261 = vmatprep.subr.bf16.mxu1 %v7016_v24 }
 0xe19   : > { %v4580_v60 = vpop.f32.mrb[22].mxu1 }
 0xe1a   : > { %v4581_v35 = vpop.f32.mrb[23].mxu1 }
 0xe1b   : > { %v4582_v12 = vadd.f32 %v4581_v35, %v4580_v60  ;;  %v8860_v60 = vld [vmem:[#allocation25_spill] sm:$0xff] }
 0xe1c   : > { %v8861_v35 = vld [vmem:[#allocation29_spill] sm:$0xff] }
 0xe1d   : > { %v2266_v63 = vadd.f32 %v8132_v14, %v4582_v12  ;;  %v8862_v12 = vld [vmem:[#allocation30_spill] sm:$0xff] }
 0xe1f   : > { %6786 = vtanh.f32 %v2266_v63  ;;  %v8864_v63 = vld [vmem:[#allocation32_spill] sm:$0xff] }
 0xe29   : > { %v8135_v45 = vpop.eup %6786 }
 0xe2a   : > { %2334 = vmatprep.mubr.f32.mxu0 %v8135_v45 }
 0xe2b   : > { %2335 = vmatmul.mubr.f32.vlgmr.msra.gmra.mrb[24].mxu0 %v8055_v32  ;;  %v8858_v32 = vld [vmem:[#allocation23_spill] sm:$0xff] }
 0xe2c   : > { %6238 = vmatpush3.bf16.msra.mxu0 %v6969_v6  ;;  %5360 = vmatprep.mubr.msk.f32.mxu0 %vm6876_vm0, %v8759_v25 }
 0xe2d   : > { %6239 = vmatprep.subr.bf16.mxu0 %v8755_v0 }
 0xe30   : > { %6241 = vmatpush3.bf16.msra.mxu0 %v6977_v9 }
 0xe31   : > { %6242 = vmatprep.subr.bf16.mxu0 %v8755_v0 }
 0xe34   : > { %6244 = vmatpush3.bf16.msra.mxu0 %v7000_v19 }
 0xe35   : > { %6245 = vmatprep.subr.bf16.mxu0 %v8755_v0 }
 0xe38   : > { %6247 = vmatpush3.bf16.msra.mxu0 %v7031_v29 }
 0xe39   : > { %6248 = vmatprep.subr.bf16.mxu0 %v8755_v0 }
 0xe3c   : > { %6250 = vmatpush3.bf16.msra.mxu0 %v7059_v39 }
 0xe3d   : > { %6251 = vmatprep.subr.bf16.mxu0 %v8755_v0 }
 0xe40   : > { %6253 = vmatpush3.bf16.msra.mxu0 %v7088_v48 }
 0xe41   : > { %6254 = vmatprep.subr.bf16.mxu0 %v8755_v0 }
 0xe44   : > { %6256 = vmatpush3.bf16.msra.mxu0 %v7104_v53 }
 0xe45   : > { %6257 = vmatprep.subr.bf16.mxu0 %v8755_v0 }
 0xe48   : > { %6259 = vmatpush3.bf16.msra.mxu0 %v7116_v56 }
 0xe49   : > { %6293 = vmatprep.subr.bf16.mxu0 %v7210_v31 }
 0xe4b   : > { %5361 = vmatmul.mubr.f32.vlgmr.msra.gmra.mrb[26].mxu0 %v8079_v52  ;;  %v8863_v52 = vld [vmem:[#allocation31_spill] sm:$0xff] }
 0xe4c   : > { %6295 = vmatpush3.bf16.msra.mxu0 %v8831_v46 }
 0xe4d   : > { %6297 = vmatprep.subr.bf16.mxu0 %v7223_v38 }
 0xe50   : > { %6299 = vmatpush3.bf16.msra.mxu0 %v8832_v36 }
 0xe51   : > { %6301 = vmatprep.subr.bf16.mxu0 %v8833_v16 }
 0xe54   : > { %6303 = vmatpush3.bf16.msra.mxu0 %v8858_v32 }
 0xe55   : > { %6305 = vmatprep.subr.bf16.mxu0 %v8859_v33 }
 0xe58   : > { %6307 = vmatpush3.bf16.msra.mxu0 %v8860_v60 }
 0xe59   : > { %6309 = vmatprep.subr.bf16.mxu0 %v8806_v21 }
 0xe5c   : > { %6311 = vmatpush3.bf16.msra.mxu0 %v8861_v35  ;;  %v2051_v35 = vadd.f32 %v8101_v1, %v7820_v26 }
 0xe5d   : > { %6313 = vmatprep.subr.bf16.mxu0 %v8862_v12 }
 0xe60   : > { %6315 = vmatpush3.bf16.msra.mxu0 %v8863_v52 }
 0xe61   : > { %6317 = vmatprep.subr.bf16.mxu0 %v8864_v63 }
 0xe64   : > { %6319 = vmatpush3.bf16.msra.mxu0 %v8781_v27 }
 0xe65   : > { %6321 = vmatprep.subr.bf16.mxu0 %v8811_v62 }
 0xe68   : > { %6323 = vmatpush3.bf16.msra.mxu0 %v8812_v58  ;;  %v8866_v58 = vld [vmem:[#allocation6_spill] sm:$0xff] }
 0xe69   : > { %6357 = vmatprep.subr.bf16.mxu0 %v8784_v57  ;;  %v8867_v57 = vld [vmem:[#allocation7_spill] sm:$0xff] }
 0xefe   : > { %v4615_v33 = vpop.f32.mrb[24].mxu0 }
 0xeff   : > { %v4616_v60 = vpop.f32.mrb[25].mxu0 }
 0xf00   : > { %v4617_v32 = vadd.f32 %v4616_v60, %v4615_v33 }
 0xf02   : > { %v2337_v12 = vadd.f32 %v4617_v32, %v7705_v11  ;;  %v8868_v11 = vld [vmem:[#allocation12_spill] sm:$0xff]  ;;  %v8869_v32 = vld [vmem:[#allocation13_spill] sm:$0xff] }
 0xf04   : > { %6788 = vtanh.f32 %v2337_v12  ;;  %v8870_v12 = vld [vmem:[#allocation27_spill] sm:$0xff] }
 0xf05   : > { %6790 = vtanh.f32 %v2051_v35 }
 0xf0e   : > { %v8177_v52 = vpop.eup %6788 }
 0xf0f   : > { %v8179_v63 = vpop.eup %6790  ;;  %2405 = vmatprep.mubr.f32.mxu1 %v8177_v52 }
 0xf10   : > { %8865 = vst [vmem:[#allocation55_spill] sm:$0xff] %v8179_v63  ;;  %2406 = vmatmul.mubr.f32.vlgmr.msra.gmra.mrb[24].mxu1 %v8179_v63  ;;  %v8871_v63 = vrot.slane %v8870_v12, 6 }
 0xf11   : > { %6263 = vmatpush3.bf16.msra.mxu1 %v8866_v58 }
 0xf12   : > { %6265 = vmatprep.subr.bf16.mxu1 %v8867_v57 }
 0xf15   : > { %6267 = vmatpush3.bf16.msra.mxu1 %v7070_v42 }
 0xf16   : > { %6269 = vmatprep.subr.bf16.mxu1 %v7073_v43 }
 0xf19   : > { %6271 = vmatpush3.bf16.msra.mxu1 %v7098_v51  ;;  %v8874_v51 = vld [vmem:[#allocation18_spill] sm:$0xff] }
 0xf1a   : > { %6273 = vmatprep.subr.bf16.mxu1 %v8842_v3  ;;  %v8872_v3 = vld [vmem:[#allocation16_spill] sm:$0xff] }
 0xf1d   : > { %6275 = vmatpush3.bf16.msra.mxu1 %v8868_v11  ;;  %v8873_v11 = vld [vmem:[#allocation17_spill] sm:$0xff] }
 0xf1e   : > { %v2478_v1 = vpop.f32.mrb[26].mxu0  ;;  %6277 = vmatprep.subr.bf16.mxu1 %v8869_v32 }
 0xf1f   : > { %v2483_v33 = vrot.slane %v2478_v1, 6  ;;  %v5362_v60 = vpop.f32.mrb[27].mxu0  ;;  %v8875_v1 = vld [vmem:[#allocation19_spill] sm:$0xff] }
 0xf20   : > { %v8876_v60 = vld [vmem:[#allocation36_spill] sm:$0xff] }
 0xf21   : > { %v2485_v35 = vadd.f32 %v8845_v55, %v2483_v33  ;;  %6279 = vmatpush3.bf16.msra.mxu1 %v7143_v2 }
 0xf22   : > { %6281 = vmatprep.subr.bf16.mxu1 %v7153_v7 }
 0xf23   : > { %v2486_v43 = vadd.f32 %v2485_v35, %v8871_v63  ;;  %v8878_v63 = vld [vmem:[#allocation41_spill] sm:$0xff]  ;;  %v8879_v35 = vld [vmem:[#allocation42_spill] sm:$0xff] }
 0xf25   : > { %6792 = vtanh.f32 %v2486_v43  ;;  %6283 = vmatpush3.bf16.msra.mxu1 %v8814_v37  ;;  %v8877_v43 = vld [vmem:[#allocation40_spill] sm:$0xff] }
 0xf26   : > { %6285 = vmatprep.subr.bf16.mxu1 %v8872_v3 }
 0xf29   : > { %6287 = vmatpush3.bf16.msra.mxu1 %v8873_v11 }
 0xf2a   : > { %6289 = vmatprep.subr.bf16.mxu1 %v8874_v51  ;;  %v8882_v51 = vld [vmem:[#allocation46_spill] sm:$0xff] }
 0xf2d   : > { %6291 = vmatpush3.bf16.msra.mxu1 %v8875_v1  ;;  %v8881_v1 = vld [vmem:[#allocation45_spill] sm:$0xff] }
 0xf2e   : > { %6325 = vmatprep.subr.bf16.mxu1 %v8876_v60  ;;  %v8880_v60 = vld [vmem:[#allocation43_spill] sm:$0xff] }
 0xf2f   : > { %v8202_v33 = vpop.eup %6792 }
 0xf30   : > { %v8698_v7 = vrot.slane %v8202_v33, 2 }
 0xf32   : > { %2555 = vmatprep.mubr.f32.mxu1 %v8698_v7  ;;  %v8884_v7 = vld [vmem:[#allocation50_spill] sm:$0xff] }
 0xf33   : > { %2556 = vmatmul.mubr.f32.vlgmr.msra.gmra.mrb[26].mxu1 %v8109_v18  ;;  %v8883_v18 = vld [vmem:[#allocation48_spill] sm:$0xff] }
 0xf34   : > { %6327 = vmatpush3.bf16.msra.mxu1 %v8788_v17 }
 0xf35   : > { %6329 = vmatprep.subr.bf16.mxu1 %v8820_v47 }
 0xf38   : > { %6331 = vmatpush3.bf16.msra.mxu1 %v8821_v5  ;;  %v8885_v5 = vld [vmem:[#allocation51_spill] sm:$0xff] }
 0xf39   : > { %6333 = vmatprep.subr.bf16.mxu1 %v8877_v43 }
 0xf3c   : > { %6335 = vmatpush3.bf16.msra.mxu1 %v8878_v63 }
 0xf3d   : > { %6337 = vmatprep.subr.bf16.mxu1 %v8879_v35 }
 0xf40   : > { %6339 = vmatpush3.bf16.msra.mxu1 %v8880_v60 }
 0xf41   : > { %6341 = vmatprep.subr.bf16.mxu1 %v8881_v1 }
 0xf44   : > { %6343 = vmatpush3.bf16.msra.mxu1 %v8882_v51 }
 0xf45   : > { %6345 = vmatprep.subr.bf16.mxu1 %v8856_v34 }
 0xf48   : > { %6347 = vmatpush3.bf16.msra.mxu1 %v8883_v18 }
 0xf49   : > { %6349 = vmatprep.subr.bf16.mxu1 %v8766_v30 }
 0xf4c   : > { %6351 = vmatpush3.bf16.msra.mxu1 %v8884_v7 }
 0xf4d   : > { %6353 = vmatprep.subr.bf16.mxu1 %v8885_v5 }
 0xf50   : > { %6355 = vmatpush3.bf16.msra.mxu1 %v8800_v22 }
 0xf51   : > { %6388 = vmatprep.subr.bf16.mxu1 %v8755_v0 }
 0xfe3   : > { %v4650_v35 = vpop.f32.mrb[24].mxu1 }
 0xfe4   : > { %v4651_v60 = vpop.f32.mrb[25].mxu1 }
 0xfe5   : > { %v8224_v63 = vadd.f32 %v4651_v60, %v4650_v35  ;;  %v8888_v35 = vld [vmem:[#allocation24_spill] sm:$0xff] }
0x1006   : > { %v4702_v1 = vpop.f32.mrb[26].mxu1 }
0x1007   : > { %v4703_v51 = vpop.f32.mrb[27].mxu1 }
0x1008   : > { %v4704_v43 = vadd.f32 %v4703_v51, %v4702_v1 }
0x100a   : > { %v2558_v34 = vadd.f32 %v8106_v10, %v4704_v43  ;;  %v8887_v43 = vld [vmem:[#allocation23_spill] sm:$0xff] }
0x100c   : > { %6794 = vtanh.f32 %v2558_v34 }
0x1016   : > { %v8227_v18 = vpop.eup %6794 }
0x1017   : > { %2626 = vmatprep.mubr.f32.mxu0 %v8227_v18 }
0x1018   : > { %2627 = vmatmul.mubr.f32.vlgmr.msra.gmra.mrb[28].mxu0 %v8135_v45 }
0x1019   : > { %6359 = vmatpush3.bf16.msra.mxu0 %v8771_v50 }
0x101a   : > { %6361 = vmatprep.subr.bf16.mxu0 %v8772_v54 }
0x101d   : > { %6363 = vmatpush3.bf16.msra.mxu0 %v7551_v13 }
0x101e   : > { %6365 = vmatprep.subr.bf16.mxu0 %v7554_v44 }
0x1021   : > { %6367 = vmatpush3.bf16.msra.mxu0 %v7563_v28 }
0x1022   : > { %6369 = vmatprep.subr.bf16.mxu0 %v7617_v41 }
0x1025   : > { %6371 = vmatpush3.bf16.msra.mxu0 %v7625_v23 }
0x1026   : > { %6373 = vmatprep.subr.bf16.mxu0 %v7635_v15 }
0x1029   : > { %6375 = vmatpush3.bf16.msra.mxu0 %v7643_v4 }
0x102a   : > { %6377 = vmatprep.subr.bf16.mxu0 %v7656_v61 }
0x102d   : > { %6379 = vmatpush3.bf16.msra.mxu0 %v7667_v49 }
0x102e   : > { %6381 = vmatprep.subr.bf16.mxu0 %v7669_v40 }
0x1031   : > { %6383 = vmatpush3.bf16.msra.mxu0 %v7685_v59 }
0x1032   : > { %6385 = vmatprep.subr.bf16.mxu0 %v7688_v8 }
0x1035   : > { %6387 = vmatpush3.bf16.msra.mxu0 %v7697_v20 }
0x1036   : > { %6413 = vmatprep.subr.bf16.mxu0 %v7016_v24 }
0x10eb   : > { %v4737_v51 = vpop.f32.mrb[28].mxu0 }
0x10ec   : > { %v4738_v34 = vpop.f32.mrb[29].mxu0 }
0x10ed   : > { %v4739_v45 = vadd.f32 %v4738_v34, %v4737_v51  ;;  %v8889_v51 = vld [vmem:[#allocation25_spill] sm:$0xff] }
0x10ee   : > { %v8890_v34 = vld [vmem:[#allocation29_spill] sm:$0xff] }
0x10ef   : > { %v2629_v1 = vadd.f32 %v8132_v14, %v4739_v45  ;;  %v8892_v45 = vld [vmem:[#allocation31_spill] sm:$0xff] }
0x10f1   : > { %6796 = vtanh.f32 %v2629_v1  ;;  %v8893_v1 = vld [vmem:[#allocation32_spill] sm:$0xff] }
0x10fb   : > { %v8248_v60 = vpop.eup %6796 }
0x10fc   : > { %2697 = vmatprep.mubr.f32.mxu1 %v8248_v60 }
0x10fd   : > { %2698 = vmatmul.mubr.f32.vlgmr.msra.gmra.mrb[28].mxu1 %v8177_v52  ;;  %v8886_v52 = vrot.slane %v8202_v33, 2  ;;  %v8891_v33 = vld [vmem:[#allocation30_spill] sm:$0xff] }
0x10fe   : > { %6390 = vmatpush3.bf16.msra.mxu1 %v6969_v6  ;;  %5395 = vmatprep.mubr.msk.f32.mxu1 %vm6876_vm0, %v8759_v25 }
0x10ff   : > { %6391 = vmatprep.subr.bf16.mxu1 %v8755_v0 }
0x1102   : > { %6393 = vmatpush3.bf16.msra.mxu1 %v6977_v9 }
0x1103   : > { %6394 = vmatprep.subr.bf16.mxu1 %v8755_v0 }
0x1106   : > { %6396 = vmatpush3.bf16.msra.mxu1 %v7000_v19 }
0x1107   : > { %6397 = vmatprep.subr.bf16.mxu1 %v8755_v0 }
0x110a   : > { %6399 = vmatpush3.bf16.msra.mxu1 %v7031_v29 }
0x110b   : > { %6400 = vmatprep.subr.bf16.mxu1 %v8755_v0 }
0x110e   : > { %6402 = vmatpush3.bf16.msra.mxu1 %v7059_v39 }
0x110f   : > { %6403 = vmatprep.subr.bf16.mxu1 %v8755_v0 }
0x1112   : > { %6405 = vmatpush3.bf16.msra.mxu1 %v7088_v48 }
0x1113   : > { %6406 = vmatprep.subr.bf16.mxu1 %v8755_v0 }
0x1116   : > { %6408 = vmatpush3.bf16.msra.mxu1 %v7104_v53 }
0x1117   : > { %6409 = vmatprep.subr.bf16.mxu1 %v8755_v0 }
0x111a   : > { %6411 = vmatpush3.bf16.msra.mxu1 %v7116_v56 }
0x111b   : > { %6445 = vmatprep.subr.bf16.mxu1 %v7210_v31 }
0x111d   : > { %5396 = vmatmul.mubr.f32.vlgmr.msra.gmra.mrb[30].mxu1 %v8886_v52  ;;  %v8894_v52 = vld [vmem:[#allocation35_spill] sm:$0xff] }
0x111e   : > { %6447 = vmatpush3.bf16.msra.mxu1 %v8831_v46 }
0x111f   : > { %6449 = vmatprep.subr.bf16.mxu1 %v7223_v38 }
0x1122   : > { %6451 = vmatpush3.bf16.msra.mxu1 %v8832_v36 }
0x1123   : > { %6453 = vmatprep.subr.bf16.mxu1 %v8833_v16 }
0x1126   : > { %6455 = vmatpush3.bf16.msra.mxu1 %v8887_v43  ;;  %v8895_v43 = vld [vmem:[#allocation53_spill] sm:$0xff] }
0x1127   : > { %6457 = vmatprep.subr.bf16.mxu1 %v8888_v35 }
0x112a   : > { %6459 = vmatpush3.bf16.msra.mxu1 %v8889_v51 }
0x112b   : > { %6461 = vmatprep.subr.bf16.mxu1 %v8806_v21 }
0x112e   : > { %6463 = vmatpush3.bf16.msra.mxu1 %v8890_v34  ;;  %v2408_v34 = vadd.f32 %v8224_v63, %v7820_v26  ;;  %v8897_v26 = vld [vmem:[#allocation9_spill] sm:$0xff]  ;;  %v8898_v63 = vld [vmem:[#allocation10_spill] sm:$0xff] }
0x112f   : > { %6465 = vmatprep.subr.bf16.mxu1 %v8891_v33 }
0x1132   : > { %6467 = vmatpush3.bf16.msra.mxu1 %v8892_v45  ;;  %v8293_v45 = vld [vmem:[%s8575_s5 + $0x6] sm:$0x3] }
0x1133   : > { %6469 = vmatprep.subr.bf16.mxu1 %v8893_v1 }
0x1136   : > { %6471 = vmatpush3.bf16.msra.mxu1 %v8781_v27 }
0x1137   : > { %6473 = vmatprep.subr.bf16.mxu1 %v8811_v62 }
0x113a   : > { %6475 = vmatpush3.bf16.msra.mxu1 %v8894_v52 }
0x113b   : > { %6509 = vmatprep.subr.bf16.mxu1 %v8895_v43 }
0x11d0   : > { %v4772_v35 = vpop.f32.mrb[28].mxu1 }
0x11d1   : > { %v4773_v51 = vpop.f32.mrb[29].mxu1 }
0x11d2   : > { %v4774_v16 = vadd.f32 %v4773_v51, %v4772_v35  ;;  %v8900_v35 = vld [vmem:[#allocation12_spill] sm:$0xff] }
0x11d4   : > { %v2700_v1 = vadd.f32 %v8293_v45, %v4774_v16  ;;  %v8899_v16 = vld [vmem:[#allocation11_spill] sm:$0xff] }
0x11d6   : > { %6798 = vtanh.f32 %v2700_v1 }
0x11d7   : > { %6800 = vtanh.f32 %v2408_v34 }
0x11e0   : > { %v8296_v62 = vpop.eup %6798 }
0x11e1   : > { %v8298_v52 = vpop.eup %6800  ;;  %2768 = vmatprep.mubr.f32.mxu0 %v8296_v62 }
0x11e2   : > { %8896 = vst [vmem:[#allocation33_spill] sm:$0xff] %v8298_v52  ;;  %2769 = vmatmul.mubr.f32.vlgmr.msra.gmra.mrb[30].mxu0 %v8298_v52 }
0x11e3   : > { %6415 = vmatpush3.bf16.msra.mxu0 %v8866_v58 }
0x11e4   : > { %6417 = vmatprep.subr.bf16.mxu0 %v8867_v57  ;;  %v8901_v57 = vld [vmem:[#allocation14_spill] sm:$0xff] }
0x11e7   : > { %6419 = vmatpush3.bf16.msra.mxu0 %v7070_v42  ;;  %v8902_v42 = vrot.slane %v8870_v12, 4 }
0x11e8   : > { %6421 = vmatprep.subr.bf16.mxu0 %v8897_v26 }
0x11eb   : > { %6423 = vmatpush3.bf16.msra.mxu0 %v8898_v63 }
0x11ec   : > { %6425 = vmatprep.subr.bf16.mxu0 %v8899_v16 }
0x11ef   : > { %6427 = vmatpush3.bf16.msra.mxu0 %v8900_v35  ;;  %v8903_v35 = vld [vmem:[#allocation18_spill] sm:$0xff] }
0x11f0   : > { %v2841_v51 = vpop.f32.mrb[30].mxu1  ;;  %6429 = vmatprep.subr.bf16.mxu0 %v8869_v32 }
0x11f1   : > { %v2846_v34 = vrot.slane %v2841_v51, 4  ;;  %v5397_v1 = vpop.f32.mrb[31].mxu1  ;;  %v8904_v51 = vld [vmem:[#allocation19_spill] sm:$0xff] }
0x11f2   : > { %v8905_v1 = vld [vmem:[#allocation36_spill] sm:$0xff] }
0x11f3   : > { %v2848_v52 = vadd.f32 %v8845_v55, %v2846_v34  ;;  %6431 = vmatpush3.bf16.msra.mxu0 %v7143_v2 }
0x11f4   : > { %6433 = vmatprep.subr.bf16.mxu0 %v8901_v57 }
0x11f5   : > { %v2849_v26 = vadd.f32 %v2848_v52, %v8902_v42  ;;  %v8906_v42 = vld [vmem:[#allocation39_spill] sm:$0xff]  ;;  %v8907_v52 = vld [vmem:[#allocation40_spill] sm:$0xff] }
0x11f7   : > { %6802 = vtanh.f32 %v2849_v26  ;;  %6435 = vmatpush3.bf16.msra.mxu0 %v8814_v37  ;;  %v8908_v26 = vld [vmem:[#allocation41_spill] sm:$0xff] }
0x11f8   : > { %6437 = vmatprep.subr.bf16.mxu0 %v8872_v3 }
0x11fb   : > { %6439 = vmatpush3.bf16.msra.mxu0 %v8873_v11  ;;  %v8912_v11 = vld [vmem:[#allocation46_spill] sm:$0xff] }
0x11fc   : > { %6441 = vmatprep.subr.bf16.mxu0 %v8903_v35  ;;  %v8911_v35 = vld [vmem:[#allocation45_spill] sm:$0xff] }
0x11ff   : > { %6443 = vmatpush3.bf16.msra.mxu0 %v8904_v51  ;;  %v8910_v51 = vld [vmem:[#allocation43_spill] sm:$0xff] }
0x1200   : > { %6477 = vmatprep.subr.bf16.mxu0 %v8905_v1  ;;  %v8909_v1 = vld [vmem:[#allocation42_spill] sm:$0xff] }
0x1201   : > { %v8321_v34 = vpop.eup %6802 }
0x1202   : > { %v8707_v57 = vrot.slane %v8321_v34, 4 }
0x1204   : > { %2918 = vmatprep.mubr.f32.mxu0 %v8707_v57  ;;  %v8913_v57 = vld [vmem:[#allocation47_spill] sm:$0xff] }
0x1205   : > { %2919 = vmatmul.mubr.f32.vlgmr.msra.gmra.mrb[32].mxu0 %v8227_v18  ;;  %v8914_v18 = vld [vmem:[#allocation48_spill] sm:$0xff] }
0x1206   : > { %6479 = vmatpush3.bf16.msra.mxu0 %v8788_v17 }
0x1207   : > { %6481 = vmatprep.subr.bf16.mxu0 %v8820_v47 }
0x120a   : > { %6483 = vmatpush3.bf16.msra.mxu0 %v8906_v42 }
0x120b   : > { %6485 = vmatprep.subr.bf16.mxu0 %v8907_v52 }
0x120e   : > { %6487 = vmatpush3.bf16.msra.mxu0 %v8908_v26 }
0x120f   : > { %6489 = vmatprep.subr.bf16.mxu0 %v8909_v1 }
0x1212   : > { %6491 = vmatpush3.bf16.msra.mxu0 %v8910_v51 }
0x1213   : > { %6493 = vmatprep.subr.bf16.mxu0 %v8911_v35 }
0x1216   : > { %6495 = vmatpush3.bf16.msra.mxu0 %v8912_v11 }
0x1217   : > { %6497 = vmatprep.subr.bf16.mxu0 %v8913_v57 }
0x121a   : > { %6499 = vmatpush3.bf16.msra.mxu0 %v8914_v18 }
0x121b   : > { %6501 = vmatprep.subr.bf16.mxu0 %v8766_v30 }
0x121e   : > { %6503 = vmatpush3.bf16.msra.mxu0 %v8884_v7 }
0x121f   : > { %6505 = vmatprep.subr.bf16.mxu0 %v8885_v5 }
0x1222   : > { %6507 = vmatpush3.bf16.msra.mxu0 %v8800_v22 }
0x1223   : > { %6540 = vmatprep.subr.bf16.mxu0 %v8755_v0 }
0x12b5   : > { %v4807_v1 = vpop.f32.mrb[30].mxu0 }
0x12b6   : > { %v4808_v51 = vpop.f32.mrb[31].mxu0 }
0x12b7   : > { %v8343_v26 = vadd.f32 %v4808_v51, %v4807_v1  ;;  %v8927_v1 = vld [vmem:[#allocation9_spill] sm:$0xff] }
0x12d8   : > { %v4859_v35 = vpop.f32.mrb[32].mxu0 }
0x12d9   : > { %v4860_v11 = vpop.f32.mrb[33].mxu0 }
0x12da   : > { %v4861_v52 = vadd.f32 %v4860_v11, %v4859_v35 }
0x12dc   : > { %v2921_v57 = vadd.f32 %v8106_v10, %v4861_v52 }
0x12de   : > { %6804 = vtanh.f32 %v2921_v57 }
0x12e8   : > { %v8346_v18 = vpop.eup %6804 }
0x12e9   : > { %2989 = vmatprep.mubr.f32.mxu1 %v8346_v18 }
0x12ea   : > { %2990 = vmatmul.mubr.f32.vlgmr.msra.gmra.mrb[32].mxu1 %v8248_v60 }
0x12eb   : > { %6511 = vmatpush3.bf16.msra.mxu1 %v8771_v50 }
0x12ec   : > { %6513 = vmatprep.subr.bf16.mxu1 %v8772_v54 }
0x12ef   : > { %6515 = vmatpush3.bf16.msra.mxu1 %v7551_v13 }
0x12f0   : > { %6517 = vmatprep.subr.bf16.mxu1 %v7554_v44 }
0x12f3   : > { %6519 = vmatpush3.bf16.msra.mxu1 %v7563_v28 }
0x12f4   : > { %6521 = vmatprep.subr.bf16.mxu1 %v7617_v41 }
0x12f7   : > { %6523 = vmatpush3.bf16.msra.mxu1 %v7625_v23 }
0x12f8   : > { %6525 = vmatprep.subr.bf16.mxu1 %v7635_v15 }
0x12fb   : > { %6527 = vmatpush3.bf16.msra.mxu1 %v7643_v4 }
0x12fc   : > { %6529 = vmatprep.subr.bf16.mxu1 %v7656_v61 }
0x12ff   : > { %6531 = vmatpush3.bf16.msra.mxu1 %v7667_v49 }
0x1300   : > { %6533 = vmatprep.subr.bf16.mxu1 %v7669_v40 }
0x1303   : > { %6535 = vmatpush3.bf16.msra.mxu1 %v7685_v59 }
0x1304   : > { %6537 = vmatprep.subr.bf16.mxu1 %v7688_v8 }
0x1307   : > { %6539 = vmatpush3.bf16.msra.mxu1 %v7697_v20 }
0x1308   : > { %6565 = vmatprep.subr.bf16.mxu1 %v7016_v24  ;;  %v8918_v24 = vld [vmem:[#allocation24_spill] sm:$0xff] }
0x13bd   : > { %v4894_v57 = vpop.f32.mrb[32].mxu1 }
0x13be   : > { %v4895_v11 = vpop.f32.mrb[33].mxu1 }
0x13bf   : > { %v4896_v60 = vadd.f32 %v4895_v11, %v4894_v57 }
0x13c1   : > { %v2992_v35 = vadd.f32 %v8132_v14, %v4896_v60  ;;  %v8930_v60 = vrot.slane %v8870_v12, 2  ;;  %v8937_v12 = vld [vmem:[#allocation42_spill] sm:$0xff] }
0x13c3   : > { %6806 = vtanh.f32 %v2992_v35 }
0x13cd   : > { %v8367_v51 = vpop.eup %6806 }
0x13ce   : > { %3060 = vmatprep.mubr.f32.mxu0 %v8367_v51 }
0x13cf   : > { %3061 = vmatmul.mubr.f32.vlgmr.msra.gmra.mrb[34].mxu0 %v8296_v62  ;;  %v8410_v62 = vld [vmem:[%s8575_s5 + $0x8] sm:$0x3] }
0x13d0   : > { %6542 = vmatpush3.bf16.msra.mxu0 %v6969_v6  ;;  %5430 = vmatprep.mubr.msk.f32.mxu0 %vm6876_vm0, %v8759_v25  ;;  %v8915_v6 = vrot.slane %v8321_v34, 4  ;;  %v8928_v34 = vld [vmem:[#allocation12_spill] sm:$0xff] }
0x13d1   : > { %6543 = vmatprep.subr.bf16.mxu0 %v8755_v0 }
0x13d4   : > { %6545 = vmatpush3.bf16.msra.mxu0 %v6977_v9  ;;  %v8916_v9 = vld [vmem:[#allocation22_spill] sm:$0xff] }
0x13d5   : > { %6546 = vmatprep.subr.bf16.mxu0 %v8755_v0 }
0x13d8   : > { %6548 = vmatpush3.bf16.msra.mxu0 %v7000_v19  ;;  %v8917_v19 = vld [vmem:[#allocation23_spill] sm:$0xff] }
0x13d9   : > { %6549 = vmatprep.subr.bf16.mxu0 %v8755_v0 }
0x13dc   : > { %6551 = vmatpush3.bf16.msra.mxu0 %v7031_v29  ;;  %v8919_v29 = vld [vmem:[#allocation25_spill] sm:$0xff] }
0x13dd   : > { %6552 = vmatprep.subr.bf16.mxu0 %v8755_v0 }
0x13e0   : > { %6554 = vmatpush3.bf16.msra.mxu0 %v7059_v39  ;;  %v8920_v39 = vld [vmem:[#allocation29_spill] sm:$0xff] }
0x13e1   : > { %6555 = vmatprep.subr.bf16.mxu0 %v8755_v0 }
0x13e4   : > { %6557 = vmatpush3.bf16.msra.mxu0 %v7088_v48  ;;  %v8921_v48 = vld [vmem:[#allocation31_spill] sm:$0xff] }
0x13e5   : > { %6558 = vmatprep.subr.bf16.mxu0 %v8755_v0 }
0x13e8   : > { %6560 = vmatpush3.bf16.msra.mxu0 %v7104_v53  ;;  %v8922_v53 = vld [vmem:[#allocation32_spill] sm:$0xff] }
0x13e9   : > { %6561 = vmatprep.subr.bf16.mxu0 %v8755_v0 }
0x13ec   : > { %6563 = vmatpush3.bf16.msra.mxu0 %v7116_v56  ;;  %v8923_v56 = vld [vmem:[#allocation34_spill] sm:$0xff] }
0x13ed   : > { %6597 = vmatprep.subr.bf16.mxu0 %v7210_v31  ;;  %v8924_v31 = vld [vmem:[#allocation35_spill] sm:$0xff] }
0x13ef   : > { %5431 = vmatmul.mubr.f32.vlgmr.msra.gmra.mrb[36].mxu0 %v8915_v6  ;;  %v8934_v6 = vld [vmem:[#allocation36_spill] sm:$0xff] }
0x13f0   : > { %6599 = vmatpush3.bf16.msra.mxu0 %v8831_v46 }
0x13f1   : > { %6601 = vmatprep.subr.bf16.mxu0 %v7223_v38 }
0x13f4   : > { %6603 = vmatpush3.bf16.msra.mxu0 %v8832_v36 }
0x13f5   : > { %6605 = vmatprep.subr.bf16.mxu0 %v8916_v9  ;;  %v8938_v9 = vld [vmem:[#allocation43_spill] sm:$0xff] }
0x13f8   : > { %6607 = vmatpush3.bf16.msra.mxu0 %v8917_v19  ;;  %v8939_v19 = vld [vmem:[#allocation45_spill] sm:$0xff] }
0x13f9   : > { %6609 = vmatprep.subr.bf16.mxu0 %v8918_v24  ;;  %v8940_v24 = vld [vmem:[#allocation46_spill] sm:$0xff] }
0x13fc   : > { %6611 = vmatpush3.bf16.msra.mxu0 %v8919_v29  ;;  %v8941_v29 = vld [vmem:[#allocation47_spill] sm:$0xff] }
0x13fd   : > { %6613 = vmatprep.subr.bf16.mxu0 %v8806_v21  ;;  %v2771_v21 = vadd.f32 %v8410_v62, %v8343_v26 }
0x1400   : > { %6615 = vmatpush3.bf16.msra.mxu0 %v8920_v39 }
0x1401   : > { %6617 = vmatprep.subr.bf16.mxu0 %v8891_v33  ;;  %v8926_v33 = vld [vmem:[#allocation8_spill] sm:$0xff] }
0x1404   : > { %6619 = vmatpush3.bf16.msra.mxu0 %v8921_v48 }
0x1405   : > { %6621 = vmatprep.subr.bf16.mxu0 %v8922_v53 }
0x1408   : > { %6623 = vmatpush3.bf16.msra.mxu0 %v8781_v27 }
0x1409   : > { %6625 = vmatprep.subr.bf16.mxu0 %v8923_v56 }
0x140c   : > { %6627 = vmatpush3.bf16.msra.mxu0 %v8924_v31 }
0x140d   : > { %6661 = vmatprep.subr.bf16.mxu0 %v8895_v43  ;;  %v8925_v43 = vld [vmem:[#allocation7_spill] sm:$0xff] }
0x14a2   : > { %v4929_v38 = vpop.f32.mrb[34].mxu0 }
0x14a3   : > { %v4930_v0 = vpop.f32.mrb[35].mxu0 }
0x14a4   : > { %v4931_v25 = vadd.f32 %v4930_v0, %v4929_v38  ;;  %v3538_v38 = vld [vmem:[%s8576_s6 + $0x28] sm:$0xff] }
0x14a6   : > { %v3063_v46 = vadd.f32 %v8293_v45, %v4931_v25 }
0x14a8   : > { %6808 = vtanh.f32 %v3063_v46 }
0x14a9   : > { %6810 = vtanh.f32 %v2771_v21 }
0x14b2   : > { %v8415_v27 = vpop.eup %6808 }
0x14b3   : > { %v8417_v36 = vpop.eup %6810  ;;  %3131 = vmatprep.mubr.f32.mxu1 %v8415_v27 }
0x14b4   : > { %3132 = vmatmul.mubr.f32.vlgmr.msra.gmra.mrb[34].mxu1 %v8417_v36 }
0x14b5   : > { %6567 = vmatpush3.bf16.msra.mxu1 %v8866_v58  ;;  %v8929_v58 = vld [vmem:[#allocation14_spill] sm:$0xff] }
0x14b6   : > { %6569 = vmatprep.subr.bf16.mxu1 %v8925_v43 }
0x14b9   : > { %6571 = vmatpush3.bf16.msra.mxu1 %v8926_v33 }
0x14ba   : > { %6573 = vmatprep.subr.bf16.mxu1 %v8927_v1 }
0x14bd   : > { %6575 = vmatpush3.bf16.msra.mxu1 %v8898_v63  ;;  %v8931_v63 = vld [vmem:[#allocation17_spill] sm:$0xff] }
0x14be   : > { %6577 = vmatprep.subr.bf16.mxu1 %v8899_v16  ;;  %v8932_v16 = vld [vmem:[#allocation18_spill] sm:$0xff] }
0x14c1   : > { %6579 = vmatpush3.bf16.msra.mxu1 %v8928_v34  ;;  %v3539_v34 = vld [vmem:[%s8576_s6 + $0x30] sm:$0xff] }
0x14c2   : > { %v3204_v52 = vpop.f32.mrb[36].mxu0  ;;  %6581 = vmatprep.subr.bf16.mxu1 %v8869_v32  ;;  %v8933_v32 = vld [vmem:[#allocation19_spill] sm:$0xff] }
0x14c3   : > { %v3209_v26 = vrot.slane %v3204_v52, 2  ;;  %v5432_v57 = vpop.f32.mrb[37].mxu0  ;;  %v3540_v52 = vld [vmem:[%s8576_s6 + $0x38] sm:$0xff] }
0x14c4   : > { %v3542_v57 = vld [vmem:[%s8576_s6 + $0x48] sm:$0xff] }
0x14c5   : > { %v3211_v11 = vadd.f32 %v8845_v55, %v3209_v26  ;;  %6583 = vmatpush3.bf16.msra.mxu1 %v7143_v2  ;;  %v6704_v26 = vpack.c.bf16 %v3540_v52, %v3539_v34 }
0x14c6   : > { %6585 = vmatprep.subr.bf16.mxu1 %v8929_v58  ;;  %v3543_v58 = vld [vmem:[%s8576_s6 + $0x50] sm:$0xff] }
0x14c7   : > { %v3212_v35 = vadd.f32 %v3211_v11, %v8930_v60  ;;  %v3544_v60 = vld [vmem:[%s8576_s6 + $0x58] sm:$0xff] }
0x14c9   : > { %6812 = vtanh.f32 %v3212_v35  ;;  %6587 = vmatpush3.bf16.msra.mxu1 %v8814_v37  ;;  %v8935_v37 = vld [vmem:[#allocation40_spill] sm:$0xff]  ;;  %v6712_v35 = vpack.c.bf16 %v3544_v60, %v3543_v58 }
0x14ca   : > { %6589 = vmatprep.subr.bf16.mxu1 %v8872_v3  ;;  %v8936_v3 = vld [vmem:[#allocation41_spill] sm:$0xff] }
0x14cd   : > { %6591 = vmatpush3.bf16.msra.mxu1 %v8931_v63  ;;  %v3545_v63 = vld [vmem:[%s8576_s6 + $0x60] sm:$0xff] }
0x14ce   : > { %6593 = vmatprep.subr.bf16.mxu1 %v8932_v16  ;;  %v3546_v16 = vld [vmem:[%s8576_s6 + $0x68] sm:$0xff] }
0x14d1   : > { %6595 = vmatpush3.bf16.msra.mxu1 %v8933_v32  ;;  %v6716_v32 = vpack.c.bf16 %v3546_v16, %v3545_v63 }
0x14d2   : > { %6629 = vmatprep.subr.bf16.mxu1 %v8934_v6  ;;  %v3547_v6 = vld [vmem:[%s8576_s6 + $0x70] sm:$0xff] }
0x14d3   : > { %v6813_v55 = vpop.eup %6812 }
0x14d4   : > { %3501 = vst [vmem:[#allocation2 - $0x6] sm:$0xc0] %v6813_v55  ;;  %v3215_v2 = vrot.slane %v6813_v55, 6  ;;  %v3548_v55 = vld [vmem:[%s8576_s6 + $0x78] sm:$0xff] }
0x14d6   : > { %3281 = vmatprep.mubr.f32.mxu1 %v3215_v2  ;;  %v6720_v2 = vpack.c.bf16 %v3548_v55, %v3547_v6 }
0x14d7   : > { %3282 = vmatmul.mubr.f32.vlgmr.msra.gmra.mrb[36].mxu1 %v8346_v18  ;;  %v8942_v18 = vld [vmem:[#allocation48_spill] sm:$0xff] }
0x14d8   : > { %6631 = vmatpush3.bf16.msra.mxu1 %v8788_v17 }
0x14d9   : > { %6633 = vmatprep.subr.bf16.mxu1 %v8820_v47 }
0x14dc   : > { %6635 = vmatpush3.bf16.msra.mxu1 %v8906_v42 }
0x14dd   : > { %6637 = vmatprep.subr.bf16.mxu1 %v8935_v37 }
0x14e0   : > { %6639 = vmatpush3.bf16.msra.mxu1 %v8936_v3 }
0x14e1   : > { %6641 = vmatprep.subr.bf16.mxu1 %v8937_v12 }
0x14e4   : > { %6643 = vmatpush3.bf16.msra.mxu1 %v8938_v9 }
0x14e5   : > { %6645 = vmatprep.subr.bf16.mxu1 %v8939_v19  ;;  %v3516_v19 = vrot.slane %v8417_v36, 6 }
0x14e8   : > { %6647 = vmatpush3.bf16.msra.mxu1 %v8940_v24 }
0x14e9   : > { %6649 = vmatprep.subr.bf16.mxu1 %v8941_v29 }
0x14ec   : > { %6651 = vmatpush3.bf16.msra.mxu1 %v8942_v18 }
0x14ed   : > { %6653 = vmatprep.subr.bf16.mxu1 %v8766_v30 }
0x14f0   : > { %6655 = vmatpush3.bf16.msra.mxu1 %v8884_v7 }
0x14f1   : > { %6657 = vmatprep.subr.bf16.mxu1 %v8885_v5 }
0x14f4   : > { %6659 = vmatpush3.bf16.msra.mxu1 %v8800_v22 }
0x1587   : > { %v4964_v17 = vpop.f32.mrb[34].mxu1 }
0x1588   : > { %v4965_v47 = vpop.f32.mrb[35].mxu1 }
0x1589   : > { %v4966_v42 = vadd.f32 %v4965_v47, %v4964_v17  ;;  %v8947_v17 = vld [vmem:[#allocation33_spill] sm:$0xff] }
0x158a   : > { %v3530_v47 = vsel %vm3524_vm2, %v8947_v17, %v3516_v19 }
0x15aa   : > { %v5016_v39 = vpop.f32.mrb[36].mxu1 }
0x15ab   : > { %v5017_v48 = vpop.f32.mrb[37].mxu1 }
0x15ac   : > { %v5018_v53 = vadd.f32 %v5017_v48, %v5016_v39  ;;  %v3854_v48 = vld [vmem:[%s8577_s7] ss:$0 sm:$0xff] }
0x15ae   : > { %v3284_v56 = vadd.f32 %v8106_v10, %v5018_v53  ;;  %v3536_v10 = vld [vmem:[%s8576_s6 + $0x18] sm:$0xff] }
0x15b0   : > { %6814 = vtanh.f32 %v3284_v56 }
0x15ba   : > { %v6815_v31 = vpop.eup %6814 }
0x15bb   : > { %3502 = vst [vmem:[#allocation2 + $0x2] sm:$0x3] %v6815_v31  ;;  %3352 = vmatprep.mubr.f32.mxu0 %v6815_v31 }
0x15bc   : > { %3353 = vmatmul.mubr.f32.vlgmr.msra.gmra.mrb[38].mxu0 %v8367_v51  ;;  %v3537_v51 = vld [vmem:[%s8576_s6 + $0x20] sm:$0xff] }
0x15bd   : > { %6663 = vmatpush3.bf16.msra.mxu0 %v8771_v50  ;;  %v6700_v0 = vpack.c.bf16 %v3538_v38, %v3537_v51 }
0x15be   : > { %6665 = vmatprep.subr.bf16.mxu0 %v8772_v54  ;;  %v8943_v54 = vld [vmem:[#allocation44_spill] sm:$0xff] }
0x15c1   : > { %6667 = vmatpush3.bf16.msra.mxu0 %v7551_v13  ;;  %v8944_v13 = vld [vmem:[#allocation54_spill] sm:$0xff] }
0x15c2   : > { %6669 = vmatprep.subr.bf16.mxu0 %v7554_v44 }
0x15c5   : > { %6671 = vmatpush3.bf16.msra.mxu0 %v7563_v28  ;;  %v3507_v28 = vrot.slane %v8943_v54, 6 }
0x15c6   : > { %6673 = vmatprep.subr.bf16.mxu0 %v7617_v41  ;;  %v8946_v41 = vld [vmem:[#allocation49_spill] sm:$0xff] }
0x15c9   : > { %6675 = vmatpush3.bf16.msra.mxu0 %v7625_v23  ;;  %v3525_v23 = vsel %vm3524_vm2, %v8946_v41, %v3507_v28 }
0x15ca   : > { %6677 = vmatprep.subr.bf16.mxu0 %v7635_v15 }
0x15cd   : > { %6679 = vmatpush3.bf16.msra.mxu0 %v7643_v4  ;;  %v3533_v4 = vld [vmem:[%s8576_s6] sm:$0xff] }
0x15ce   : > { %6681 = vmatprep.subr.bf16.mxu0 %v7656_v61  ;;  %v3510_v61 = vrot.slane %v8944_v13, 4 }
0x15d1   : > { %6683 = vmatpush3.bf16.msra.mxu0 %v7667_v49  ;;  %v8945_v49 = vld [vmem:[#allocation55_spill] sm:$0xff] }
0x15d2   : > { %6685 = vmatprep.subr.bf16.mxu0 %v7669_v40  ;;  %v3513_v44 = vrot.slane %v8945_v49, 2 }
0x15d5   : > { %6687 = vmatpush3.bf16.msra.mxu0 %v7685_v59  ;;  %v3534_v59 = vld [vmem:[%s8576_s6 + $0x8] sm:$0xff] }
0x15d6   : > { %6689 = vmatprep.subr.bf16.mxu0 %v7688_v8  ;;  %v3535_v8 = vld [vmem:[%s8576_s6 + $0x10] sm:$0xff]  ;;  %v6692_v5 = vpack.c.bf16 %v3534_v59, %v3533_v4 }
0x15d8   : > { %6693 = vmatprep.subr.bf16.mxu1 %v6692_v5 }
0x15d9   : > { %6691 = vmatpush3.bf16.msra.mxu0 %v7697_v20  ;;  %v3527_v20 = vsel %vm3526_vm3, %v3525_v23, %v3510_v61 }
0x15da   : > { %v3529_v15 = vsel %vm3528_vm4, %v3527_v20, %v3513_v44 }
0x168f   : > { %v5051_v7 = vpop.f32.mrb[38].mxu0 }
0x1690   : > { %v5052_v22 = vpop.f32.mrb[39].mxu0 }
0x1691   : > { %v5053_v30 = vadd.f32 %v5052_v22, %v5051_v7 }
0x1693   : > { %v3355_v50 = vadd.f32 %v8132_v14, %v5053_v30  ;;  %v6696_v14 = vpack.c.bf16 %v3536_v10, %v3535_v8 }
0x1695   : > { %6816 = vtanh.f32 %v3355_v50 }
0x169f   : > { %v6817_v40 = vpop.eup %6816 }
0x16a0   : > { %3503 = vst [vmem:[#allocation2 + $0x4] sm:$0x3] %v6817_v40  ;;  %3423 = vmatprep.mubr.f32.mxu1 %v6817_v40 }
0x16a1   : > { %3424 = vmatmul.mubr.f32.vlgmr.msra.gmra.mrb[38].mxu1 %v8415_v27  ;;  %v3134_v27 = vadd.f32 %v8410_v62, %v4966_v42 }
0x16a2   : > { %5465 = vmatprep.mubr.f32.mxu1 %v3529_v15  ;;  %6695 = vmatpush3.bf16.msra.mxu1 %v6692_v5 }
0x16a3   : > { %6697 = vmatprep.subr.bf16.mxu1 %v6696_v14 }
0x16a6   : > { %6699 = vmatpush3.bf16.msra.mxu1 %v6696_v14 }
0x16a7   : > { %6701 = vmatprep.subr.bf16.mxu1 %v6700_v0 }
0x16aa   : > { %6703 = vmatpush3.bf16.msra.mxu1 %v6700_v0 }
0x16ab   : > { %6705 = vmatprep.subr.bf16.mxu1 %v6704_v26 }
0x16ae   : > { %6707 = vmatpush3.bf16.msra.mxu1 %v6704_v26 }
0x1774   : > { %v5086_v25 = vpop.f32.mrb[38].mxu1 }
0x1775   : > { %v5087_v21 = vpop.f32.mrb[39].mxu1 }
0x1776   : > { %v5088_v46 = vadd.f32 %v5087_v21, %v5086_v25 }
0x1778   : > { %v3426_v43 = vadd.f32 %v8293_v45, %v5088_v46  ;;  %v3541_v45 = vld [vmem:[%s8576_s6 + $0x40] sm:$0xff] }
0x1779   : > { %v6708_v11 = vpack.c.bf16 %v3542_v57, %v3541_v45 }
0x177a   : > { %6818 = vtanh.f32 %v3426_v43 }
0x177b   : > { %6820 = vtanh.f32 %v3134_v27  ;;  %6709 = vmatprep.subr.bf16.mxu1 %v6708_v11 }
0x177c   : > { %6711 = vmatpush3.bf16.msra.mxu1 %v6708_v11 }
0x177d   : > { %6713 = vmatprep.subr.bf16.mxu1 %v6712_v35 }
0x1780   : > { %6715 = vmatpush3.bf16.msra.mxu1 %v6712_v35 }
0x1781   : > { %6717 = vmatprep.subr.bf16.mxu1 %v6716_v32 }
0x1784   : > { %v6819_v33 = vpop.eup %6818  ;;  %6719 = vmatpush3.bf16.msra.mxu1 %v6716_v32 }
0x1785   : > { %v6821_v1 = vpop.eup %6820  ;;  %3504 = vst [vmem:[#allocation2 + $0x6] sm:$0x3] %v6819_v33  ;;  %3494 = vmatprep.mubr.f32.mxu0 %v6819_v33  ;;  %6721 = vmatprep.subr.bf16.mxu1 %v6720_v2 }
0x1786   : > { %3495 = vmatmul.mubr.f32.vlgmr.msra.gmra.mrb[40].mxu0 %v6821_v1  ;;  %v3519_v24 = vrot.slane %v6821_v1, 4 }
0x1788   : > { %6723 = vmatpush3.bf16.msra.mxu1 %v6720_v2  ;;  %v3531_v42 = vsel %vm3526_vm3, %v3530_v47, %v3519_v24 }
0x178c   : > { %v3650_v61 = vld [vmem:[#allocation2] sm:$0xff] (!%p3857_p5)  }
0x178d   : > { %3655 = vst [vmem:[#allocation3] sm:$0xff] (!%p3857_p5), %v3650_v61  }
0x1859   : > { %v5121_v37 = vpop.f32.mrb[40].mxu0 }
0x185a   : > { %v5122_v3 = vpop.f32.mrb[41].mxu0 }
0x185b   : > { %v5123_v12 = vadd.f32 %v5122_v3, %v5121_v37 }
0x185d   : > { %v3497_v9 = vadd.f32 %v8410_v62, %v5123_v12 }
0x185f   : > { %6822 = vtanh.f32 %v3497_v9 }
0x1869   : > { %v6823_v29 = vpop.eup %6822 }
0x186a   : > { %3505 = vst [vmem:[#allocation2 + $0x8] sm:$0x3] %v6823_v29  ;;  %v3522_v18 = vrot.slane %v6823_v29, 2 }
0x186c   : > { %v3532_v39 = vsel %vm3528_vm4, %v3531_v42, %v3522_v18 }
0x186d   : > { %5466 = vmatmul.mubr.f32.vlgmr.msra.gmra.mrb[40].mxu1 %v3532_v39 }
0x1871   : > { %v3654_v49 = vld [vmem:[#allocation2 + $0x8] sm:$0x3] (!%p3857_p5) }
0x1872   : > { %3659 = vst [vmem:[#allocation3 + $0x8] sm:$0x3] (!%p3857_p5), %v3654_v49 }
0x1940   : > { %v5467_v62 = vpop.f32.mrb[40].mxu1 }
0x1941   : > { %v3628_v53 = vadd.f32 %v5467_v62, %v3854_v48  ;;  %v3622_v36 = vpop.f32.mrb[41].mxu1 }
0x1942   : > { %v3623_v56 = vadd.f32 %v3854_v48, %v3622_v36 }
0x1943   : > { %v3856_v31 = vmul.f32 -1.442695, %v3628_v53 }
0x1944   : > { %v3855_v7 = vmul.f32 -1.442695, %v3623_v56 }
0x1945   : > { %6824 = vpow2.f32 %v3856_v31 }
0x1946   : > { %6826 = vpow2.f32 %v3855_v7 }
0x194f   : > { %v6825_v22 = vpop.eup %6824 }
0x1950   : > { %v6827_v30 = vpop.eup %6826  ;;  %v3638_v50 = vadd.f32 1.0, %v6825_v22 }
0x1951   : > { %v3637_v54 = vadd.f32 1.0, %v6827_v30 }
0x1953   : > { %6828 = vrcp.f32 %v3637_v54 }
0x1954   : > { %6830 = vrcp.f32 %v3638_v50 }
0x1959   : > { %3649 = sbr.rel (%p3857_p5) target bundleno = 6496 (0x1960), region = 60 }
0x195d   : > { %v6829_v28 = vpop.eup %6828 }
0x195e   : > { %v6831_v13 = vpop.eup %6830  ;;  %3644 = vst.msk [vmem:[%s6950_s18] sm:$0xff] %vm3643_vm5, %v6829_v28 }
0x195f   : > { %3645 = vst.msk [vmem:[%s6950_s18 + $0x8] sm:$0xff] %vm3643_vm5, %v6831_v13 }
0x1960 PF: > { %p6728_p6 = scmp.eq.s32.totalorder %s6937_s10, 1  ;;  %s6878_s14 = smov [#allocation3]  }
0x1961   : > { %s3675_s16 = sshll.u32 %s6878_s14, 4  ;;  %s3676_s16 = int_to_ptr.vmem [resolvable:$true] %s3675_s16 }
0x1962   : > { %s6837_s17 = scalar_lea.vmem %s3676_s16, 160  ;;  %p6844_p10 = scmp.lt.s32.totalorder %s3676_s16, %s3676_s16 }
0x1963   : > { %p6838_p7 = scmp.ne.s32.totalorder %s3676_s16, %s6837_s17  ;;  %p6845_p11 = scmp.lt.s32.totalorder %s6837_s17, %s6837_s17 }
0x1965   : > { %p6839_p8 = pnand %p6838_p7, %p6728_p6  ;;  %p6846_p12 = por %p6845_p11, %p6844_p10 }
0x1967   : > { %p6840_p9 = pneg %p6839_p8 }
0x1969   : > { %p6847_p13 = pnand %p6846_p12, %p6840_p9 }
0x196b   : > { %6850 = shalt.err (!%p6847_p13)
}
0x196c   : > { %s6851_s19 = scalar_lea.hbm %s8579_s9, 160 }
0x196d   : > { %p6852_p0 = scmp.ne.s32.totalorder %s8579_s9, %s6851_s19  ;;  %p6857_p3 = scmp.lt.u32.totalorder %s6851_s19, %s8579_s9 }
0x196f   : > { %p6853_p1 = pnand %p6852_p0, %p6728_p6 }
0x1971   : > { %p6854_p2 = pneg %p6853_p1 }
0x1973   : > { %p6859_p4 = pnand %p6857_p3, %p6854_p2 }
0x1975   : > { %6862 = shalt.err (!%p6859_p4)
}
0x1976   : > { %s6879_s24 = smov 32   ;;  %s6880_s25 = smov 2  }
0x1977   : > { %6725 = dma.vmem_to_hbm [thread:$0]  (%p6728_p6), %s3676_s16, 160, %s8579_s9, [#allocation4], %s6879_s24, %s6879_s24, %s6880_s25  }
0x1978   : > { %6868 = dma.done.wait (%p6728_p6), [#allocation4], 160  }
0x1979   : > { %6870 = vsyncadd (%p6728_p6), [#allocation4], 4294967136 }
0x197a PF: > { %s21_s30 = sadd.s32 1, %s6873_s30  }
0x197b   : > { %p18_p5 = scmp.ge.s32.totalorder %s21_s30, 4  }
0x197d   :  { %20 = sbr.rel (!%p18_p5) target bundleno = 1 (0x1), region = 110 }
0x1984   :  { %3699 = vsyncpa [#allocation4], 1 }
0x1985   :  { %3701 = vsyncpa [#allocation4 + $0x1], 1 }

</bundles_post_ra>
